<compile_context>
chip_gen: v7x
topology: tpu7x:2x2x1
jax: 0.10.0
libtpu: 0.0.40
codegen_flags: <defaults>
</compile_context>

<pallas_src>
import jax
import jax.numpy as jnp
from jax.experimental import pallas as pl
from jax.experimental.pallas import tpu as pltpu

_LANES = 128


# ---------------- in-kernel conv helper (pure values, all in VMEM) ----------------

def _conv3x3(x, w_bf16, b_f32, *, relu):
    """3x3 'same' conv as an in-VMEM im2col matmul on the MXU.

    x: (B, H, W, Cin) f32; w_bf16: (9*Cin, Cout) bf16 ordered (dy, dx, cin);
    b_f32: (1, Cout) f32.  Returns (B, H, W, Cout) f32 (f32 accumulation).
    """
    B, H, W, Cin = x.shape
    Cout = w_bf16.shape[1]

    # Cast ONCE to bf16, build a single zero-padded buffer; the 9 shifted views
    # are cheap static slices of it (no per-shift zero tensors / concats).
    xb = x.astype(jnp.bfloat16)
    zrow = jnp.zeros((B, 1, W, Cin), jnp.bfloat16)
    xp = jnp.concatenate([zrow, xb, zrow], axis=1)              # (B, H+2, W,   Cin)
    zcol = jnp.zeros((B, H + 2, 1, Cin), jnp.bfloat16)
    xp = jnp.concatenate([zcol, xp, zcol], axis=2)              # (B, H+2, W+2, Cin)

    cols = jnp.concatenate(
        [xp[:, dy:dy + H, dx:dx + W, :] for dy in range(3) for dx in range(3)],
        axis=-1,
    )                                                           # (B, H, W, 9*Cin) bf16
    acc = jnp.dot(cols.reshape(B * H * W, 9 * Cin), w_bf16,
                  preferred_element_type=jnp.float32)           # MXU, f32 accum
    acc = acc + b_f32
    if relu:
        acc = jnp.maximum(acc, 0.0)
    return acc.reshape(B, H, W, Cout)


# ---------------- fused forward kernel (whole model, B_blk images per step) --------

def _fused_forward_kernel(x_ref, w1, b1, w2, b2, w3, b3, wc, bc, wl, bl, out_ref):
    x = x_ref[...]                                          # (B, H, W, C) f32

    # DnCNN: conv+ReLU -> conv+ReLU -> conv
    h = _conv3x3(x, w1[...], b1[...], relu=True)
    h = _conv3x3(h, w2[...], b2[...], relu=True)
    mid = _conv3x3(h, w3[...], b3[...], relu=False)

    # shortcut = identity  ->  fused residual add (f32, in VMEM)
    fused = mid + x

    # ResNet head: conv+ReLU -> global average pool -> linear, all fused
    hr = _conv3x3(fused, wc[...], bc[...], relu=True)       # (B, H, W, F) f32
    B, H, W, F = hr.shape
    pooled = jnp.sum(hr.reshape(B, H * W, F), axis=1) * (1.0 / (H * W))   # (B, F)

    # Tiny final linear on the VPU (M is a handful of rows; skip MXU fill/drain).
    # wl is lane-padded to 128 classes in the wrapper -> lane-dense output store.
    score = jnp.sum(pooled[:, :, None] * wl[...][None, :, :], axis=1) + bl[...]
    out_ref[0] = score.astype(out_ref.dtype)                # (B, 128) unmasked vst


# ---------------- wrapper ----------------

def _pick_batch_block(n, h, w, c, feat):
    """Images per grid step: VMEM-budgeted, but keep >= 2 grid steps (v7x 2 TCs)."""
    # rough per-image bytes: bf16 im2col of the widest layer + f32 activations
    # + double-buffered f32 input block
    per_img = h * w * (9 * max(c, feat) * 2 + (c + 3 * feat) * 4 + 2 * c * 4)
    budget = 24 * 1024 * 1024            # conservative: fits v7x's 64 MiB VMEM
    max_b = max(1, budget // max(per_img, 1))
    return int(min(max_b, max(1, pl.cdiv(n, 2))))


def model_forward(img_nchw, dncnn_params, resnet_params, *, batch_block=None):
    x = jnp.transpose(img_nchw, (0, 2, 3, 1)).astype(jnp.float32)   # NCHW -> NHWC
    N, H, W, C = x.shape
    feat = dncnn_params["w1"].shape[1]
    num_classes = resnet_params["wl"].shape[1]

    if batch_block is None:
        batch_block = _pick_batch_block(N, H, W, C, feat)
    grid_n = pl.cdiv(N, batch_block)
    n_pad = grid_n * batch_block
    if n_pad != N:
        x = jnp.concatenate([x, jnp.zeros((n_pad - N, H, W, C), x.dtype)], axis=0)

    # bf16 MXU operands (f32 accumulation in-kernel); epilogues stay f32.
    w1 = dncnn_params["w1"].astype(jnp.bfloat16)
    w2 = dncnn_params["w2"].astype(jnp.bfloat16)
    w3 = dncnn_params["w3"].astype(jnp.bfloat16)
    wc = resnet_params["wc"].astype(jnp.bfloat16)
    b1 = dncnn_params["b1"].reshape(1, -1).astype(jnp.float32)
    b2 = dncnn_params["b2"].reshape(1, -1).astype(jnp.float32)
    b3 = dncnn_params["b3"].reshape(1, -1).astype(jnp.float32)
    bc = resnet_params["bc"].reshape(1, -1).astype(jnp.float32)

    # classifier padded to a full 128-lane slab -> lane-dense output store
    cpad = pl.cdiv(num_classes, _LANES) * _LANES
    wl = resnet_params["wl"].astype(jnp.float32)
    bl = resnet_params["bl"].reshape(1, -1).astype(jnp.float32)
    if cpad != num_classes:
        wl = jnp.concatenate(
            [wl, jnp.zeros((feat, cpad - num_classes), jnp.float32)], axis=1)
        bl = jnp.concatenate(
            [bl, jnp.zeros((1, cpad - num_classes), jnp.float32)], axis=1)

    def resident(a):  # full array, constant index_map -> fetched once, VMEM-resident
        return pl.BlockSpec(a.shape, lambda n, _nd=a.ndim: (0,) * _nd)

    out = pl.pallas_call(
        _fused_forward_kernel,
        out_shape=jax.ShapeDtypeStruct((grid_n, batch_block, cpad), jnp.float32),
        grid=(grid_n,),
        in_specs=[
            pl.BlockSpec((batch_block, H, W, C), lambda n: (n, 0, 0, 0)),
            resident(w1), resident(b1),
            resident(w2), resident(b2),
            resident(w3), resident(b3),
            resident(wc), resident(bc),
            resident(wl), resident(bl),
        ],
        out_specs=pl.BlockSpec((1, batch_block, cpad), lambda n: (n, 0, 0)),
        compiler_params=pltpu.CompilerParams(
            dimension_semantics=("parallel",),      # v7x: both TCs split the grid
            vmem_limit_bytes=48 * 1024 * 1024,
        ),
    )(x, w1, b1, w2, b2, w3, b3, wc, bc, wl, bl)

    return out.reshape(n_pad, cpad)[:N, :num_classes]
    # TODO(synk): for larger H*W, switch to the lane-transposed (Cout, B*H*W)
    # layout (H*W on lanes via pltpu.roll + boundary masks) and add a haloed
    # spatial grid axis once whole-image blocks no longer fit VMEM.


# ---------------- pure-JAX reference (same math, f32) for a sanity check ----------

def _conv3x3_ref(x, w, b, relu):
    N, H, W, C = x.shape
    xp = jnp.pad(x, ((0, 0), (1, 1), (1, 1), (0, 0)))
    cols = jnp.concatenate(
        [xp[:, dy:dy + H, dx:dx + W, :] for dy in range(3) for dx in range(3)],
        axis=-1,
    ).reshape(N * H * W, 9 * C)
    out = cols @ w + b
    if relu:
        out = jnp.maximum(out, 0.0)
    return out.reshape(N, H, W, -1)


def model_forward_ref(img_nchw, dp, rp):
    x = jnp.transpose(img_nchw, (0, 2, 3, 1))
    h = _conv3x3_ref(x, dp["w1"], dp["b1"], True)
    h = _conv3x3_ref(h, dp["w2"], dp["b2"], True)
    mid = _conv3x3_ref(h, dp["w3"], dp["b3"], False)
    fused = mid + x
    hr = _conv3x3_ref(fused, rp["wc"], rp["bc"], True)
    pooled = jnp.mean(hr.reshape(x.shape[0], -1, hr.shape[-1]), axis=1)
    return pooled @ rp["wl"] + rp["bl"]


# ---------------- deterministic parameter init ----------------

def init_params(key, cin, feat, num_classes):
    ks = jax.random.split(key, 10)
    scale = 0.1
    dncnn = {
        "w1": scale * jax.random.normal(ks[0], (9 * cin, feat), jnp.float32),
        "b1": jnp.zeros((feat,), jnp.float32),
        "w2": scale * jax.random.normal(ks[1], (9 * feat, feat), jnp.float32),
        "b2": jnp.zeros((feat,), jnp.float32),
        "w3": scale * jax.random.normal(ks[2], (9 * feat, cin), jnp.float32),
        "b3": jnp.zeros((cin,), jnp.float32),
    }
    resnet = {
        "wc": scale * jax.random.normal(ks[3], (9 * cin, feat), jnp.float32),
        "bc": jnp.zeros((feat,), jnp.float32),
        "wl": scale * jax.random.normal(ks[4], (feat, num_classes), jnp.float32),
        "bl": jnp.zeros((num_classes,), jnp.float32),
    }
    return dncnn, resnet


if __name__ == "__main__":
    key = jax.random.PRNGKey(0)
    k_img, k_par = jax.random.split(key)

    N, C, H, W = 2, 4, 16, 16
    FEAT, NUM_CLASSES = 16, 10

    img = jax.random.normal(k_img, (N, C, H, W), jnp.float32)   # NCHW like PyTorch
    dncnn_params, resnet_params = init_params(k_par, C, FEAT, NUM_CLASSES)

    score = jax.jit(model_forward)(img, dncnn_params, resnet_params)
    score = jax.block_until_ready(score)
    assert score.shape == (N, NUM_CLASSES)
    assert bool(jnp.all(jnp.isfinite(score)))

    # loose tolerance: kernel uses bf16 MXU operands with f32 accumulation
    ref = jax.jit(model_forward_ref)(img, dncnn_params, resnet_params)
    assert bool(jnp.allclose(score, ref, atol=5e-2, rtol=5e-2)), (score, ref)

    print("KERNEL_OK")
</pallas_src>

<mosaic_0001>
module attributes {stable_mosaic.version = 11 : i64} {
  func.func @_fused_forward_kernel(%arg0: i32, %arg1: memref<1x16x16x4xf32, #tpu.memory_space<vmem>>, %arg2: memref<36x16xbf16, #tpu.memory_space<vmem>>, %arg3: memref<1x16xf32, #tpu.memory_space<vmem>>, %arg4: memref<144x16xbf16, #tpu.memory_space<vmem>>, %arg5: memref<1x16xf32, #tpu.memory_space<vmem>>, %arg6: memref<144x4xbf16, #tpu.memory_space<vmem>>, %arg7: memref<1x4xf32, #tpu.memory_space<vmem>>, %arg8: memref<36x16xbf16, #tpu.memory_space<vmem>>, %arg9: memref<1x16xf32, #tpu.memory_space<vmem>>, %arg10: memref<16x128xf32, #tpu.memory_space<vmem>>, %arg11: memref<1x128xf32, #tpu.memory_space<vmem>>, %arg12: memref<1x1x128xf32, #tpu.memory_space<vmem>>) attributes {dimension_semantics = [#tpu.dimension_semantics<parallel>], iteration_bounds = array<i64: 2>, scalar_prefetch = 0 : i64, scratch_operands = 0 : i64, tpu.core_type = #tpu.core_type<tc>, window_params = [{transform_indices = @transform_0, window_bounds = array<i64: 1, 16, 16, 4>}, {pipeline_mode = #tpu.pipeline_mode<synchronous>, transform_indices = @transform_1, window_bounds = array<i64: 36, 16>}, {pipeline_mode = #tpu.pipeline_mode<synchronous>, transform_indices = @transform_2, window_bounds = array<i64: 1, 16>}, {pipeline_mode = #tpu.pipeline_mode<synchronous>, transform_indices = @transform_3, window_bounds = array<i64: 144, 16>}, {pipeline_mode = #tpu.pipeline_mode<synchronous>, transform_indices = @transform_4, window_bounds = array<i64: 1, 16>}, {pipeline_mode = #tpu.pipeline_mode<synchronous>, transform_indices = @transform_5, window_bounds = array<i64: 144, 4>}, {pipeline_mode = #tpu.pipeline_mode<synchronous>, transform_indices = @transform_6, window_bounds = array<i64: 1, 4>}, {pipeline_mode = #tpu.pipeline_mode<synchronous>, transform_indices = @transform_7, window_bounds = array<i64: 36, 16>}, {pipeline_mode = #tpu.pipeline_mode<synchronous>, transform_indices = @transform_8, window_bounds = array<i64: 1, 16>}, {pipeline_mode = #tpu.pipeline_mode<synchronous>, transform_indices = @transform_9, window_bounds = array<i64: 16, 128>}, {pipeline_mode = #tpu.pipeline_mode<synchronous>, transform_indices = @transform_10, window_bounds = array<i64: 1, 128>}, {transform_indices = @transform_11, window_bounds = array<i64: 1, 1, 128>}]} {
    %c0 = arith.constant 0 : index
    %c0_0 = arith.constant 0 : index
    %c0_1 = arith.constant 0 : index
    %c0_2 = arith.constant 0 : index
    %0 = vector.load %arg1[%c0, %c0_0, %c0_1, %c0_2] : memref<1x16x16x4xf32, #tpu.memory_space<vmem>>, vector<1x16x16x4xf32>
    %c0_3 = arith.constant 0 : index
    %c0_4 = arith.constant 0 : index
    %1 = vector.load %arg2[%c0_3, %c0_4] : memref<36x16xbf16, #tpu.memory_space<vmem>>, vector<36x16xbf16>
    %c0_5 = arith.constant 0 : index
    %c0_6 = arith.constant 0 : index
    %2 = vector.load %arg3[%c0_5, %c0_6] : memref<1x16xf32, #tpu.memory_space<vmem>>, vector<1x16xf32>
    %3 = arith.truncf %0 : vector<1x16x16x4xf32> to vector<1x16x16x4xbf16>
    %cst = arith.constant 0.000000e+00 : bf16
    %4 = vector.broadcast %cst : bf16 to vector<1x1x16x4xbf16>
    %5 = tpu.concatenate %4, %3, %4 in 1 : vector<1x1x16x4xbf16>, vector<1x16x16x4xbf16>, vector<1x1x16x4xbf16> -> vector<1x18x16x4xbf16>
    %cst_7 = arith.constant 0.000000e+00 : bf16
    %6 = vector.broadcast %cst_7 : bf16 to vector<1x18x1x4xbf16>
    %7 = tpu.concatenate %6, %5, %6 in 2 : vector<1x18x1x4xbf16>, vector<1x18x16x4xbf16>, vector<1x18x1x4xbf16> -> vector<1x18x18x4xbf16>
    %8 = vector.extract_strided_slice %7 {offsets = [0, 0, 0, 0], sizes = [1, 16, 16, 4], strides = [1, 1, 1, 1]} : vector<1x18x18x4xbf16> to vector<1x16x16x4xbf16>
    %9 = vector.extract_strided_slice %7 {offsets = [0, 0, 1, 0], sizes = [1, 16, 16, 4], strides = [1, 1, 1, 1]} : vector<1x18x18x4xbf16> to vector<1x16x16x4xbf16>
    %10 = vector.extract_strided_slice %7 {offsets = [0, 0, 2, 0], sizes = [1, 16, 16, 4], strides = [1, 1, 1, 1]} : vector<1x18x18x4xbf16> to vector<1x16x16x4xbf16>
    %11 = vector.extract_strided_slice %7 {offsets = [0, 1, 0, 0], sizes = [1, 16, 16, 4], strides = [1, 1, 1, 1]} : vector<1x18x18x4xbf16> to vector<1x16x16x4xbf16>
    %12 = vector.extract_strided_slice %7 {offsets = [0, 1, 1, 0], sizes = [1, 16, 16, 4], strides = [1, 1, 1, 1]} : vector<1x18x18x4xbf16> to vector<1x16x16x4xbf16>
    %13 = vector.extract_strided_slice %7 {offsets = [0, 1, 2, 0], sizes = [1, 16, 16, 4], strides = [1, 1, 1, 1]} : vector<1x18x18x4xbf16> to vector<1x16x16x4xbf16>
    %14 = vector.extract_strided_slice %7 {offsets = [0, 2, 0, 0], sizes = [1, 16, 16, 4], strides = [1, 1, 1, 1]} : vector<1x18x18x4xbf16> to vector<1x16x16x4xbf16>
    %15 = vector.extract_strided_slice %7 {offsets = [0, 2, 1, 0], sizes = [1, 16, 16, 4], strides = [1, 1, 1, 1]} : vector<1x18x18x4xbf16> to vector<1x16x16x4xbf16>
    %16 = vector.extract_strided_slice %7 {offsets = [0, 2, 2, 0], sizes = [1, 16, 16, 4], strides = [1, 1, 1, 1]} : vector<1x18x18x4xbf16> to vector<1x16x16x4xbf16>
    %17 = tpu.concatenate %8, %9, %10, %11, %12, %13, %14, %15, %16 in 3 : vector<1x16x16x4xbf16>, vector<1x16x16x4xbf16>, vector<1x16x16x4xbf16>, vector<1x16x16x4xbf16>, vector<1x16x16x4xbf16>, vector<1x16x16x4xbf16>, vector<1x16x16x4xbf16>, vector<1x16x16x4xbf16>, vector<1x16x16x4xbf16> -> vector<1x16x16x36xbf16>
    %18 = vector.shape_cast %17 : vector<1x16x16x36xbf16> to vector<256x36xbf16>
    %cst_8 = arith.constant dense<0.000000e+00> : vector<256x16xf32>
    %19 = tpu.matmul %18, %1, %cst_8 {dimension_numbers = #tpu.dot_dimension_numbers<[1], [0], [0], [1], [0, 0, 1, 1], [], []>} : vector<256x36xbf16>, vector<36x16xbf16>, vector<256x16xf32> -> vector<256x16xf32>
    %20 = vector.broadcast %2 : vector<1x16xf32> to vector<256x16xf32>
    %21 = arith.addf %19, %20 : vector<256x16xf32>
    %cst_9 = arith.constant 0.000000e+00 : f32
    %22 = vector.broadcast %cst_9 : f32 to vector<256x16xf32>
    %23 = arith.maximumf %21, %22 : vector<256x16xf32>
    %24 = vector.shape_cast %23 : vector<256x16xf32> to vector<1x16x16x16xf32>
    %c0_10 = arith.constant 0 : index
    %c0_11 = arith.constant 0 : index
    %25 = vector.load %arg4[%c0_10, %c0_11] : memref<144x16xbf16, #tpu.memory_space<vmem>>, vector<144x16xbf16>
    %c0_12 = arith.constant 0 : index
    %c0_13 = arith.constant 0 : index
    %26 = vector.load %arg5[%c0_12, %c0_13] : memref<1x16xf32, #tpu.memory_space<vmem>>, vector<1x16xf32>
    %27 = arith.truncf %24 : vector<1x16x16x16xf32> to vector<1x16x16x16xbf16>
    %cst_14 = arith.constant 0.000000e+00 : bf16
    %28 = vector.broadcast %cst_14 : bf16 to vector<1x1x16x16xbf16>
    %29 = tpu.concatenate %28, %27, %28 in 1 : vector<1x1x16x16xbf16>, vector<1x16x16x16xbf16>, vector<1x1x16x16xbf16> -> vector<1x18x16x16xbf16>
    %cst_15 = arith.constant 0.000000e+00 : bf16
    %30 = vector.broadcast %cst_15 : bf16 to vector<1x18x1x16xbf16>
    %31 = tpu.concatenate %30, %29, %30 in 2 : vector<1x18x1x16xbf16>, vector<1x18x16x16xbf16>, vector<1x18x1x16xbf16> -> vector<1x18x18x16xbf16>
    %32 = vector.extract_strided_slice %31 {offsets = [0, 0, 0, 0], sizes = [1, 16, 16, 16], strides = [1, 1, 1, 1]} : vector<1x18x18x16xbf16> to vector<1x16x16x16xbf16>
    %33 = vector.extract_strided_slice %31 {offsets = [0, 0, 1, 0], sizes = [1, 16, 16, 16], strides = [1, 1, 1, 1]} : vector<1x18x18x16xbf16> to vector<1x16x16x16xbf16>
    %34 = vector.extract_strided_slice %31 {offsets = [0, 0, 2, 0], sizes = [1, 16, 16, 16], strides = [1, 1, 1, 1]} : vector<1x18x18x16xbf16> to vector<1x16x16x16xbf16>
    %35 = vector.extract_strided_slice %31 {offsets = [0, 1, 0, 0], sizes = [1, 16, 16, 16], strides = [1, 1, 1, 1]} : vector<1x18x18x16xbf16> to vector<1x16x16x16xbf16>
    %36 = vector.extract_strided_slice %31 {offsets = [0, 1, 1, 0], sizes = [1, 16, 16, 16], strides = [1, 1, 1, 1]} : vector<1x18x18x16xbf16> to vector<1x16x16x16xbf16>
    %37 = vector.extract_strided_slice %31 {offsets = [0, 1, 2, 0], sizes = [1, 16, 16, 16], strides = [1, 1, 1, 1]} : vector<1x18x18x16xbf16> to vector<1x16x16x16xbf16>
    %38 = vector.extract_strided_slice %31 {offsets = [0, 2, 0, 0], sizes = [1, 16, 16, 16], strides = [1, 1, 1, 1]} : vector<1x18x18x16xbf16> to vector<1x16x16x16xbf16>
    %39 = vector.extract_strided_slice %31 {offsets = [0, 2, 1, 0], sizes = [1, 16, 16, 16], strides = [1, 1, 1, 1]} : vector<1x18x18x16xbf16> to vector<1x16x16x16xbf16>
    %40 = vector.extract_strided_slice %31 {offsets = [0, 2, 2, 0], sizes = [1, 16, 16, 16], strides = [1, 1, 1, 1]} : vector<1x18x18x16xbf16> to vector<1x16x16x16xbf16>
    %41 = tpu.concatenate %32, %33, %34, %35, %36, %37, %38, %39, %40 in 3 : vector<1x16x16x16xbf16>, vector<1x16x16x16xbf16>, vector<1x16x16x16xbf16>, vector<1x16x16x16xbf16>, vector<1x16x16x16xbf16>, vector<1x16x16x16xbf16>, vector<1x16x16x16xbf16>, vector<1x16x16x16xbf16>, vector<1x16x16x16xbf16> -> vector<1x16x16x144xbf16>
    %42 = vector.shape_cast %41 : vector<1x16x16x144xbf16> to vector<256x144xbf16>
    %cst_16 = arith.constant dense<0.000000e+00> : vector<256x16xf32>
    %43 = tpu.matmul %42, %25, %cst_16 {dimension_numbers = #tpu.dot_dimension_numbers<[1], [0], [0], [1], [0, 0, 1, 1], [], []>} : vector<256x144xbf16>, vector<144x16xbf16>, vector<256x16xf32> -> vector<256x16xf32>
    %44 = vector.broadcast %26 : vector<1x16xf32> to vector<256x16xf32>
    %45 = arith.addf %43, %44 : vector<256x16xf32>
    %cst_17 = arith.constant 0.000000e+00 : f32
    %46 = vector.broadcast %cst_17 : f32 to vector<256x16xf32>
    %47 = arith.maximumf %45, %46 : vector<256x16xf32>
    %48 = vector.shape_cast %47 : vector<256x16xf32> to vector<1x16x16x16xf32>
    %c0_18 = arith.constant 0 : index
    %c0_19 = arith.constant 0 : index
    %49 = vector.load %arg6[%c0_18, %c0_19] : memref<144x4xbf16, #tpu.memory_space<vmem>>, vector<144x4xbf16>
    %c0_20 = arith.constant 0 : index
    %c0_21 = arith.constant 0 : index
    %50 = vector.load %arg7[%c0_20, %c0_21] : memref<1x4xf32, #tpu.memory_space<vmem>>, vector<1x4xf32>
    %51 = arith.truncf %48 : vector<1x16x16x16xf32> to vector<1x16x16x16xbf16>
    %cst_22 = arith.constant 0.000000e+00 : bf16
    %52 = vector.broadcast %cst_22 : bf16 to vector<1x1x16x16xbf16>
    %53 = tpu.concatenate %52, %51, %52 in 1 : vector<1x1x16x16xbf16>, vector<1x16x16x16xbf16>, vector<1x1x16x16xbf16> -> vector<1x18x16x16xbf16>
    %cst_23 = arith.constant 0.000000e+00 : bf16
    %54 = vector.broadcast %cst_23 : bf16 to vector<1x18x1x16xbf16>
    %55 = tpu.concatenate %54, %53, %54 in 2 : vector<1x18x1x16xbf16>, vector<1x18x16x16xbf16>, vector<1x18x1x16xbf16> -> vector<1x18x18x16xbf16>
    %56 = vector.extract_strided_slice %55 {offsets = [0, 0, 0, 0], sizes = [1, 16, 16, 16], strides = [1, 1, 1, 1]} : vector<1x18x18x16xbf16> to vector<1x16x16x16xbf16>
    %57 = vector.extract_strided_slice %55 {offsets = [0, 0, 1, 0], sizes = [1, 16, 16, 16], strides = [1, 1, 1, 1]} : vector<1x18x18x16xbf16> to vector<1x16x16x16xbf16>
    %58 = vector.extract_strided_slice %55 {offsets = [0, 0, 2, 0], sizes = [1, 16, 16, 16], strides = [1, 1, 1, 1]} : vector<1x18x18x16xbf16> to vector<1x16x16x16xbf16>
    %59 = vector.extract_strided_slice %55 {offsets = [0, 1, 0, 0], sizes = [1, 16, 16, 16], strides = [1, 1, 1, 1]} : vector<1x18x18x16xbf16> to vector<1x16x16x16xbf16>
    %60 = vector.extract_strided_slice %55 {offsets = [0, 1, 1, 0], sizes = [1, 16, 16, 16], strides = [1, 1, 1, 1]} : vector<1x18x18x16xbf16> to vector<1x16x16x16xbf16>
    %61 = vector.extract_strided_slice %55 {offsets = [0, 1, 2, 0], sizes = [1, 16, 16, 16], strides = [1, 1, 1, 1]} : vector<1x18x18x16xbf16> to vector<1x16x16x16xbf16>
    %62 = vector.extract_strided_slice %55 {offsets = [0, 2, 0, 0], sizes = [1, 16, 16, 16], strides = [1, 1, 1, 1]} : vector<1x18x18x16xbf16> to vector<1x16x16x16xbf16>
    %63 = vector.extract_strided_slice %55 {offsets = [0, 2, 1, 0], sizes = [1, 16, 16, 16], strides = [1, 1, 1, 1]} : vector<1x18x18x16xbf16> to vector<1x16x16x16xbf16>
    %64 = vector.extract_strided_slice %55 {offsets = [0, 2, 2, 0], sizes = [1, 16, 16, 16], strides = [1, 1, 1, 1]} : vector<1x18x18x16xbf16> to vector<1x16x16x16xbf16>
    %65 = tpu.concatenate %56, %57, %58, %59, %60, %61, %62, %63, %64 in 3 : vector<1x16x16x16xbf16>, vector<1x16x16x16xbf16>, vector<1x16x16x16xbf16>, vector<1x16x16x16xbf16>, vector<1x16x16x16xbf16>, vector<1x16x16x16xbf16>, vector<1x16x16x16xbf16>, vector<1x16x16x16xbf16>, vector<1x16x16x16xbf16> -> vector<1x16x16x144xbf16>
    %66 = vector.shape_cast %65 : vector<1x16x16x144xbf16> to vector<256x144xbf16>
    %cst_24 = arith.constant dense<0.000000e+00> : vector<256x4xf32>
    %67 = tpu.matmul %66, %49, %cst_24 {dimension_numbers = #tpu.dot_dimension_numbers<[1], [0], [0], [1], [0, 0, 1, 1], [], []>} : vector<256x144xbf16>, vector<144x4xbf16>, vector<256x4xf32> -> vector<256x4xf32>
    %68 = vector.broadcast %50 : vector<1x4xf32> to vector<256x4xf32>
    %69 = arith.addf %67, %68 : vector<256x4xf32>
    %70 = vector.shape_cast %69 : vector<256x4xf32> to vector<1x16x16x4xf32>
    %71 = arith.addf %70, %0 : vector<1x16x16x4xf32>
    %c0_25 = arith.constant 0 : index
    %c0_26 = arith.constant 0 : index
    %72 = vector.load %arg8[%c0_25, %c0_26] : memref<36x16xbf16, #tpu.memory_space<vmem>>, vector<36x16xbf16>
    %c0_27 = arith.constant 0 : index
    %c0_28 = arith.constant 0 : index
    %73 = vector.load %arg9[%c0_27, %c0_28] : memref<1x16xf32, #tpu.memory_space<vmem>>, vector<1x16xf32>
    %74 = arith.truncf %71 : vector<1x16x16x4xf32> to vector<1x16x16x4xbf16>
    %cst_29 = arith.constant 0.000000e+00 : bf16
    %75 = vector.broadcast %cst_29 : bf16 to vector<1x1x16x4xbf16>
    %76 = tpu.concatenate %75, %74, %75 in 1 : vector<1x1x16x4xbf16>, vector<1x16x16x4xbf16>, vector<1x1x16x4xbf16> -> vector<1x18x16x4xbf16>
    %cst_30 = arith.constant 0.000000e+00 : bf16
    %77 = vector.broadcast %cst_30 : bf16 to vector<1x18x1x4xbf16>
    %78 = tpu.concatenate %77, %76, %77 in 2 : vector<1x18x1x4xbf16>, vector<1x18x16x4xbf16>, vector<1x18x1x4xbf16> -> vector<1x18x18x4xbf16>
    %79 = vector.extract_strided_slice %78 {offsets = [0, 0, 0, 0], sizes = [1, 16, 16, 4], strides = [1, 1, 1, 1]} : vector<1x18x18x4xbf16> to vector<1x16x16x4xbf16>
    %80 = vector.extract_strided_slice %78 {offsets = [0, 0, 1, 0], sizes = [1, 16, 16, 4], strides = [1, 1, 1, 1]} : vector<1x18x18x4xbf16> to vector<1x16x16x4xbf16>
    %81 = vector.extract_strided_slice %78 {offsets = [0, 0, 2, 0], sizes = [1, 16, 16, 4], strides = [1, 1, 1, 1]} : vector<1x18x18x4xbf16> to vector<1x16x16x4xbf16>
    %82 = vector.extract_strided_slice %78 {offsets = [0, 1, 0, 0], sizes = [1, 16, 16, 4], strides = [1, 1, 1, 1]} : vector<1x18x18x4xbf16> to vector<1x16x16x4xbf16>
    %83 = vector.extract_strided_slice %78 {offsets = [0, 1, 1, 0], sizes = [1, 16, 16, 4], strides = [1, 1, 1, 1]} : vector<1x18x18x4xbf16> to vector<1x16x16x4xbf16>
    %84 = vector.extract_strided_slice %78 {offsets = [0, 1, 2, 0], sizes = [1, 16, 16, 4], strides = [1, 1, 1, 1]} : vector<1x18x18x4xbf16> to vector<1x16x16x4xbf16>
    %85 = vector.extract_strided_slice %78 {offsets = [0, 2, 0, 0], sizes = [1, 16, 16, 4], strides = [1, 1, 1, 1]} : vector<1x18x18x4xbf16> to vector<1x16x16x4xbf16>
    %86 = vector.extract_strided_slice %78 {offsets = [0, 2, 1, 0], sizes = [1, 16, 16, 4], strides = [1, 1, 1, 1]} : vector<1x18x18x4xbf16> to vector<1x16x16x4xbf16>
    %87 = vector.extract_strided_slice %78 {offsets = [0, 2, 2, 0], sizes = [1, 16, 16, 4], strides = [1, 1, 1, 1]} : vector<1x18x18x4xbf16> to vector<1x16x16x4xbf16>
    %88 = tpu.concatenate %79, %80, %81, %82, %83, %84, %85, %86, %87 in 3 : vector<1x16x16x4xbf16>, vector<1x16x16x4xbf16>, vector<1x16x16x4xbf16>, vector<1x16x16x4xbf16>, vector<1x16x16x4xbf16>, vector<1x16x16x4xbf16>, vector<1x16x16x4xbf16>, vector<1x16x16x4xbf16>, vector<1x16x16x4xbf16> -> vector<1x16x16x36xbf16>
    %89 = vector.shape_cast %88 : vector<1x16x16x36xbf16> to vector<256x36xbf16>
    %cst_31 = arith.constant dense<0.000000e+00> : vector<256x16xf32>
    %90 = tpu.matmul %89, %72, %cst_31 {dimension_numbers = #tpu.dot_dimension_numbers<[1], [0], [0], [1], [0, 0, 1, 1], [], []>} : vector<256x36xbf16>, vector<36x16xbf16>, vector<256x16xf32> -> vector<256x16xf32>
    %91 = vector.broadcast %73 : vector<1x16xf32> to vector<256x16xf32>
    %92 = arith.addf %90, %91 : vector<256x16xf32>
    %cst_32 = arith.constant 0.000000e+00 : f32
    %93 = vector.broadcast %cst_32 : f32 to vector<256x16xf32>
    %94 = arith.maximumf %92, %93 : vector<256x16xf32>
    %95 = vector.shape_cast %94 : vector<256x16xf32> to vector<1x16x16x16xf32>
    %96 = vector.shape_cast %95 : vector<1x16x16x16xf32> to vector<1x256x16xf32>
    %cst_33 = arith.constant dense<0.000000e+00> : vector<1x16xf32>
    %97 = vector.multi_reduction <add>, %96, %cst_33 [1] : vector<1x256x16xf32> to vector<1x16xf32>
    %cst_34 = arith.constant 3.906250e-03 : f32
    %98 = vector.broadcast %cst_34 : f32 to vector<1x16xf32>
    %99 = arith.mulf %97, %98 : vector<1x16xf32>
    %100 = vector.shape_cast %99 : vector<1x16xf32> to vector<1x16x1xf32>
    %c0_35 = arith.constant 0 : index
    %c0_36 = arith.constant 0 : index
    %101 = vector.load %arg10[%c0_35, %c0_36] : memref<16x128xf32, #tpu.memory_space<vmem>>, vector<16x128xf32>
    %102 = vector.shape_cast %101 : vector<16x128xf32> to vector<1x16x128xf32>
    %103 = vector.broadcast %100 : vector<1x16x1xf32> to vector<1x16x128xf32>
    %104 = arith.mulf %103, %102 : vector<1x16x128xf32>
    %cst_37 = arith.constant dense<0.000000e+00> : vector<1x128xf32>
    %105 = vector.multi_reduction <add>, %104, %cst_37 [1] : vector<1x16x128xf32> to vector<1x128xf32>
    %c0_38 = arith.constant 0 : index
    %c0_39 = arith.constant 0 : index
    %106 = vector.load %arg11[%c0_38, %c0_39] : memref<1x128xf32, #tpu.memory_space<vmem>>, vector<1x128xf32>
    %107 = arith.addf %105, %106 : vector<1x128xf32>
    %c0_40 = arith.constant 0 : index
    %c0_41 = arith.constant 0 : index
    %c0_42 = arith.constant 0 : index
    %108 = vector.load %arg12[%c0_40, %c0_41, %c0_42] : memref<1x1x128xf32, #tpu.memory_space<vmem>>, vector<1x1x128xf32>
    %109 = vector.shape_cast %108 : vector<1x1x128xf32> to vector<1x128xf32>
    %110 = vector.shape_cast %107 : vector<1x128xf32> to vector<1x1x128xf32>
    tpu.vector_store %arg12[%c0_40, %c0_41, %c0_42], %110 {strides = array<i32>} : memref<1x1x128xf32, #tpu.memory_space<vmem>>, vector<1x1x128xf32>,
    return
  }
  func.func @transform_0(%arg0: i32) -> (i32, i32, i32, i32) {
    %c0_i32 = arith.constant 0 : i32
    %c0_i32_0 = arith.constant 0 : i32
    %c0_i32_1 = arith.constant 0 : i32
    %c0_i32_2 = arith.constant 0 : i32
    return %arg0, %c0_i32, %c0_i32_0, %c0_i32_1 : i32, i32, i32, i32
  }
  func.func @transform_1(%arg0: i32) -> (i32, i32) {
    %c0_i32 = arith.constant 0 : i32
    %c0_i32_0 = arith.constant 0 : i32
    %c0_i32_1 = arith.constant 0 : i32
    return %c0_i32, %c0_i32_0 : i32, i32
  }
  func.func @transform_2(%arg0: i32) -> (i32, i32) {
    %c0_i32 = arith.constant 0 : i32
    %c0_i32_0 = arith.constant 0 : i32
    %c0_i32_1 = arith.constant 0 : i32
    return %c0_i32, %c0_i32_0 : i32, i32
  }
  func.func @transform_3(%arg0: i32) -> (i32, i32) {
    %c0_i32 = arith.constant 0 : i32
    %c0_i32_0 = arith.constant 0 : i32
    %c0_i32_1 = arith.constant 0 : i32
    return %c0_i32, %c0_i32_0 : i32, i32
  }
  func.func @transform_4(%arg0: i32) -> (i32, i32) {
    %c0_i32 = arith.constant 0 : i32
    %c0_i32_0 = arith.constant 0 : i32
    %c0_i32_1 = arith.constant 0 : i32
    return %c0_i32, %c0_i32_0 : i32, i32
  }
  func.func @transform_5(%arg0: i32) -> (i32, i32) {
    %c0_i32 = arith.constant 0 : i32
    %c0_i32_0 = arith.constant 0 : i32
    %c0_i32_1 = arith.constant 0 : i32
    return %c0_i32, %c0_i32_0 : i32, i32
  }
  func.func @transform_6(%arg0: i32) -> (i32, i32) {
    %c0_i32 = arith.constant 0 : i32
    %c0_i32_0 = arith.constant 0 : i32
    %c0_i32_1 = arith.constant 0 : i32
    return %c0_i32, %c0_i32_0 : i32, i32
  }
  func.func @transform_7(%arg0: i32) -> (i32, i32) {
    %c0_i32 = arith.constant 0 : i32
    %c0_i32_0 = arith.constant 0 : i32
    %c0_i32_1 = arith.constant 0 : i32
    return %c0_i32, %c0_i32_0 : i32, i32
  }
  func.func @transform_8(%arg0: i32) -> (i32, i32) {
    %c0_i32 = arith.constant 0 : i32
    %c0_i32_0 = arith.constant 0 : i32
    %c0_i32_1 = arith.constant 0 : i32
    return %c0_i32, %c0_i32_0 : i32, i32
  }
  func.func @transform_9(%arg0: i32) -> (i32, i32) {
    %c0_i32 = arith.constant 0 : i32
    %c0_i32_0 = arith.constant 0 : i32
    %c0_i32_1 = arith.constant 0 : i32
    return %c0_i32, %c0_i32_0 : i32, i32
  }
  func.func @transform_10(%arg0: i32) -> (i32, i32) {
    %c0_i32 = arith.constant 0 : i32
    %c0_i32_0 = arith.constant 0 : i32
    %c0_i32_1 = arith.constant 0 : i32
    return %c0_i32, %c0_i32_0 : i32, i32
  }
  func.func @transform_11(%arg0: i32) -> (i32, i32, i32) {
    %c0_i32 = arith.constant 0 : i32
    %c0_i32_0 = arith.constant 0 : i32
    %c0_i32_1 = arith.constant 0 : i32
    return %arg0, %c0_i32, %c0_i32_0 : i32, i32, i32
  }
}

</mosaic_0001>

<bundles_post_ra>
// kernel: model_forward.1
= control target key start
LH: loop header
LB: loop body
LE: loop exit
PB: predicated region body
PF: predicated region fallthrough
CT: control target
= control target key end

     0   :  { %s8724_s0 = inlined_call_operand.vmem [shape: f32[2,16,16,4], index: 0, kind: input, shape index: {}]   ;;  %s8725_s1 = inlined_call_operand.vmem [shape: bf16[36,16], index: 1, kind: input, shape index: {}]   ;;  %s8726_s2 = inlined_call_operand.vmem [shape: f32[1,16], index: 2, kind: input, shape index: {}]   ;;  %s8727_s3 = inlined_call_operand.vmem [shape: bf16[144,16], index: 3, kind: input, shape index: {}]   ;;  %s8728_s4 = inlined_call_operand.vmem [shape: f32[1,16], index: 4, kind: input, shape index: {}]   ;;  %s8729_s5 = inlined_call_operand.vmem [shape: bf16[144,4], index: 5, kind: input, shape index: {}]   ;;  %s8730_s6 = inlined_call_operand.vmem [shape: f32[1,4], index: 6, kind: input, shape index: {}]   ;;  %s8731_s7 = inlined_call_operand.vmem [shape: bf16[36,16], index: 7, kind: input, shape index: {}]   ;;  %s8732_s8 = inlined_call_operand.vmem [shape: f32[1,16], index: 8, kind: input, shape index: {}]   ;;  %s8733_s9 = inlined_call_operand.vmem [shape: f32[16,128], index: 9, kind: input, shape index: {}]   ;;  %s8734_s10 = inlined_call_operand.vmem [shape: f32[1,128], index: 10, kind: input, shape index: {}]   ;;  %s8735_s11 = inlined_call_operand.hbm [shape: f32[2,1,128], index: 11, kind: output, shape index: {}]  }
   0x1   :  { %8762 = sst [smem:[#allocation5_spill]] %s8724_s0 }
   0x2   :  { %8763 = sst [smem:[#allocation6_spill]] %s8725_s1 }
   0x3   :  { %8764 = sst [smem:[#allocation7_spill]] %s8726_s2 }
   0x4   :  { %16 = vsyncpa [#allocation3], 0 }
   0x5   :  { %18 = vsyncpa [#allocation3 + $0x1], 0  ;;  %s6021_s17 = smov 0   ;;  %s6023_s18 = smov 0  }
   0x6   :  { %s6025_s19 = smov 0   ;;  %s6027_s20 = smov 0  }
   0x7 LB: > { %s6042_s21 = sadd.s32 4294967295, %s5944_s20   ;;  %s5545_s22 = sadd.s32 4294967294, %s5944_s20   ;;  %s5944_s20 = sphi %s6027_s20, %s8814_s20   ;;  %s5940_s19 = sphi %s6025_s19, %s8813_s19   ;;  %s5936_s18 = sphi %s6023_s18, %s8812_s18   ;;  %s5932_s17 = sphi %s6021_s17, %s8811_s17  }
   0x8   : > { %s6046_s23 = sadd.s32 1, %s5944_s20   ;;  %s267_s24 = sadd.s32 1, %s5940_s19 }
   0x9   : > { %s264_s25 = ssub.s32 %s5944_s20, %s6046_s23  ;;  %p277_p0 = scmp.ne.s32.totalorder %s5940_s19, %s5936_s18 }
   0xa   : > { %p265_p1 = scmp.eq.s32.totalorder %s264_s25, 0  ;;  %p278_p2 = scmp.eq.s32.totalorder %s6042_s21, 1 }
   0xb   : > { %p283_p3 = scmp.ne.s32.totalorder %s5936_s18, %s5932_s17  ;;  %p284_p4 = scmp.eq.s32.totalorder %s5545_s22, 1 }
   0xc   : > { %s6057_s26 = scalar_select %p265_p1, %s5940_s19, %s267_s24  }
   0xd   : > { %p6059_p5 = por %p278_p2, %p277_p0  ;;  %p6063_p6 = por %p284_p4, %p283_p3 }
   0xe   : > { %p5548_p7 = scmp.ge.s32.totalorder %s5944_s20, 1  ;;  %p340_p8 = scmp.lt.s32.totalorder %s5944_s20, 3 }
  0x10   : > { %p341_p9 = pnand %p5548_p7, %p340_p8 }
  0x11   : > { %vm592_vm0 = vcmask (!%p341_p9), 1040384   ;;  %vm593_vm1 = vsmask.f32 (!%p341_p9), 256  ;;  %v5946_v0 = vmov (!%p341_p9), 0   ;;  %p379_p10 = scmp.lt.s32.totalorder (!%p341_p9), %s6042_s21, 1  ;;  %vm886_vm3 = vcmask (!%p341_p9), 1046528  }
  0x12   : > { %344 = sbr.rel (%p341_p9) target bundleno = 1907 (0x773), region = 64  ;;  %v442_v1 = vrot.slane (!%p341_p9), %v5946_v0, 7  ;;  %vm6070_vm2 = vmand (!%p341_p9), %vm592_vm0, %vm593_vm1  ;;  %2748 = vmatprep.subr.bf16.mxu1 (!%p341_p9), %v5946_v0  ;;  %s8769_s0 = sld [smem:[#allocation5_spill]] (!%p341_p9)  ;;  %vm629_vm4 = vsmask.f32 (!%p341_p9), 7424  ;;  %vm1494_vm5 = vcmask (!%p341_p9), 1041408  }
  0x13   : > { %s8744_s15 = smov (!%p341_p9), 8   ;;  %s8740_s16 = smov (!%p341_p9), 4   ;;  %vm8749_vm6 = vcmask (!%p341_p9), 31744   ;;  %vm8748_vm7 = vcmask (!%p341_p9), 64512   ;;  %vm1242_vm8 = vcmask (!%p341_p9), 97280   ;;  %vm1275_vm9 = vcmask (!%p341_p9), 130048  }
  0x14   : > { %v6078_v3 = vsel (!%p341_p9), %vm6070_vm2, 0, %v442_v1  ;;  %v612_v4 = vsel (!%p341_p9), %vm6070_vm2, %v442_v1, 0  ;;  %s8746_s22 = smov (!%p341_p9), 12   ;;  %s8770_s1 = sld [smem:[#allocation6_spill]] (!%p341_p9)  ;;  %vm1308_vm10 = vcmask (!%p341_p9), 162816   ;;  %vm1341_vm11 = vcmask (!%p341_p9), 195584  }
  0x15   : > { %v887_v5 = vrot.slane (!%p341_p9), %v6078_v3, 1  ;;  %v888_v6 = vrot.slane (!%p341_p9), %v612_v4, 1  ;;  %v631_v7 = vshrl.u32 (!%p341_p9), %v6078_v3, 16  ;;  %v633_v8 = vshll.u32 (!%p341_p9), %v6078_v3, 16  ;;  %s8742_s13 = smov (!%p341_p9), 20   ;;  %s8756_s24 = smov (!%p341_p9), 16  }
  0x16   : > { %v638_v9 = vshll.u32 (!%p341_p9), %v612_v4, 16  ;;  %s8736_s25 = smov (!%p341_p9), 28   ;;  %vm1374_vm12 = vcmask (!%p341_p9), 228352   ;;  %vm1407_vm13 = vcmask (!%p341_p9), 261120   ;;  %vm1461_vm14 = vcmask (!%p341_p9), 293888   ;;  %s8772_s2 = sld [smem:[#allocation7_spill]] (!%p341_p9) }
  0x17   : > { %v6087_v10 = vsel (!%p341_p9), %vm886_vm3, %v887_v5, %v888_v6  ;;  %v635_v11 = vrot.slane (!%p341_p9), %v633_v8, 1  ;;  %s8752_s12 = smov (!%p341_p9), 112   ;;  %vm2459_vm15 = vcmask (!%p341_p9), 392192   ;;  %vm2492_vm0 = vcmask (!%p341_p9), 523264  }
  0x18   : > { %935 = vrot.lane.b32.xlu1 (!%p341_p9), %v6087_v10, %s8744_s15  ;;  %v640_v12 = vrot.slane (!%p341_p9), %v638_v9, 1  ;;  %vm2525_vm1 = vcmask (!%p341_p9), 654336  }
  0x19   : > { %s380_s29 = scalar_select %p379_p10, %s6042_s21, 1  ;;  %v636_v16 = vor.u32 %v635_v11, %v631_v7 }
  0x1a   : > { %v5823_v40 = vld [vmem:[%s8770_s1] sm:$0xff]   ;;  %v5824_v54 = vld [vmem:[%s8770_s1 + $0x8] sm:$0xff]  }
  0x1b   : > { %s5646_s30 = sshll.u32 %s380_s29, 8  ;;  %v6103_v23 = vsel %vm629_vm4, %v636_v16, %v640_v12  ;;  %5685 = vmatprep.subr.bf16.mxu0 %v5823_v40  ;;  %s8738_s29 = smov 24  }
  0x1c   : > { %s6092_s14 = scalar_lea.vmem %s8769_s0, %s5646_s30  ;;  %822 = vrot.lane.b32.xlu0 %v6103_v23, %s8740_s16  ;;  %5686 = vmatpush3.bf16.msra.mxu0 %v5823_v40  ;;  %s8758_s30 = smov 32  }
  0x1d   : > { %v387_v13 = vld [vmem:[%s6092_s14 + $0x10] sm:$0xff]  ;;  %v388_v14 = vld [vmem:[%s6092_s14 + $0x18] sm:$0xff]  ;;  %v385_v15 = vld [vmem:[%s6092_s14] sm:$0xff]  ;;  %5687 = vmatprep.subr.bf16.mxu0 %v5824_v54  ;;  %s5643_s0 = sshll.u32 %s6042_s21, 4  ;;  %s5960_s21 = smov [#allocation2]  }
  0x1e   : > { %v424_v17 = vpack.c.bf16 %v388_v14, %v387_v13  ;;  %v386_v18 = vld [vmem:[%s6092_s14 + $0x8] sm:$0xff]  ;;  %v389_v19 = vld [vmem:[%s6092_s14 + $0x20] sm:$0xff]  ;;  %v391_v49 = vld [vmem:[%s6092_s14 + $0x30] sm:$0xff] }
  0x1f   : > { %v390_v20 = vld [vmem:[%s6092_s14 + $0x28] sm:$0xff]  ;;  %v423_v21 = vpack.c.bf16 %v386_v18, %v385_v15  ;;  %v392_v50 = vld [vmem:[%s6092_s14 + $0x38] sm:$0xff]  ;;  %v393_v16 = vld [vmem:[%s6092_s14 + $0x40] sm:$0xff] }
  0x20   : > { %v425_v22 = vpack.c.bf16 %v390_v20, %v389_v19  ;;  %v454_v24 = vshrl.u32 %v424_v17, 16  ;;  %v457_v25 = vshll.u32 %v424_v17, 16  ;;  %v426_v62 = vpack.c.bf16 %v392_v50, %v391_v49  ;;  %5688 = vmatpush3.bf16.msra.mxu0 %v5824_v54  ;;  %v394_v17 = vld [vmem:[%s6092_s14 + $0x48] sm:$0xff] }
  0x21   : > { %v447_v26 = vshrl.u32 %v423_v21, 16  ;;  %v450_v27 = vshll.u32 %v423_v21, 16 }
  0x22   : > { %v461_v28 = vshrl.u32 %v425_v22, 16  ;;  %v464_v29 = vshll.u32 %v425_v22, 16  ;;  %v456_v30 = vrot.slane %v454_v24, 7  ;;  %v468_v9 = vshrl.u32 %v426_v62, 16 }
  0x23   : > { %v449_v31 = vrot.slane %v447_v26, 7  ;;  %v471_v15 = vshll.u32 %v426_v62, 16  ;;  %v427_v22 = vpack.c.bf16 %v394_v17, %v393_v16 }
  0x24   : > { %v463_v32 = vrot.slane %v461_v28, 7  ;;  %v459_v33 = vor.u32 %v457_v25, %v456_v30  ;;  %v614_v39 = vsel %vm6070_vm2, %v456_v30, 0  ;;  %v470_v14 = vrot.slane %v468_v9, 7 }
  0x25   : > { %v452_v34 = vor.u32 %v450_v27, %v449_v31  ;;  %v613_v36 = vsel %vm6070_vm2, %v449_v31, 0  ;;  %v894_v52 = vrot.slane %v614_v39, 1  ;;  %v662_v53 = vshll.u32 %v614_v39, 16  ;;  %v5825_v31 = vld [vmem:[%s8770_s1 + $0x10] ss:$0 sps:$4 sm:$0x33]  }
  0x26   : > { %v466_v35 = vor.u32 %v464_v29, %v463_v32  ;;  %v6111_v37 = vsel %vm6070_vm2, 0, %v459_v33  ;;  %v891_v43 = vrot.slane %v613_v36, 1  ;;  %v650_v46 = vshll.u32 %v613_v36, 16  ;;  %5767 = vmatprep.subr.msk.bf16.mxu0 %vm1494_vm5, %v5825_v31 }
  0x27   : > { %970 = vrot.lane.b32.xlu1 %v6111_v37, %s8746_s22  ;;  %v6117_v38 = vsel %vm6070_vm2, 0, %v452_v34  ;;  %v657_v47 = vshll.u32 %v6111_v37, 16  ;;  %v893_v51 = vrot.slane %v6111_v37, 1  ;;  %v655_v56 = vshrl.u32 %v6111_v37, 16 }
  0x28   : > { %968 = vrot.lane.b32.xlu0 %v6117_v38, %s8746_s22  ;;  %v6128_v41 = vsel %vm6070_vm2, 0, %v466_v35  ;;  %v890_v42 = vrot.slane %v6117_v38, 1  ;;  %v645_v44 = vshll.u32 %v6117_v38, 16  ;;  %v643_v45 = vshrl.u32 %v6117_v38, 16 }
  0x29   : > { %v659_v57 = vrot.slane %v657_v47, 1  ;;  %v669_v58 = vshll.u32 %v6128_v41, 16  ;;  %v652_v60 = vrot.slane %v650_v46, 1  ;;  %v615_v61 = vsel %vm6070_vm2, %v463_v32, 0 }
  0x2a   : > { %v647_v48 = vrot.slane %v645_v44, 1  ;;  %v892_v55 = vsel %vm886_vm3, %v890_v42, %v891_v43  ;;  %v895_v63 = vsel %vm886_vm3, %v893_v51, %v894_v52  ;;  %v664_v1 = vrot.slane %v662_v53, 1  ;;  %v395_v43 = vld [vmem:[%s6092_s14 + $0x50] sm:$0xff]  ;;  %v396_v44 = vld [vmem:[%s6092_s14 + $0x58] sm:$0xff] }
  0x2b   : > { %1082 = vrot.lane.b32.xlu1 %v6128_v41, %s8738_s29  ;;  %v660_v4 = vor.u32 %v659_v57, %v655_v56  ;;  %v667_v5 = vshrl.u32 %v6128_v41, 16  ;;  %v671_v6 = vrot.slane %v669_v58, 1  ;;  %v674_v7 = vshll.u32 %v615_v61, 16 }
  0x2c   : > { %1080 = vrot.lane.b32.xlu0 %v6111_v37, %s8738_s29  ;;  %v648_v59 = vor.u32 %v647_v48, %v643_v45  ;;  %v896_v19 = vrot.slane %v6128_v41, 1  ;;  %v897_v20 = vrot.slane %v615_v61, 1  ;;  %v473_v21 = vor.u32 %v471_v15, %v470_v14  ;;  %v398_v61 = vld [vmem:[%s6092_s14 + $0x68] sm:$0xff] }
  0x2d   : > { %v665_v11 = vsel %vm629_vm4, %v660_v4, %v664_v1  ;;  %v672_v12 = vor.u32 %v671_v6, %v667_v5  ;;  %v676_v13 = vrot.slane %v674_v7, 1  ;;  %v475_v26 = vshrl.u32 %v427_v22, 16 }
  0x2e   : > { %v653_v8 = vsel %vm629_vm4, %v648_v59, %v652_v60  ;;  %v898_v24 = vsel %vm886_vm3, %v896_v19, %v897_v20  ;;  %v6168_v25 = vsel %vm6070_vm2, 0, %v473_v21  ;;  %v616_v28 = vsel %vm6070_vm2, %v470_v14, 0  ;;  %v397_v60 = vld [vmem:[%s6092_s14 + $0x60] sm:$0xff]  ;;  %v399_v21 = vld [vmem:[%s6092_s14 + $0x70] sm:$0xff] }
  0x2f   : > { %937 = vrot.lane.b32.xlu1 %v892_v55, %s8744_s15  ;;  %v677_v18 = vsel %vm629_vm4, %v672_v12, %v676_v13  ;;  %v681_v27 = vshll.u32 %v6168_v25, 16  ;;  %v477_v29 = vrot.slane %v475_v26, 7  ;;  %v478_v30 = vshll.u32 %v427_v22, 16  ;;  %v400_v22 = vld [vmem:[%s6092_s14 + $0x78] sm:$0xff] }
  0x30   : > { %1048 = vrot.lane.b32.xlu0 %v892_v55, %s8742_s13  ;;  %v679_v32 = vshrl.u32 %v6168_v25, 16  ;;  %v686_v34 = vshll.u32 %v616_v28, 16  ;;  %v1496_v36 = vsel %vm1494_vm5, %v5825_v31, 0  ;;  %v899_v46 = vrot.slane %v6168_v25, 1 }
  0x31   : > { %v683_v33 = vrot.slane %v681_v27, 1  ;;  %v480_v35 = vor.u32 %v478_v30, %v477_v29  ;;  %5690 = vmatpush3.bf16.msra.mxu0 %v1496_v36  ;;  %v900_v47 = vrot.slane %v616_v28, 1  ;;  %v617_v49 = vsel %vm6070_vm2, %v477_v29, 0 }
  0x32   : > { %v688_v40 = vrot.slane %v686_v34, 1  ;;  %3979 = vmatprep.subr.bf16.mxu0 %v5946_v0  ;;  %v428_v50 = vpack.c.bf16 %v396_v44, %v395_v43  ;;  %v698_v54 = vshll.u32 %v617_v49, 16  ;;  %v903_v1 = vrot.slane %v617_v49, 1  ;;  %v401_v44 = vld [vmem:[%s6092_s14 + $0x80] sm:$0xff] }
  0x33   : > { %1050 = vrot.lane.b32.xlu1 %v895_v63, %s8742_s13  ;;  %v684_v39 = vor.u32 %v683_v33, %v679_v32  ;;  %v6187_v42 = vsel %vm6070_vm2, 0, %v480_v35  ;;  %v901_v51 = vsel %vm886_vm3, %v899_v46, %v900_v47  ;;  %v429_v5 = vpack.c.bf16 %v398_v61, %v397_v60 }
  0x34   : > { %824 = vrot.lane.b32.xlu0 %v653_v8, %s8740_s16  ;;  %v693_v48 = vshll.u32 %v6187_v42, 16  ;;  %v691_v52 = vshrl.u32 %v6187_v42, 16  ;;  %v482_v55 = vshrl.u32 %v428_v50, 16  ;;  %v700_v57 = vrot.slane %v698_v54, 1 }
  0x35   : > { %v689_v45 = vsel %vm629_vm4, %v684_v39, %v688_v40  ;;  %v485_v59 = vshll.u32 %v428_v50, 16  ;;  %v492_v13 = vshll.u32 %v429_v5, 16  ;;  %v430_v30 = vpack.c.bf16 %v400_v22, %v399_v21 }
  0x36   : > { %v695_v53 = vrot.slane %v693_v48, 1  ;;  %v484_v58 = vrot.slane %v482_v55, 7 }
  0x37   : > { %1014 = vrot.lane.b32.xlu1 %v665_v11, %s8756_s24  ;;  %v496_v35 = vshrl.u32 %v430_v30, 16  ;;  %v499_v43 = vshll.u32 %v430_v30, 16 }
  0x38   : > { %1012 = vrot.lane.b32.xlu0 %v653_v8, %s8756_s24  ;;  %v696_v56 = vor.u32 %v695_v53, %v691_v52  ;;  %v487_v4 = vor.u32 %v485_v59, %v484_v58  ;;  %v489_v8 = vshrl.u32 %v429_v5, 16  ;;  %v404_v5 = vld [vmem:[%s6092_s14 + $0x98] sm:$0xff] }
  0x39   : > { %v498_v40 = vrot.slane %v496_v35, 7 }
  0x3a   : > { %v701_v62 = vsel %vm629_vm4, %v696_v56, %v700_v57  ;;  %v6220_v7 = vsel %vm6070_vm2, 0, %v487_v4  ;;  %v491_v12 = vrot.slane %v489_v8, 7  ;;  %v403_v4 = vld [vmem:[%s6092_s14 + $0x90] sm:$0xff] }
  0x3b   : > { %1114 = vrot.lane.b32.xlu1 %v677_v18, %s8736_s25  ;;  %v705_v9 = vshll.u32 %v6220_v7, 16  ;;  %v703_v14 = vshrl.u32 %v6220_v7, 16  ;;  %v905_v26 = vrot.slane %v6220_v7, 1  ;;  %v501_v49 = vor.u32 %v499_v43, %v498_v40 }
  0x3c   : > { %1112 = vrot.lane.b32.xlu0 %v665_v11, %s8736_s25  ;;  %s8771_s25 = smov 28   ;;  %v494_v17 = vor.u32 %v492_v13, %v491_v12  ;;  %v619_v29 = vsel %vm6070_vm2, %v491_v12, 0  ;;  %v620_v55 = vsel %vm6070_vm2, %v498_v40, 0  ;;  %v432_v13 = vpack.c.bf16 %v404_v5, %v403_v4 }
  0x3d   : > { %v707_v15 = vrot.slane %v705_v9, 1  ;;  %v722_v34 = vshll.u32 %v619_v29, 16  ;;  %v909_v48 = vrot.slane %v619_v29, 1  ;;  %v6266_v52 = vsel %vm6070_vm2, 0, %v501_v49  ;;  %v406_v29 = vld [vmem:[%s6092_s14 + $0xa8] sm:$0xff] }
  0x3e   : > { %v6234_v20 = vsel %vm6070_vm2, 0, %v494_v17  ;;  %v729_v54 = vshll.u32 %v6266_v52, 16  ;;  %v734_v60 = vshll.u32 %v620_v55, 16  ;;  %v911_v8 = vrot.slane %v6266_v52, 1 }
  0x3f   : > { %1146 = vrot.lane.b32.xlu1 %v898_v24, %s8758_s30  ;;  %v717_v28 = vshll.u32 %v6234_v20, 16  ;;  %v715_v32 = vshrl.u32 %v6234_v20, 16  ;;  %v724_v39 = vrot.slane %v722_v34, 1  ;;  %v908_v47 = vrot.slane %v6234_v20, 1 }
  0x40   : > { %1144 = vrot.lane.b32.xlu0 %v895_v63, %s8758_s30  ;;  %v731_v59 = vrot.slane %v729_v54, 1  ;;  %v912_v9 = vrot.slane %v620_v55, 1 }
  0x41   : > { %v719_v33 = vrot.slane %v717_v28, 1  ;;  %v405_v28 = vld [vmem:[%s6092_s14 + $0xa0] sm:$0xff] }
  0x42   : > { %v433_v35 = vpack.c.bf16 %v406_v29, %v405_v28 }
  0x43   : > { %828 = vrot.lane.b32.xlu1 %v677_v18, %s8740_s16  ;;  %v720_v36 = vor.u32 %v719_v33, %v715_v32 }
  0x44   : > { %826 = vrot.lane.b32.xlu0 %v665_v11, %s8740_s16  ;;  %v618_v11 = vsel %vm6070_vm2, %v484_v58, 0  ;;  %v727_v58 = vshrl.u32 %v6266_v52, 16 }
  0x45   : > { %v710_v16 = vshll.u32 %v618_v11, 16  ;;  %v906_v27 = vrot.slane %v618_v11, 1  ;;  %v725_v46 = vsel %vm629_vm4, %v720_v36, %v724_v39 }
  0x47   : > { %941 = vrot.lane.b32.xlu1 %v898_v24, %s8744_s15  ;;  %v712_v19 = vrot.slane %v710_v16, 1  ;;  %v907_v31 = vsel %vm886_vm3, %v905_v26, %v906_v27  ;;  %v513_v27 = vshll.u32 %v432_v13, 16 }
  0x48   : > { %939 = vrot.lane.b32.xlu0 %v895_v63, %s8744_s15  ;;  %v902_v63 = vrot.slane %v6187_v42, 1 }
  0x4a   : > { %v904_v6 = vsel %vm886_vm3, %v902_v63, %v903_v1  ;;  %v736_v63 = vrot.slane %v734_v60, 1 }
  0x4b   : > { %974 = vrot.lane.b32.xlu1 %v6168_v25, %s8746_s22 }
  0x4c   : > { %972 = vrot.lane.b32.xlu0 %v6128_v41, %s8746_s22 }
  0x4f   : > { %1018 = vrot.lane.b32.xlu1 %v689_v45, %s8756_s24 }
  0x50   : > { %1016 = vrot.lane.b32.xlu0 %v677_v18, %s8756_s24  ;;  %v708_v18 = vor.u32 %v707_v15, %v703_v14  ;;  %v913_v14 = vsel %vm886_vm3, %v911_v8, %v912_v9 }
  0x53   : > { %1054 = vrot.lane.b32.xlu1 %v901_v51, %s8742_s13 }
  0x54   : > { %1052 = vrot.lane.b32.xlu0 %v898_v24, %s8742_s13  ;;  %v713_v24 = vsel %vm629_vm4, %v708_v18, %v712_v19  ;;  %v510_v18 = vshrl.u32 %v432_v13, 16  ;;  %v408_v13 = vld [vmem:[%s6092_s14 + $0xb8] sm:$0xff] }
  0x56   : > { %v512_v26 = vrot.slane %v510_v18, 7 }
  0x57   : > { %1086 = vrot.lane.b32.xlu1 %v6187_v42, %s8738_s29 }
  0x58   : > { %1084 = vrot.lane.b32.xlu0 %v6168_v25, %s8738_s29  ;;  %v515_v34 = vor.u32 %v513_v27, %v512_v26 }
  0x5a   : > { %v6317_v43 = vsel %vm6070_vm2, 0, %v515_v34 }
  0x5b   : > { %1118 = vrot.lane.b32.xlu1 %v701_v62, %s8771_s25 }
  0x5c   : > { %1116 = vrot.lane.b32.xlu0 %v689_v45, %s8771_s25 }
  0x5f   : > { %1150 = vrot.lane.b32.xlu1 %v904_v6, %s8758_s30 }
  0x60   : > { %1148 = vrot.lane.b32.xlu0 %v901_v51, %s8758_s30 }
  0x63   : > { %832 = vrot.lane.b32.xlu1 %v701_v62, %s8740_s16 }
  0x64   : > { %830 = vrot.lane.b32.xlu0 %v689_v45, %s8740_s16  ;;  %v402_v45 = vld [vmem:[%s6092_s14 + $0x88] sm:$0xff] }
  0x65   : > { %v431_v50 = vpack.c.bf16 %v402_v45, %v401_v44  ;;  %v517_v44 = vshrl.u32 %v433_v35, 16 }
  0x67   : > { %945 = vrot.lane.b32.xlu1 %v904_v6, %s8744_s15  ;;  %v503_v53 = vshrl.u32 %v431_v50, 16  ;;  %v506_v57 = vshll.u32 %v431_v50, 16  ;;  %v519_v49 = vrot.slane %v517_v44, 7  ;;  %v520_v50 = vshll.u32 %v433_v35, 16 }
  0x68   : > { %943 = vrot.lane.b32.xlu0 %v901_v51, %s8744_s15  ;;  %v910_v51 = vsel %vm886_vm3, %v908_v47, %v909_v48  ;;  %v622_v48 = vsel %vm6070_vm2, %v512_v26, 0 }
  0x69   : > { %v505_v56 = vrot.slane %v503_v53, 7  ;;  %v751_v53 = vshrl.u32 %v6317_v43, 16  ;;  %v758_v55 = vshll.u32 %v622_v48, 16 }
  0x6b   : > { %978 = vrot.lane.b32.xlu1 %v6220_v7, %s8746_s22  ;;  %v508_v61 = vor.u32 %v506_v57, %v505_v56  ;;  %v621_v12 = vsel %vm6070_vm2, %v505_v56, 0  ;;  %v522_v57 = vor.u32 %v520_v50, %v519_v49 }
  0x6c   : > { %976 = vrot.lane.b32.xlu0 %v6187_v42, %s8746_s22  ;;  %v746_v17 = vshll.u32 %v621_v12, 16  ;;  %v915_v32 = vrot.slane %v621_v12, 1  ;;  %v407_v12 = vld [vmem:[%s6092_s14 + $0xb0] sm:$0xff] }
  0x6d   : > { %v6280_v1 = vsel %vm6070_vm2, 0, %v508_v61  ;;  %v434_v26 = vpack.c.bf16 %v408_v13, %v407_v12 }
  0x6e   : > { %v741_v11 = vshll.u32 %v6280_v1, 16  ;;  %v739_v15 = vshrl.u32 %v6280_v1, 16 }
  0x6f   : > { %1022 = vrot.lane.b32.xlu1 %v713_v24, %s8756_s24 }
  0x70   : > { %1020 = vrot.lane.b32.xlu0 %v701_v62, %s8756_s24  ;;  %v732_v62 = vor.u32 %v731_v59, %v727_v58  ;;  %v743_v16 = vrot.slane %v741_v11, 1 }
  0x72   : > { %v744_v22 = vor.u32 %v743_v16, %v739_v15  ;;  %v918_v16 = vrot.slane %v622_v48, 1 }
  0x73   : > { %1058 = vrot.lane.b32.xlu1 %v907_v31, %s8742_s13 }
  0x74   : > { %1056 = vrot.lane.b32.xlu0 %v904_v6, %s8742_s13  ;;  %v737_v6 = vsel %vm629_vm4, %v732_v62, %v736_v63  ;;  %v760_v63 = vrot.slane %v758_v55, 1  ;;  %v410_v55 = vld [vmem:[%s6092_s14 + $0xc8] sm:$0xff] }
  0x77   : > { %1090 = vrot.lane.b32.xlu1 %v6234_v20, %s8738_s29 }
  0x78   : > { %1088 = vrot.lane.b32.xlu0 %v6220_v7, %s8738_s29 }
  0x7b   : > { %1122 = vrot.lane.b32.xlu1 %v725_v46, %s8771_s25 }
  0x7c   : > { %1120 = vrot.lane.b32.xlu0 %v713_v24, %s8771_s25 }
  0x7f   : > { %1154 = vrot.lane.b32.xlu1 %v910_v51, %s8758_s30 }
  0x80   : > { %1152 = vrot.lane.b32.xlu0 %v907_v31, %s8758_s30 }
  0x83   : > { %836 = vrot.lane.b32.xlu1 %v725_v46, %s8740_s16 }
  0x84   : > { %834 = vrot.lane.b32.xlu0 %v713_v24, %s8740_s16  ;;  %v748_v24 = vrot.slane %v746_v17, 1 }
  0x86   : > { %v6306_v30 = vsel %vm629_vm4, %v744_v22, %v748_v24  ;;  %v623_v24 = vsel %vm6070_vm2, %v519_v49, 0 }
  0x87   : > { %949 = vrot.lane.b32.xlu1 %v910_v51, %s8744_s15  ;;  %v770_v34 = vshll.u32 %v623_v24, 16 }
  0x88   : > { %947 = vrot.lane.b32.xlu0 %v907_v31, %s8744_s15  ;;  %v914_v31 = vrot.slane %v6280_v1, 1 }
  0x89   : > { %v772_v48 = vrot.slane %v770_v34, 1 }
  0x8a   : > { %v936_v19 = vpop.permute.xlu1 %935  ;;  %v6313_v39 = vsel %vm886_vm3, %v914_v31, %v915_v32 }
  0x8b   : > { %982 = vrot.lane.b32.xlu1 %v6266_v52, %s8746_s22 }
  0x8c   : > { %980 = vrot.lane.b32.xlu0 %v6234_v20, %s8746_s22 }
  0x8e   : > { %v823_v21 = vpop.permute.xlu0 %822 }
  0x8f   : > { %1026 = vrot.lane.b32.xlu1 %v737_v6, %s8756_s24  ;;  %v1178_v58 = vsel %vm8749_vm6, %v6078_v3, %v823_v21 }
  0x90   : > { %1024 = vrot.lane.b32.xlu0 %v725_v46, %s8756_s24  ;;  %v753_v46 = vshll.u32 %v6317_v43, 16  ;;  %v6338_v4 = vsel %vm8748_vm7, %v1178_v58, %v936_v19  ;;  %v917_v19 = vrot.slane %v6317_v43, 1 }
  0x92   : > { %v755_v54 = vrot.slane %v753_v46, 1  ;;  %v919_v31 = vsel %vm886_vm3, %v917_v19, %v918_v16 }
  0x93   : > { %1062 = vrot.lane.b32.xlu1 %v913_v14, %s8742_s13 }
  0x94   : > { %1060 = vrot.lane.b32.xlu0 %v910_v51, %s8742_s13  ;;  %v756_v62 = vor.u32 %v755_v54, %v751_v53  ;;  %v409_v54 = vld [vmem:[%s6092_s14 + $0xc0] sm:$0xff] }
  0x96   : > { %v761_v18 = vsel %vm629_vm4, %v756_v62, %v760_v63 }
  0x97   : > { %1094 = vrot.lane.b32.xlu1 %v6280_v1, %s8738_s29 }
  0x98   : > { %1092 = vrot.lane.b32.xlu0 %v6266_v52, %s8738_s29 }
  0x99   : > { %v971_v33 = vpop.permute.xlu1 %970 }
  0x9a   : > { %v969_v36 = vpop.permute.xlu0 %968 }
  0x9b   : > { %1126 = vrot.lane.b32.xlu1 %v6306_v30, %s8771_s25  ;;  %v1244_v8 = vsel %vm1242_vm8, %v6338_v4, %v969_v36 }
  0x9c   : > { %1124 = vrot.lane.b32.xlu0 %v737_v6, %s8771_s25 }
  0x9d   : > { %v1083_v40 = vpop.permute.xlu1 %1082 }
  0x9e   : > { %v1081_v45 = vpop.permute.xlu0 %1080 }
  0x9f   : > { %1158 = vrot.lane.b32.xlu1 %v6313_v39, %s8758_s30 }
  0xa0   : > { %1156 = vrot.lane.b32.xlu0 %v913_v14, %s8758_s30 }
  0xa1   : > { %v938_v47 = vpop.permute.xlu1 %937 }
  0xa2   : > { %v1049_v51 = vpop.permute.xlu0 %1048 }
  0xa3   : > { %840 = vrot.lane.b32.xlu1 %v6306_v30, %s8740_s16 }
  0xa4   : > { %838 = vrot.lane.b32.xlu0 %v737_v6, %s8740_s16 }
  0xa5   : > { %v1051_v56 = vpop.permute.xlu1 %1050 }
  0xa6   : > { %v825_v59 = vpop.permute.xlu0 %824 }
  0xa7   : > { %v1180_v60 = vsel %vm8749_vm6, %v6117_v38, %v825_v59  ;;  %953 = vrot.lane.b32.xlu1 %v6313_v39, %s8744_s15  ;;  %v6343_v38 = vsel %vm6070_vm2, 0, %v522_v57  ;;  %v921_v57 = vrot.slane %v623_v24, 1 }
  0xa8   : > { %v1213_v61 = vsel %vm8748_vm7, %v1180_v60, %v938_v47  ;;  %951 = vrot.lane.b32.xlu0 %v913_v14, %s8744_s15  ;;  %v765_v21 = vshll.u32 %v6343_v38, 16  ;;  %v763_v32 = vshrl.u32 %v6343_v38, 16  ;;  %v435_v60 = vpack.c.bf16 %v410_v55, %v409_v54 }
  0xa9   : > { %v1015_v5 = vpop.permute.xlu1 %1014  ;;  %v1246_v6 = vsel %vm1242_vm8, %v1213_v61, %v971_v33 }
  0xaa   : > { %v1279_v9 = vsel %vm1275_vm9, %v1246_v6, %v1015_v5  ;;  %v1013_v11 = vpop.permute.xlu0 %1012  ;;  %v767_v33 = vrot.slane %v765_v21, 1  ;;  %v531_v6 = vshrl.u32 %v435_v60, 16 }
  0xab   : > { %v1312_v14 = vsel %vm1308_vm10, %v1279_v9, %v1051_v56  ;;  %v1277_v15 = vsel %vm1275_vm9, %v1244_v8, %v1013_v11  ;;  %986 = vrot.lane.b32.xlu1 %v6317_v43, %s8746_s22  ;;  %v920_v56 = vrot.slane %v6343_v38, 1 }
  0xac   : > { %v1310_v17 = vsel %vm1308_vm10, %v1277_v15, %v1049_v51  ;;  %984 = vrot.lane.b32.xlu0 %v6280_v1, %s8746_s22  ;;  %v1345_v27 = vsel %vm1341_vm11, %v1312_v14, %v1083_v40  ;;  %v524_v40 = vshrl.u32 %v434_v26, 16  ;;  %v768_v47 = vor.u32 %v767_v33, %v763_v32  ;;  %v411_v32 = vld [vmem:[%s6092_s14 + $0xd0] sm:$0xff]  ;;  %v412_v33 = vld [vmem:[%s6092_s14 + $0xd8] sm:$0xff] }
  0xad   : > { %v1115_v22 = vpop.permute.xlu1 %1114  ;;  %v1343_v29 = vsel %vm1341_vm11, %v1310_v17, %v1081_v45  ;;  %v527_v51 = vshll.u32 %v434_v26, 16  ;;  %v6392_v62 = vsel %vm886_vm3, %v920_v56, %v921_v57  ;;  %v533_v13 = vrot.slane %v531_v6, 7 }
  0xae   : > { %v1113_v28 = vpop.permute.xlu0 %1112  ;;  %v1378_v35 = vsel %vm1374_vm12, %v1345_v27, %v1115_v22  ;;  %v526_v50 = vrot.slane %v524_v40, 7  ;;  %v534_v14 = vshll.u32 %v435_v60, 16 }
  0xaf   : > { %1030 = vrot.lane.b32.xlu1 %v761_v18, %s8756_s24  ;;  %v1376_v44 = vsel %vm1374_vm12, %v1343_v29, %v1113_v28 }
  0xb0   : > { %1028 = vrot.lane.b32.xlu0 %v6306_v30, %s8756_s24  ;;  %v529_v59 = vor.u32 %v527_v51, %v526_v50  ;;  %v624_v12 = vsel %vm6070_vm2, %v526_v50, 0  ;;  %v536_v22 = vor.u32 %v534_v14, %v533_v13 }
  0xb1   : > { %v1147_v36 = vpop.permute.xlu1 %1146  ;;  %v782_v19 = vshll.u32 %v624_v12, 16 }
  0xb2   : > { %v1411_v45 = vsel %vm1407_vm13, %v1378_v35, %v1147_v36  ;;  %v1145_v46 = vpop.permute.xlu0 %1144  ;;  %v6396_v5 = vsel %vm6070_vm2, 0, %v529_v59  ;;  %v6413_v29 = vsel %vm6070_vm2, 0, %v536_v22  ;;  %v924_v36 = vrot.slane %v624_v12, 1 }
  0xb3   : > { %1066 = vrot.lane.b32.xlu1 %v919_v31, %s8742_s13  ;;  %v1409_v30 = vsel %vm1407_vm13, %v1376_v44, %v1145_v46  ;;  %v777_v9 = vshll.u32 %v6396_v5, 16  ;;  %v775_v16 = vshrl.u32 %v6396_v5, 16  ;;  %v784_v27 = vrot.slane %v782_v19, 1  ;;  %v414_v19 = vld [vmem:[%s6092_s14 + $0xe8] sm:$0xff] }
  0xb4   : > { %1064 = vrot.lane.b32.xlu0 %v6313_v39, %s8742_s13  ;;  %5691 = vmatprep.mubr.msk.bf16.mxu0 %vm1461_vm14, %v1409_v30  ;;  %v6385_v39 = vsel %vm629_vm4, %v768_v47, %v772_v48  ;;  %v923_v35 = vrot.slane %v6396_v5, 1  ;;  %v436_v48 = vpack.c.bf16 %v412_v33, %v411_v32  ;;  %v787_v54 = vshrl.u32 %v6413_v29, 16 }
  0xb5   : > { %5692 = vmatmul.mubr.msk.bf16.vlgmr.msra.gmra.mrb[0].mxu0 %vm1461_vm14, %v1411_v45  ;;  %v829_v49 = vpop.permute.xlu1 %828  ;;  %v779_v17 = vrot.slane %v777_v9, 1  ;;  %v926_v22 = vrot.slane %v6413_v29, 1 }
  0xb6   : > { %v827_v53 = vpop.permute.xlu0 %826  ;;  %v1184_v34 = vsel %vm8749_vm6, %v6128_v41, %v829_v49  ;;  %v789_v41 = vshll.u32 %v6413_v29, 16  ;;  %v538_v6 = vshrl.u32 %v436_v48, 16 }
  0xb7   : > { %1098 = vrot.lane.b32.xlu1 %v6343_v38, %s8738_s29  ;;  %v780_v26 = vor.u32 %v779_v17, %v775_v16  ;;  %v1182_v40 = vsel %vm8749_vm6, %v6111_v37, %v827_v53  ;;  %v541_v16 = vshll.u32 %v436_v48, 16  ;;  %v413_v17 = vld [vmem:[%s6092_s14 + $0xe0] sm:$0xff] }
  0xb8   : > { %1096 = vrot.lane.b32.xlu0 %v6317_v43, %s8738_s29  ;;  %v791_v59 = vrot.slane %v789_v41, 1 }
  0xb9   : > { %v942_v58 = vpop.permute.xlu1 %941  ;;  %v6430_v45 = vsel %vm629_vm4, %v780_v26, %v784_v27  ;;  %v437_v26 = vpack.c.bf16 %v414_v19, %v413_v17 }
  0xba   : > { %v940_v61 = vpop.permute.xlu0 %939  ;;  %v1217_v44 = vsel %vm8748_vm7, %v1184_v34, %v942_v58  ;;  %v925_v58 = vsel %vm886_vm3, %v923_v35, %v924_v36 }
  0xbb   : > { %1130 = vrot.lane.b32.xlu1 %v6385_v39, %s8771_s25  ;;  %v1215_v46 = vsel %vm8748_vm7, %v1182_v40, %v940_v61  ;;  %v545_v33 = vshrl.u32 %v437_v26, 16 }
  0xbc   : > { %1128 = vrot.lane.b32.xlu0 %v761_v18, %s8771_s25 }
  0xbd   : > { %v975_v63 = vpop.permute.xlu1 %974  ;;  %v547_v40 = vrot.slane %v545_v33, 7 }
  0xbe   : > { %v973_v8 = vpop.permute.xlu0 %972  ;;  %v1250_v30 = vsel %vm1242_vm8, %v1217_v44, %v975_v63  ;;  %v548_v44 = vshll.u32 %v437_v26, 16 }
  0xbf   : > { %1162 = vrot.lane.b32.xlu1 %v6392_v62, %s8758_s30  ;;  %v1248_v49 = vsel %vm1242_vm8, %v1215_v46, %v973_v8 }
  0xc0   : > { %1160 = vrot.lane.b32.xlu0 %v919_v31, %s8758_s30 }
  0xc1   : > { %v1019_v11 = vpop.permute.xlu1 %1018 }
  0xc2   : > { %v1017_v15 = vpop.permute.xlu0 %1016  ;;  %v1283_v37 = vsel %vm1275_vm9, %v1250_v30, %v1019_v11 }
  0xc3   : > { %844 = vrot.lane.b32.xlu1 %v6385_v39, %s8740_s16  ;;  %v1281_v51 = vsel %vm1275_vm9, %v1248_v49, %v1017_v15  ;;  %v540_v15 = vrot.slane %v538_v6, 7 }
  0xc4   : > { %842 = vrot.lane.b32.xlu0 %v761_v18, %s8740_s16 }
  0xc5   : > { %v1055_v21 = vpop.permute.xlu1 %1054  ;;  %v626_v46 = vsel %vm6070_vm2, %v540_v15, 0 }
  0xc6   : > { %v1053_v24 = vpop.permute.xlu0 %1052  ;;  %v1316_v53 = vsel %vm1308_vm10, %v1283_v37, %v1055_v21  ;;  %v806_v49 = vshll.u32 %v626_v46, 16  ;;  %v550_v37 = vor.u32 %v548_v44, %v547_v40 }
  0xc7   : > { %957 = vrot.lane.b32.xlu1 %v6392_v62, %s8744_s15  ;;  %v1314_v56 = vsel %vm1308_vm10, %v1281_v51, %v1053_v24 }
  0xc8   : > { %955 = vrot.lane.b32.xlu0 %v919_v31, %s8744_s15  ;;  %v625_v31 = vsel %vm6070_vm2, %v533_v13, 0 }
  0xc9   : > { %v1087_v28 = vpop.permute.xlu1 %1086  ;;  %v794_v55 = vshll.u32 %v625_v31, 16  ;;  %v927_v24 = vrot.slane %v625_v31, 1 }
  0xca   : > { %v1085_v18 = vpop.permute.xlu0 %1084  ;;  %v1349_v57 = vsel %vm1341_vm11, %v1316_v53, %v1087_v28  ;;  %v543_v28 = vor.u32 %v541_v16, %v540_v15 }
  0xcb   : > { %990 = vrot.lane.b32.xlu1 %v6396_v5, %s8746_s22  ;;  %v1347_v60 = vsel %vm1341_vm11, %v1314_v56, %v1085_v18  ;;  %v796_v13 = vrot.slane %v794_v55, 1  ;;  %v6472_v32 = vsel %vm886_vm3, %v926_v22, %v927_v24  ;;  %v6494_v55 = vsel %vm6070_vm2, 0, %v550_v37 }
  0xcc   : > { %988 = vrot.lane.b32.xlu0 %v6343_v38, %s8746_s22  ;;  %v6476_v35 = vsel %vm6070_vm2, 0, %v543_v28 }
  0xcd   : > { %v1119_v47 = vpop.permute.xlu1 %1118  ;;  %v801_v31 = vshll.u32 %v6476_v35, 16 }
  0xce   : > { %v1117_v50 = vpop.permute.xlu0 %1116  ;;  %v1382_v61 = vsel %vm1374_vm12, %v1349_v57, %v1119_v47  ;;  %v799_v47 = vshrl.u32 %v6476_v35, 16  ;;  %v416_v57 = vld [vmem:[%s6092_s14 + $0xf8] sm:$0xff] }
  0xcf   : > { %1034 = vrot.lane.b32.xlu1 %v6430_v45, %s8756_s24  ;;  %v1380_v8 = vsel %vm1374_vm12, %v1347_v60, %v1117_v50  ;;  %v803_v48 = vrot.slane %v801_v31, 1  ;;  %v929_v60 = vrot.slane %v6476_v35, 1 }
  0xd0   : > { %1032 = vrot.lane.b32.xlu0 %v6385_v39, %s8756_s24  ;;  %v792_v39 = vor.u32 %v791_v59, %v787_v54  ;;  %v808_v54 = vrot.slane %v806_v49, 1 }
  0xd1   : > { %v1151_v63 = vpop.permute.xlu1 %1150  ;;  %v804_v53 = vor.u32 %v803_v48, %v799_v47 }
  0xd2   : > { %v1415_v9 = vsel %vm1407_vm13, %v1382_v61, %v1151_v63  ;;  %v1149_v11 = vpop.permute.xlu0 %1148  ;;  %v930_v61 = vrot.slane %v626_v46, 1 }
  0xd3   : > { %v1413_v12 = vsel %vm1407_vm13, %v1380_v8, %v1149_v11  ;;  %1070 = vrot.lane.b32.xlu1 %v925_v58, %s8742_s13 }
  0xd4   : > { %1068 = vrot.lane.b32.xlu0 %v6392_v62, %s8742_s13  ;;  %5695 = vmatprep.mubr.msk.bf16.mxu0 %vm1461_vm14, %v1413_v12  ;;  %v6464_v62 = vsel %vm629_vm4, %v792_v39, %v796_v13  ;;  %v627_v13 = vsel %vm6070_vm2, %v547_v40, 0  ;;  %v931_v16 = vsel %vm886_vm3, %v929_v60, %v930_v61 }
  0xd5   : > { %5696 = vmatmul.mubr.msk.bf16.gmra.mrb[4].mxu0 %vm1461_vm14, %v1415_v9  ;;  %v833_v14 = vpop.permute.xlu1 %832  ;;  %v809_v9 = vsel %vm629_vm4, %v804_v53, %v808_v54  ;;  %v933_v37 = vrot.slane %v627_v13, 1 }
  0xd6   : > { %v831_v21 = vpop.permute.xlu0 %830  ;;  %v1188_v63 = vsel %vm8749_vm6, %v6187_v42, %v833_v14 }
  0xd7   : > { %1102 = vrot.lane.b32.xlu1 %v6413_v29, %s8738_s29  ;;  %v1186_v6 = vsel %vm8749_vm6, %v6168_v25, %v831_v21  ;;  %v811_v21 = vshrl.u32 %v6494_v55, 16 }
  0xd8   : > { %1100 = vrot.lane.b32.xlu0 %v6396_v5, %s8738_s29 }
  0xd9   : > { %v946_v27 = vpop.permute.xlu1 %945 }
  0xda   : > { %v944_v18 = vpop.permute.xlu0 %943  ;;  %v1221_v8 = vsel %vm8748_vm7, %v1188_v63, %v946_v27  ;;  %v818_v27 = vshll.u32 %v627_v13, 16 }
  0xdb   : > { %1134 = vrot.lane.b32.xlu1 %v6464_v62, %s8771_s25  ;;  %v1219_v12 = vsel %vm8748_vm7, %v1186_v6, %v944_v18 }
  0xdc   : > { %1132 = vrot.lane.b32.xlu0 %v6430_v45, %s8771_s25 }
  0xdd   : > { %v979_v34 = vpop.permute.xlu1 %978 }
  0xde   : > { %v977_v36 = vpop.permute.xlu0 %976  ;;  %v1254_v42 = vsel %vm1242_vm8, %v1221_v8, %v979_v34 }
  0xdf   : > { %1166 = vrot.lane.b32.xlu1 %v6472_v32, %s8758_s30  ;;  %v1252_v14 = vsel %vm1242_vm8, %v1219_v12, %v977_v36 }
  0xe0   : > { %1164 = vrot.lane.b32.xlu0 %v925_v58, %s8758_s30 }
  0xe1   : > { %v1023_v41 = vpop.permute.xlu1 %1022 }
  0xe2   : > { %v1021_v30 = vpop.permute.xlu0 %1020  ;;  %v1287_v25 = vsel %vm1275_vm9, %v1254_v42, %v1023_v41  ;;  %v820_v41 = vrot.slane %v818_v27, 1 }
  0xe3   : > { %848 = vrot.lane.b32.xlu1 %v6464_v62, %s8740_s16  ;;  %v1285_v17 = vsel %vm1275_vm9, %v1252_v14, %v1021_v30 }
  0xe4   : > { %846 = vrot.lane.b32.xlu0 %v6430_v45, %s8740_s16  ;;  %v415_v45 = vld [vmem:[%s6092_s14 + $0xf0] sm:$0xff] }
  0xe5   : > { %v1059_v50 = vpop.permute.xlu1 %1058  ;;  %v438_v11 = vpack.c.bf16 %v416_v57, %v415_v45 }
  0xe6   : > { %v1057_v51 = vpop.permute.xlu0 %1056  ;;  %v1320_v19 = vsel %vm1308_vm10, %v1287_v25, %v1059_v50 }
  0xe7   : > { %961 = vrot.lane.b32.xlu1 %v6472_v32, %s8744_s15  ;;  %v1318_v24 = vsel %vm1308_vm10, %v1285_v17, %v1057_v51  ;;  %v552_v28 = vshrl.u32 %v438_v11, 16  ;;  %v555_v30 = vshll.u32 %v438_v11, 16 }
  0xe8   : > { %959 = vrot.lane.b32.xlu0 %v925_v58, %s8744_s15  ;;  %v813_v58 = vshll.u32 %v6494_v55, 16 }
  0xe9   : > { %v1091_v56 = vpop.permute.xlu1 %1090  ;;  %v554_v46 = vrot.slane %v552_v28, 7 }
  0xea   : > { %v1089_v59 = vpop.permute.xlu0 %1088  ;;  %v815_v22 = vrot.slane %v813_v58, 1  ;;  %v1353_v26 = vsel %vm1341_vm11, %v1320_v19, %v1091_v56 }
  0xeb   : > { %994 = vrot.lane.b32.xlu1 %v6476_v35, %s8746_s22  ;;  %v1351_v18 = vsel %vm1341_vm11, %v1318_v24, %v1089_v59  ;;  %v557_v50 = vor.u32 %v555_v30, %v554_v46  ;;  %v628_v60 = vsel %vm6070_vm2, %v554_v46, 0 }
  0xec   : > { %992 = vrot.lane.b32.xlu0 %v6413_v29, %s8746_s22  ;;  %v1008_v8 = vshll.u32 %v628_v60, 16 }
  0xed   : > { %v1123_v39 = vpop.permute.xlu1 %1122  ;;  %v611_v56 = vsel %vm6070_vm2, 0, %v557_v50 }
  0xee   : > { %v1121_v15 = vpop.permute.xlu0 %1120  ;;  %v1386_v33 = vsel %vm1374_vm12, %v1353_v26, %v1123_v39  ;;  %v1003_v59 = vshll.u32 %v611_v56, 16  ;;  %v1001_v58 = vshrl.u32 %v611_v56, 16  ;;  %v1010_v39 = vrot.slane %v1008_v8, 1 }
  0xef   : > { %1038 = vrot.lane.b32.xlu1 %v809_v9, %s8756_s24  ;;  %v1384_v36 = vsel %vm1374_vm12, %v1351_v18, %v1121_v15  ;;  %v1045_v19 = vrot.slane %v611_v56, 1 }
  0xf0   : > { %1036 = vrot.lane.b32.xlu0 %v6464_v62, %s8756_s24  ;;  %v816_v62 = vor.u32 %v815_v22, %v811_v21  ;;  %v1005_v6 = vrot.slane %v1003_v59, 1  ;;  %v1046_v21 = vrot.slane %v628_v60, 1 }
  0xf1   : > { %v1155_v34 = vpop.permute.xlu1 %1154 }
  0xf2   : > { %v1419_v31 = vsel %vm1407_vm13, %v1386_v33, %v1155_v34  ;;  %v1153_v40 = vpop.permute.xlu0 %1152  ;;  %v821_v49 = vsel %vm629_vm4, %v816_v62, %v820_v41  ;;  %v1006_v42 = vor.u32 %v1005_v6, %v1001_v58  ;;  %v1047_v34 = vsel %vm886_vm3, %v1045_v19, %v1046_v21 }
  0xf3   : > { %v1417_v44 = vsel %vm1407_vm13, %v1384_v36, %v1153_v40  ;;  %1074 = vrot.lane.b32.xlu1 %v931_v16, %s8742_s13 }
  0xf4   : > { %1072 = vrot.lane.b32.xlu0 %v6472_v32, %s8742_s13  ;;  %5699 = vmatprep.mubr.msk.bf16.mxu0 %vm1461_vm14, %v1417_v44  ;;  %v932_v32 = vrot.slane %v6494_v55, 1  ;;  %v1011_v15 = vsel %vm629_vm4, %v1006_v42, %v1010_v39 }
  0xf5   : > { %5700 = vmatmul.mubr.msk.bf16.gmra.mrb[8].mxu0 %vm1461_vm14, %v1419_v31  ;;  %v837_v47 = vpop.permute.xlu1 %836 }
  0xf6   : > { %v835_v48 = vpop.permute.xlu0 %834  ;;  %v934_v54 = vsel %vm886_vm3, %v932_v32, %v933_v37  ;;  %v1192_v25 = vsel %vm8749_vm6, %v6234_v20, %v837_v47 }
  0xf7   : > { %1106 = vrot.lane.b32.xlu1 %v6494_v55, %s8738_s29 }
  0xf8   : > { %1104 = vrot.lane.b32.xlu0 %v6476_v35, %s8738_s29 }
  0xf9   : > { %v950_v51 = vpop.permute.xlu1 %949 }
  0xfa   : > { %v948_v53 = vpop.permute.xlu0 %947  ;;  %v1225_v17 = vsel %vm8748_vm7, %v1192_v25, %v950_v51 }
  0xfb   : > { %1138 = vrot.lane.b32.xlu1 %v821_v49, %s8771_s25 }
  0xfc   : > { %1136 = vrot.lane.b32.xlu0 %v809_v9, %s8771_s25 }
  0xfd   : > { %v983_v45 = vpop.permute.xlu1 %982 }
  0xfe   : > { %v981_v57 = vpop.permute.xlu0 %980  ;;  %v1258_v22 = vsel %vm1242_vm8, %v1225_v17, %v983_v45 }
  0xff   : > { %1170 = vrot.lane.b32.xlu1 %v934_v54, %s8758_s30 }
 0x100   : > { %1168 = vrot.lane.b32.xlu0 %v931_v16, %s8758_s30 }
 0x101   : > { %v1027_v61 = vpop.permute.xlu1 %1026 }
 0x102   : > { %v1025_v63 = vpop.permute.xlu0 %1024  ;;  %v1291_v26 = vsel %vm1275_vm9, %v1258_v22, %v1027_v61 }
 0x103   : > { %852 = vrot.lane.b32.xlu1 %v821_v49, %s8740_s16 }
 0x104   : > { %850 = vrot.lane.b32.xlu0 %v809_v9, %s8740_s16  ;;  %v1190_v9 = vsel %vm8749_vm6, %v6220_v7, %v835_v48  ;;  %s8754_s16 = smov 96  }
 0x105   : > { %v1063_v11 = vpop.permute.xlu1 %1062 }
 0x106   : > { %v1061_v12 = vpop.permute.xlu0 %1060  ;;  %v1324_v7 = vsel %vm1308_vm10, %v1291_v26, %v1063_v11 }
 0x107   : > { %965 = vrot.lane.b32.xlu1 %v934_v54, %s8744_s15 }
 0x108   : > { %963 = vrot.lane.b32.xlu0 %v931_v16, %s8744_s15  ;;  %v1223_v16 = vsel %vm8748_vm7, %v1190_v9, %v948_v53  ;;  %s5959_s15 = smov 64  }
 0x109   : > { %v1095_v13 = vpop.permute.xlu1 %1094  ;;  %v1256_v20 = vsel %vm1242_vm8, %v1223_v16, %v981_v57 }
 0x10a   : > { %v1093_v14 = vpop.permute.xlu0 %1092  ;;  %v1289_v28 = vsel %vm1275_vm9, %v1256_v20, %v1025_v63  ;;  %v1357_v33 = vsel %vm1341_vm11, %v1324_v7, %v1095_v13 }
 0x10b   : > { %998 = vrot.lane.b32.xlu1 %v611_v56, %s8746_s22  ;;  %v1322_v18 = vsel %vm1308_vm10, %v1289_v28, %v1061_v12 }
 0x10c   : > { %996 = vrot.lane.b32.xlu0 %v6494_v55, %s8746_s22  ;;  %v1355_v36 = vsel %vm1341_vm11, %v1322_v18, %v1093_v14  ;;  %s8781_s22 = smov 20  }
 0x10d   : > { %v1127_v24 = vpop.permute.xlu1 %1126 }
 0x10e   : > { %v1125_v27 = vpop.permute.xlu0 %1124  ;;  %v1390_v31 = vsel %vm1374_vm12, %v1357_v33, %v1127_v24 }
 0x10f   : > { %1042 = vrot.lane.b32.xlu1 %v1011_v15, %s8756_s24  ;;  %v1388_v44 = vsel %vm1374_vm12, %v1355_v36, %v1125_v27 }
 0x110   : > { %1040 = vrot.lane.b32.xlu0 %v821_v49, %s8756_s24 }
 0x111   : > { %v1159_v40 = vpop.permute.xlu1 %1158 }
 0x112   : > { %v1423_v62 = vsel %vm1407_vm13, %v1390_v31, %v1159_v40  ;;  %v1157_v41 = vpop.permute.xlu0 %1156 }
 0x113   : > { %v1421_v46 = vsel %vm1407_vm13, %v1388_v44, %v1157_v41  ;;  %1078 = vrot.lane.b32.xlu1 %v1047_v34, %s8742_s13 }
 0x114   : > { %1076 = vrot.lane.b32.xlu0 %v934_v54, %s8742_s13  ;;  %5703 = vmatprep.mubr.msk.bf16.mxu0 %vm1461_vm14, %v1421_v46  ;;  %s8750_s13 = smov 80  }
 0x115   : > { %5704 = vmatmul.mubr.msk.bf16.gmra.mrb[12].mxu0 %vm1461_vm14, %v1423_v62  ;;  %v841_v30 = vpop.permute.xlu1 %840 }
 0x116   : > { %v839_v47 = vpop.permute.xlu0 %838  ;;  %v1196_v57 = vsel %vm8749_vm6, %v6280_v1, %v841_v30 }
 0x117   : > { %1110 = vrot.lane.b32.xlu1 %v6078_v3, %s8738_s29  ;;  %v1194_v59 = vsel %vm8749_vm6, %v6266_v52, %v839_v47 }
 0x118   : > { %1108 = vrot.lane.b32.xlu0 %v611_v56, %s8738_s29  ;;  %s8760_s29 = smov 48  }
 0x119   : > { %v954_v48 = vpop.permute.xlu1 %953 }
 0x11a   : > { %v952_v49 = vpop.permute.xlu0 %951  ;;  %v1229_v60 = vsel %vm8748_vm7, %v1196_v57, %v954_v48 }
 0x11b   : > { %1142 = vrot.lane.b32.xlu1 %v6103_v23, %s8771_s25  ;;  %v1227_v61 = vsel %vm8748_vm7, %v1194_v59, %v952_v49 }
 0x11c   : > { %1140 = vrot.lane.b32.xlu0 %v1011_v15, %s8771_s25 }
 0x11d   : > { %v987_v32 = vpop.permute.xlu1 %986 }
 0x11e   : > { %v985_v37 = vpop.permute.xlu0 %984  ;;  %v1262_v63 = vsel %vm1242_vm8, %v1229_v60, %v987_v32 }
 0x11f   : > { %1174 = vrot.lane.b32.xlu1 %v6087_v10, %s8758_s30  ;;  %v1260_v6 = vsel %vm1242_vm8, %v1227_v61, %v985_v37 }
 0x120   : > { %1172 = vrot.lane.b32.xlu0 %v1047_v34, %s8758_s30 }
 0x121   : > { %v1031_v50 = vpop.permute.xlu1 %1030 }
 0x122   : > { %v1029_v51 = vpop.permute.xlu0 %1028  ;;  %v1295_v8 = vsel %vm1275_vm9, %v1262_v63, %v1031_v50 }
 0x123   : > { %v1293_v12 = vsel %vm1275_vm9, %v1260_v6, %v1029_v51 }
 0x124   : > { %2082 = vrot.lane.b32.xlu0 %v6103_v23, %s8756_s24 }
 0x125   : > { %v1067_v53 = vpop.permute.xlu1 %1066 }
 0x126   : > { %v1065_v54 = vpop.permute.xlu0 %1064  ;;  %v1328_v42 = vsel %vm1308_vm10, %v1295_v8, %v1067_v53 }
 0x127   : > { %v1326_v1 = vsel %vm1308_vm10, %v1293_v12, %v1065_v54 }
 0x129   : > { %v1099_v56 = vpop.permute.xlu1 %1098 }
 0x12a   : > { %v1097_v45 = vpop.permute.xlu0 %1096  ;;  %v1361_v52 = vsel %vm1341_vm11, %v1328_v42, %v1099_v56 }
 0x12b   : > { %v1359_v39 = vsel %vm1341_vm11, %v1326_v1, %v1097_v45 }
 0x12d   : > { %v1131_v58 = vpop.permute.xlu1 %1130 }
 0x12e   : > { %v1129_v11 = vpop.permute.xlu0 %1128  ;;  %v1394_v13 = vsel %vm1374_vm12, %v1361_v52, %v1131_v58 }
 0x12f   : > { %v1392_v25 = vsel %vm1374_vm12, %v1359_v39, %v1129_v11 }
 0x131   : > { %v1163_v14 = vpop.permute.xlu1 %1162 }
 0x132   : > { %v1427_v15 = vsel %vm1407_vm13, %v1394_v13, %v1163_v14  ;;  %v1161_v9 = vpop.permute.xlu0 %1160 }
 0x133   : > { %v1425_v17 = vsel %vm1407_vm13, %v1392_v25, %v1161_v9 }
 0x134   : > { %5707 = vmatprep.mubr.msk.bf16.mxu0 %vm1461_vm14, %v1425_v17 }
 0x135   : > { %5708 = vmatmul.mubr.msk.bf16.gmra.mrb[16].mxu0 %vm1461_vm14, %v1427_v15  ;;  %v845_v19 = vpop.permute.xlu1 %844 }
 0x136   : > { %v843_v21 = vpop.permute.xlu0 %842  ;;  %v1200_v34 = vsel %vm8749_vm6, %v6343_v38, %v845_v19 }
 0x137   : > { %v1198_v36 = vsel %vm8749_vm6, %v6317_v43, %v843_v21 }
 0x139   : > { %v958_v16 = vpop.permute.xlu1 %957 }
 0x13a   : > { %v956_v22 = vpop.permute.xlu0 %955  ;;  %v1233_v31 = vsel %vm8748_vm7, %v1200_v34, %v958_v16 }
 0x13b   : > { %v1231_v40 = vsel %vm8748_vm7, %v1198_v36, %v956_v22 }
 0x13d   : > { %v991_v24 = vpop.permute.xlu1 %990 }
 0x13e   : > { %v989_v20 = vpop.permute.xlu0 %988  ;;  %v1266_v44 = vsel %vm1242_vm8, %v1233_v31, %v991_v24  ;;  %v5827_v31 = vld [vmem:[%s8727_s3 + $0x8] sm:$0xff]  }
 0x13f   : > { %v1264_v41 = vsel %vm1242_vm8, %v1231_v40, %v989_v20 }
 0x141   : > { %v1035_v26 = vpop.permute.xlu1 %1034 }
 0x142   : > { %v1033_v27 = vpop.permute.xlu0 %1032  ;;  %v1299_v46 = vsel %vm1275_vm9, %v1266_v44, %v1035_v26 }
 0x143   : > { %v1297_v47 = vsel %vm1275_vm9, %v1264_v41, %v1033_v27 }
 0x145   : > { %v1071_v28 = vpop.permute.xlu1 %1070 }
 0x146   : > { %v1069_v7 = vpop.permute.xlu0 %1068  ;;  %v1332_v48 = vsel %vm1308_vm10, %v1299_v46, %v1071_v28 }
 0x147   : > { %v1330_v38 = vsel %vm1308_vm10, %v1297_v47, %v1069_v7 }
 0x149   : > { %v1103_v18 = vpop.permute.xlu1 %1102 }
 0x14a   : > { %v1101_v33 = vpop.permute.xlu0 %1100  ;;  %v1365_v43 = vsel %vm1341_vm11, %v1332_v48, %v1103_v18 }
 0x14b   : > { %v1363_v49 = vsel %vm1341_vm11, %v1330_v38, %v1101_v33  ;;  %v5826_v33 = vld [vmem:[%s8727_s3] sm:$0xff]  }
 0x14c   : > { %2749 = vmatpush1.bf16.msra.mxu1 %v5826_v33  ;;  %v6673_v38 = vld [vmem:[%s8772_s2] ss:$0 sm:$0xff] }
 0x14d   : > { %v1135_v62 = vpop.permute.xlu1 %1134  ;;  %2750 = vmatprep.subr.bf16.mxu1 %v5946_v0 }
 0x14e   : > { %v1133_v30 = vpop.permute.xlu0 %1132  ;;  %v1398_v32 = vsel %vm1374_vm12, %v1365_v43, %v1135_v62  ;;  %v5828_v62 = vld [vmem:[%s8727_s3 + $0x10] sm:$0xff]  }
 0x14f   : > { %v1396_v50 = vsel %vm1374_vm12, %v1363_v49, %v1133_v30 }
 0x150   : > { %2751 = vmatpush1.bf16.msra.mxu1 %v5827_v31 }
 0x151   : > { %v1167_v37 = vpop.permute.xlu1 %1166  ;;  %2752 = vmatprep.subr.bf16.mxu1 %v5946_v0 }
 0x152   : > { %v1431_v51 = vsel %vm1407_vm13, %v1398_v32, %v1167_v37  ;;  %v1165_v53 = vpop.permute.xlu0 %1164  ;;  %v5829_v32 = vld [vmem:[%s8727_s3 + $0x18] sm:$0xff]  }
 0x153   : > { %v1429_v54 = vsel %vm1407_vm13, %v1396_v50, %v1165_v53 }
 0x154   : > { %5711 = vmatprep.mubr.msk.bf16.mxu0 %vm1461_vm14, %v1429_v54  ;;  %2753 = vmatpush1.bf16.msra.mxu1 %v5828_v62 }
 0x155   : > { %5712 = vmatmul.mubr.msk.bf16.gmra.mrb[20].mxu0 %vm1461_vm14, %v1431_v51  ;;  %v849_v56 = vpop.permute.xlu1 %848  ;;  %2754 = vmatprep.subr.bf16.mxu1 %v5946_v0 }
 0x156   : > { %v847_v45 = vpop.permute.xlu0 %846  ;;  %v1204_v6 = vsel %vm8749_vm6, %v6413_v29, %v849_v56 }
 0x157   : > { %v1202_v11 = vsel %vm8749_vm6, %v6396_v5, %v847_v45 }
 0x158   : > { %2755 = vmatpush1.bf16.msra.mxu1 %v5829_v32 }
 0x159   : > { %v962_v57 = vpop.permute.xlu1 %961  ;;  %2756 = vmatprep.subr.bf16.mxu1 %v5946_v0 }
 0x15a   : > { %v960_v59 = vpop.permute.xlu0 %959  ;;  %v1237_v42 = vsel %vm8748_vm7, %v1204_v6, %v962_v57 }
 0x15b   : > { %v1235_v1 = vsel %vm8748_vm7, %v1202_v11, %v960_v59 }
 0x15d   : > { %v995_v60 = vpop.permute.xlu1 %994 }
 0x15e   : > { %v993_v61 = vpop.permute.xlu0 %992  ;;  %v1270_v13 = vsel %vm1242_vm8, %v1237_v42, %v995_v60 }
 0x15f   : > { %v1268_v14 = vsel %vm1242_vm8, %v1235_v1, %v993_v61  ;;  %v5830_v61 = vld [vmem:[%s8727_s3 + $0x20] sm:$0xff]  }
 0x160   : > { %2757 = vmatpush1.bf16.msra.mxu1 %v5830_v61 }
 0x161   : > { %v1039_v63 = vpop.permute.xlu1 %1038  ;;  %2758 = vmatprep.subr.bf16.mxu1 %v5946_v0 }
 0x162   : > { %v1037_v58 = vpop.permute.xlu0 %1036  ;;  %v1303_v15 = vsel %vm1275_vm9, %v1270_v13, %v1039_v63 }
 0x163   : > { %v1301_v29 = vsel %vm1275_vm9, %v1268_v14, %v1037_v58 }
 0x165   : > { %v1075_v8 = vpop.permute.xlu1 %1074 }
 0x166   : > { %v1073_v12 = vpop.permute.xlu0 %1072  ;;  %v1336_v17 = vsel %vm1308_vm10, %v1303_v15, %v1075_v8  ;;  %v5831_v15 = vld [vmem:[%s8727_s3 + $0x28] sm:$0xff]  }
 0x167   : > { %v1334_v5 = vsel %vm1308_vm10, %v1301_v29, %v1073_v12  ;;  %2759 = vmatpush1.bf16.msra.mxu1 %v5831_v15 }
 0x168   : > { %2760 = vmatprep.subr.bf16.mxu1 %v5946_v0 }
 0x169   : > { %v1107_v52 = vpop.permute.xlu1 %1106 }
 0x16a   : > { %v1105_v39 = vpop.permute.xlu0 %1104  ;;  %v1369_v19 = vsel %vm1341_vm11, %v1336_v17, %v1107_v52 }
 0x16b   : > { %v1367_v21 = vsel %vm1341_vm11, %v1334_v5, %v1105_v39 }
 0x16d   : > { %v1139_v25 = vpop.permute.xlu1 %1138 }
 0x16e   : > { %v1137_v9 = vpop.permute.xlu0 %1136  ;;  %v1402_v16 = vsel %vm1374_vm12, %v1369_v19, %v1139_v25 }
 0x16f   : > { %v1400_v24 = vsel %vm1374_vm12, %v1367_v21, %v1137_v9 }
 0x171   : > { %v1171_v22 = vpop.permute.xlu1 %1170 }
 0x172   : > { %v1435_v20 = vsel %vm1407_vm13, %v1402_v16, %v1171_v22  ;;  %v1169_v26 = vpop.permute.xlu0 %1168 }
 0x173   : > { %v1433_v27 = vsel %vm1407_vm13, %v1400_v24, %v1169_v26 }
 0x174   : > { %5715 = vmatprep.mubr.msk.bf16.mxu0 %vm1461_vm14, %v1433_v27 }
 0x175   : > { %5716 = vmatmul.mubr.msk.bf16.gmra.mrb[24].mxu0 %vm1461_vm14, %v1435_v20  ;;  %v853_v28 = vpop.permute.xlu1 %852 }
 0x176   : > { %v851_v7 = vpop.permute.xlu0 %850  ;;  %v1208_v46 = vsel %vm8749_vm6, %v6494_v55, %v853_v28 }
 0x177   : > { %v1206_v47 = vsel %vm8749_vm6, %v6476_v35, %v851_v7  ;;  %v5832_v7 = vld [vmem:[%s8727_s3 + $0x30] sm:$0xff]   ;;  %vm2591_vm6 = vcmask 916480  }
 0x178   : > { %2761 = vmatpush1.bf16.msra.mxu1 %v5832_v7 }
 0x179   : > { %v966_v18 = vpop.permute.xlu1 %965  ;;  %2762 = vmatprep.subr.bf16.mxu1 %v5946_v0 }
 0x17a   : > { %v964_v34 = vpop.permute.xlu0 %963  ;;  %v1241_v43 = vsel %vm8748_vm7, %v1208_v46, %v966_v18 }
 0x17b   : > { %v1239_v37 = vsel %vm8748_vm7, %v1206_v47, %v964_v34  ;;  %vm2558_vm7 = vcmask 785408  }
 0x17d   : > { %v999_v36 = vpop.permute.xlu1 %998 }
 0x17e   : > { %v997_v40 = vpop.permute.xlu0 %996  ;;  %v1274_v56 = vsel %vm1242_vm8, %v1241_v43, %v999_v36 }
 0x17f   : > { %v1272_v59 = vsel %vm1242_vm8, %v1239_v37, %v997_v40  ;;  %v5833_v40 = vld [vmem:[%s8727_s3 + $0x38] sm:$0xff]   ;;  %v5834_v37 = vld [vmem:[%s8727_s3 + $0x40] sm:$0xff]  }
 0x180   : > { %2763 = vmatpush1.bf16.msra.mxu1 %v5833_v40 }
 0x181   : > { %v1043_v44 = vpop.permute.xlu1 %1042  ;;  %2764 = vmatprep.subr.bf16.mxu1 %v5946_v0 }
 0x182   : > { %v1041_v41 = vpop.permute.xlu0 %1040  ;;  %v1307_v8 = vsel %vm1275_vm9, %v1274_v56, %v1043_v44 }
 0x183   : > { %v1305_v1 = vsel %vm1275_vm9, %v1272_v59, %v1041_v41 }
 0x184   : > { %2765 = vmatpush1.bf16.msra.mxu1 %v5834_v37 }
 0x185   : > { %v1079_v30 = vpop.permute.xlu1 %1078 }
 0x186   : > { %v1077_v48 = vpop.permute.xlu0 %1076  ;;  %v1340_v52 = vsel %vm1308_vm10, %v1307_v8, %v1079_v30 }
 0x187   : > { %v1338_v13 = vsel %vm1308_vm10, %v1305_v1, %v1077_v48 }
 0x188   : > { %v5693_v49 = vpop.f32.mrb[0].mxu0 }
 0x189   : > { %v1541_v55 = vadd.f32 %v5693_v49, %v6673_v38  ;;  %v1532_v50 = vpop.f32.mrb[1].mxu0  ;;  %v6681_v51 = vpop.permute.xlu1 %1110 }
 0x18a   : > { %v1533_v35 = vadd.f32 %v6673_v38, %v1532_v50  ;;  %v5694_v53 = vpop.f32.mrb[2].mxu0  ;;  %v1109_v54 = vpop.permute.xlu0 %1108  ;;  %v1373_v14 = vsel %vm1341_vm11, %v1340_v52, %v6681_v51 }
 0x18b   : > { %v1544_v45 = vadd.f32 %v5694_v53, %v6673_v38  ;;  %v1535_v57 = vpop.f32.mrb[3].mxu0  ;;  %v1661_v63 = vmax.f32 %v1541_v55, 0.0  ;;  %v1371_v29 = vsel %vm1341_vm11, %v1338_v13, %v1109_v54 }
 0x18c   : > { %v1536_v60 = vadd.f32 %v6673_v38, %v1535_v57  ;;  %v1659_v11 = vmax.f32 %v1533_v35, 0.0 }
 0x18d   : > { %v1662_v58 = vmax.f32 %v1544_v45, 0.0  ;;  %v6692_v6 = vpop.permute.xlu1 %1142 }
 0x18e   : > { %v1660_v12 = vmax.f32 %v1536_v60, 0.0  ;;  %v1141_v42 = vpop.permute.xlu0 %1140  ;;  %v1406_v17 = vsel %vm1374_vm12, %v1373_v14, %v6692_v6 }
 0x18f   : > { %v1711_v39 = vpack.c.bf16 %v1662_v58, %v1661_v63  ;;  %v1404_v21 = vsel %vm1374_vm12, %v1371_v29, %v1141_v42 }
 0x190   : > { %v1710_v25 = vpack.c.bf16 %v1660_v12, %v1659_v11 }
 0x191   : > { %v1734_v9 = vshrl.u32 %v1711_v39, 16  ;;  %v6707_v5 = vpop.permute.xlu1 %1174  ;;  %v1737_v20 = vshll.u32 %v1711_v39, 16 }
 0x192   : > { %v1727_v19 = vshrl.u32 %v1710_v25, 16  ;;  %v1173_v16 = vpop.permute.xlu0 %1172  ;;  %v1439_v22 = vsel %vm1407_vm13, %v1406_v17, %v6707_v5  ;;  %v1730_v28 = vshll.u32 %v1710_v25, 16 }
 0x193   : > { %v1736_v24 = vrot.slane %v1734_v9, 7  ;;  %v1437_v26 = vsel %vm1407_vm13, %v1404_v21, %v1173_v16 }
 0x194   : > { %v1729_v27 = vrot.slane %v1727_v19, 7  ;;  %5719 = vmatprep.mubr.msk.bf16.mxu0 %vm1461_vm14, %v1437_v26 }
 0x195   : > { %v1739_v18 = vor.u32 %v1737_v20, %v1736_v24  ;;  %5720 = vmatmul.mubr.msk.bf16.gmra.mrb[28].mxu0 %vm1461_vm14, %v1439_v22  ;;  %v1887_v33 = vsel %vm6070_vm2, %v1736_v24, 0 }
 0x196   : > { %v1732_v34 = vor.u32 %v1730_v28, %v1729_v27  ;;  %v1886_v36 = vsel %vm6070_vm2, %v1729_v27, 0  ;;  %v2148_v41 = vrot.slane %v1887_v33, 1  ;;  %v1922_v55 = vshll.u32 %v1887_v33, 16 }
 0x197   : > { %v6725_v31 = vsel %vm6070_vm2, 0, %v1739_v18  ;;  %v2145_v47 = vrot.slane %v1886_v36, 1  ;;  %v1910_v56 = vshll.u32 %v1886_v36, 16 }
 0x198   : > { %2332 = vrot.lane.b32.xlu0 %v6725_v31, %s8754_s16  ;;  %v6735_v44 = vsel %vm6070_vm2, 0, %v1732_v34  ;;  %v2147_v62 = vrot.slane %v6725_v31, 1  ;;  %v1917_v46 = vshll.u32 %v6725_v31, 16  ;;  %v1915_v50 = vshrl.u32 %v6725_v31, 16 }
 0x199   : > { %2220 = vrot.lane.b32.xlu1 %v6735_v44, %s8760_s29  ;;  %v2144_v30 = vrot.slane %v6735_v44, 1  ;;  %v1905_v49 = vshll.u32 %v6735_v44, 16  ;;  %v1903_v54 = vshrl.u32 %v6735_v44, 16  ;;  %v1924_v45 = vrot.slane %v1922_v55, 1 }
 0x19a   : > { %v2149_v48 = vsel %vm886_vm3, %v2147_v62, %v2148_v41  ;;  %v1919_v32 = vrot.slane %v1917_v46, 1  ;;  %v1912_v60 = vrot.slane %v1910_v56, 1 }
 0x19b   : > { %5581 = vmatprep.mubr.msk.bf16.mxu1 %vm1275_vm9, %v2149_v48  ;;  %v2146_v43 = vsel %vm886_vm3, %v2144_v30, %v2145_v47  ;;  %v1907_v35 = vrot.slane %v1905_v49, 1 }
 0x19c   : > { %2222 = vrot.lane.b32.xlu0 %v6725_v31, %s8760_s29  ;;  %v1920_v53 = vor.u32 %v1919_v32, %v1915_v50 }
 0x19d   : > { %2300 = vrot.lane.b32.xlu1 %v2146_v43, %s8750_s13  ;;  %v1908_v57 = vor.u32 %v1907_v35, %v1903_v54 }
 0x19e   : > { %v1925_v59 = vsel %vm629_vm4, %v1920_v53, %v1924_v45 }
 0x19f   : > { %v1913_v61 = vsel %vm629_vm4, %v1908_v57, %v1912_v60 }
 0x1a0   : > { %2302 = vrot.lane.b32.xlu0 %v2149_v48, %s8750_s13 }
 0x1a1   : > { %2189 = vrot.lane.b32.xlu1 %v2146_v43, %s8758_s30 }
 0x1a4   : > { %2191 = vrot.lane.b32.xlu0 %v2149_v48, %s8758_s30 }
 0x1a5   : > { %2364 = vrot.lane.b32.xlu1 %v1925_v59, %s8752_s12 }
 0x1a8   : > { %v5697_v63 = vpop.f32.mrb[4].mxu0  ;;  %2264 = vrot.lane.b32.xlu0 %v1913_v61, %s5959_s15 }
 0x1a9   : > { %v1557_v58 = vadd.f32 %v5697_v63, %v6673_v38  ;;  %2266 = vrot.lane.b32.xlu1 %v1925_v59, %s5959_s15  ;;  %v1548_v8 = vpop.f32.mrb[5].mxu0 }
 0x1aa   : > { %v1549_v11 = vadd.f32 %v6673_v38, %v1548_v8  ;;  %v5698_v12 = vpop.f32.mrb[6].mxu0 }
 0x1ab   : > { %v1560_v42 = vadd.f32 %v5698_v12, %v6673_v38  ;;  %v1551_v1 = vpop.f32.mrb[7].mxu0  ;;  %v1665_v39 = vmax.f32 %v1557_v58, 0.0 }
 0x1ac   : > { %v1552_v52 = vadd.f32 %v6673_v38, %v1551_v1  ;;  %2084 = vrot.lane.b32.xlu0 %v1913_v61, %s8756_s24  ;;  %v1663_v14 = vmax.f32 %v1549_v11, 0.0 }
 0x1ad   : > { %v1666_v13 = vmax.f32 %v1560_v42, 0.0  ;;  %2086 = vrot.lane.b32.xlu1 %v1925_v59, %s8756_s24 }
 0x1ae   : > { %v1664_v25 = vmax.f32 %v1552_v52, 0.0 }
 0x1af   : > { %v1713_v15 = vpack.c.bf16 %v1666_v13, %v1665_v39 }
 0x1b0   : > { %v1712_v9 = vpack.c.bf16 %v1664_v25, %v1663_v14 }
 0x1b1   : > { %v1748_v29 = vshrl.u32 %v1713_v15, 16  ;;  %v1751_v21 = vshll.u32 %v1713_v15, 16 }
 0x1b2   : > { %v1741_v17 = vshrl.u32 %v1712_v9, 16  ;;  %v1744_v22 = vshll.u32 %v1712_v9, 16 }
 0x1b3   : > { %v1750_v19 = vrot.slane %v1748_v29, 7 }
 0x1b4   : > { %v1743_v16 = vrot.slane %v1741_v17, 7 }
 0x1b5   : > { %v1753_v24 = vor.u32 %v1751_v21, %v1750_v19  ;;  %v1889_v28 = vsel %vm6070_vm2, %v1750_v19, 0 }
 0x1b6   : > { %v1746_v20 = vor.u32 %v1744_v22, %v1743_v16  ;;  %v1888_v7 = vsel %vm6070_vm2, %v1743_v16, 0  ;;  %v2154_v40 = vrot.slane %v1889_v28, 1  ;;  %v1946_v32 = vshll.u32 %v1889_v28, 16 }
 0x1b7   : > { %v6771_v26 = vsel %vm6070_vm2, 0, %v1753_v24  ;;  %v2151_v62 = vrot.slane %v1888_v7, 1  ;;  %v1934_v43 = vshll.u32 %v1888_v7, 16 }
 0x1b8   : > { %2336 = vrot.lane.b32.xlu0 %v6771_v26, %s8754_s16  ;;  %v6777_v27 = vsel %vm6070_vm2, 0, %v1746_v20  ;;  %v2153_v18 = vrot.slane %v6771_v26, 1  ;;  %v1941_v36 = vshll.u32 %v6771_v26, 16  ;;  %v1939_v49 = vshrl.u32 %v6771_v26, 16 }
 0x1b9   : > { %2334 = vrot.lane.b32.xlu1 %v6777_v27, %s8754_s16  ;;  %v1929_v33 = vshll.u32 %v6777_v27, 16  ;;  %v2150_v34 = vrot.slane %v6777_v27, 1  ;;  %v1927_v48 = vshrl.u32 %v6777_v27, 16  ;;  %v1936_v50 = vrot.slane %v1934_v43, 1 }
 0x1ba   : > { %v6794_v41 = vsel %vm886_vm3, %v2153_v18, %v2154_v40  ;;  %v1943_v47 = vrot.slane %v1941_v36, 1  ;;  %v1948_v35 = vrot.slane %v1946_v32, 1 }
 0x1bb   : > { %v1931_v46 = vrot.slane %v1929_v33, 1  ;;  %v6799_v30 = vsel %vm886_vm3, %v2150_v34, %v2151_v62 }
 0x1bc   : > { %2226 = vrot.lane.b32.xlu0 %v6771_v26, %s8760_s29  ;;  %v1944_v55 = vor.u32 %v1943_v47, %v1939_v49 }
 0x1bd   : > { %2224 = vrot.lane.b32.xlu1 %v6777_v27, %s8760_s29  ;;  %v1932_v37 = vor.u32 %v1931_v46, %v1927_v48 }
 0x1be   : > { %v1949_v56 = vsel %vm629_vm4, %v1944_v55, %v1948_v35 }
 0x1bf   : > { %v1937_v53 = vsel %vm629_vm4, %v1932_v37, %v1936_v50 }
 0x1c0   : > { %2306 = vrot.lane.b32.xlu0 %v6794_v41, %s8750_s13 }
 0x1c1   : > { %2304 = vrot.lane.b32.xlu1 %v6799_v30, %s8750_s13 }
 0x1c4   : > { %2195 = vrot.lane.b32.xlu0 %v6794_v41, %s8758_s30 }
 0x1c5   : > { %2193 = vrot.lane.b32.xlu1 %v6799_v30, %s8758_s30 }
 0x1c8   : > { %v5701_v54 = vpop.f32.mrb[8].mxu0  ;;  %2366 = vrot.lane.b32.xlu0 %v1937_v53, %s8752_s12 }
 0x1c9   : > { %v1573_v45 = vadd.f32 %v5701_v54, %v6673_v38  ;;  %2368 = vrot.lane.b32.xlu1 %v1949_v56, %s8752_s12  ;;  %v1564_v57 = vpop.f32.mrb[9].mxu0 }
 0x1ca   : > { %v1565_v59 = vadd.f32 %v6673_v38, %v1564_v57  ;;  %v5702_v60 = vpop.f32.mrb[10].mxu0 }
 0x1cb   : > { %v1576_v61 = vadd.f32 %v5702_v60, %v6673_v38  ;;  %v1567_v63 = vpop.f32.mrb[11].mxu0  ;;  %v1669_v8 = vmax.f32 %v1573_v45, 0.0 }
 0x1cc   : > { %v1568_v58 = vadd.f32 %v6673_v38, %v1567_v63  ;;  %2268 = vrot.lane.b32.xlu0 %v1937_v53, %s5959_s15  ;;  %v1667_v12 = vmax.f32 %v1565_v59, 0.0 }
 0x1cd   : > { %v1670_v11 = vmax.f32 %v1576_v61, 0.0  ;;  %2270 = vrot.lane.b32.xlu1 %v1949_v56, %s5959_s15 }
 0x1ce   : > { %v1668_v42 = vmax.f32 %v1568_v58, 0.0 }
 0x1cf   : > { %v1715_v1 = vpack.c.bf16 %v1670_v11, %v1669_v8 }
 0x1d0   : > { %v1714_v52 = vpack.c.bf16 %v1668_v42, %v1667_v12  ;;  %2088 = vrot.lane.b32.xlu0 %v1937_v53, %s8756_s24 }
 0x1d1   : > { %v1762_v39 = vshrl.u32 %v1715_v1, 16  ;;  %2090 = vrot.lane.b32.xlu1 %v1949_v56, %s8756_s24  ;;  %v1765_v25 = vshll.u32 %v1715_v1, 16 }
 0x1d2   : > { %v1755_v13 = vshrl.u32 %v1714_v52, 16  ;;  %v1758_v9 = vshll.u32 %v1714_v52, 16 }
 0x1d3   : > { %v1764_v14 = vrot.slane %v1762_v39, 7 }
 0x1d4   : > { %v1757_v15 = vrot.slane %v1755_v13, 7 }
 0x1d5   : > { %v1767_v29 = vor.u32 %v1765_v25, %v1764_v14  ;;  %v1891_v16 = vsel %vm6070_vm2, %v1764_v14, 0 }
 0x1d6   : > { %v1760_v17 = vor.u32 %v1758_v9, %v1757_v15  ;;  %v1890_v22 = vsel %vm6070_vm2, %v1757_v15, 0  ;;  %v2160_v18 = vrot.slane %v1891_v16, 1  ;;  %v1970_v43 = vshll.u32 %v1891_v16, 16 }
 0x1d7   : > { %v6823_v19 = vsel %vm6070_vm2, 0, %v1767_v29  ;;  %v2157_v33 = vrot.slane %v1890_v22, 1  ;;  %v1958_v47 = vshll.u32 %v1890_v22, 16 }
 0x1d8   : > { %2340 = vrot.lane.b32.xlu0 %v6823_v19, %s8754_s16  ;;  %v6829_v21 = vsel %vm6070_vm2, 0, %v1760_v17  ;;  %v2159_v24 = vrot.slane %v6823_v19, 1  ;;  %v1965_v7 = vshll.u32 %v6823_v19, 16  ;;  %v1963_v48 = vshrl.u32 %v6823_v19, 16 }
 0x1d9   : > { %2338 = vrot.lane.b32.xlu1 %v6829_v21, %s8754_s16  ;;  %v1953_v20 = vshll.u32 %v6829_v21, 16  ;;  %v2156_v28 = vrot.slane %v6829_v21, 1  ;;  %v1951_v46 = vshrl.u32 %v6829_v21, 16  ;;  %v1960_v37 = vrot.slane %v1958_v47, 1 }
 0x1da   : > { %v6846_v34 = vsel %vm886_vm3, %v2159_v24, %v2160_v18  ;;  %v1967_v62 = vrot.slane %v1965_v7, 1  ;;  %v1972_v55 = vrot.slane %v1970_v43, 1 }
 0x1db   : > { %v1955_v36 = vrot.slane %v1953_v20, 1  ;;  %v6851_v40 = vsel %vm886_vm3, %v2156_v28, %v2157_v33 }
 0x1dc   : > { %2230 = vrot.lane.b32.xlu0 %v6823_v19, %s8760_s29  ;;  %v1968_v32 = vor.u32 %v1967_v62, %v1963_v48 }
 0x1dd   : > { %2228 = vrot.lane.b32.xlu1 %v6829_v21, %s8760_s29  ;;  %v1956_v49 = vor.u32 %v1955_v36, %v1951_v46 }
 0x1de   : > { %v1973_v53 = vsel %vm629_vm4, %v1968_v32, %v1972_v55 }
 0x1df   : > { %v1961_v50 = vsel %vm629_vm4, %v1956_v49, %v1960_v37 }
 0x1e0   : > { %2310 = vrot.lane.b32.xlu0 %v6846_v34, %s8750_s13 }
 0x1e1   : > { %2308 = vrot.lane.b32.xlu1 %v6851_v40, %s8750_s13 }
 0x1e4   : > { %2199 = vrot.lane.b32.xlu0 %v6846_v34, %s8758_s30 }
 0x1e5   : > { %2197 = vrot.lane.b32.xlu1 %v6851_v40, %s8758_s30 }
 0x1e8   : > { %v5705_v35 = vpop.f32.mrb[12].mxu0  ;;  %2370 = vrot.lane.b32.xlu0 %v1961_v50, %s8752_s12 }
 0x1e9   : > { %v1589_v54 = vadd.f32 %v5705_v35, %v6673_v38  ;;  %2372 = vrot.lane.b32.xlu1 %v1973_v53, %s8752_s12  ;;  %v1580_v56 = vpop.f32.mrb[13].mxu0  ;;  %v2083_v35 = vpop.permute.xlu0 %2082 }
 0x1ea   : > { %v1581_v45 = vadd.f32 %v6673_v38, %v1580_v56  ;;  %v5706_v57 = vpop.f32.mrb[14].mxu0 }
 0x1eb   : > { %v1592_v59 = vadd.f32 %v5706_v57, %v6673_v38  ;;  %v1583_v60 = vpop.f32.mrb[15].mxu0  ;;  %v1673_v63 = vmax.f32 %v1589_v54, 0.0 }
 0x1ec   : > { %v1584_v61 = vadd.f32 %v6673_v38, %v1583_v60  ;;  %2272 = vrot.lane.b32.xlu0 %v1961_v50, %s5959_s15  ;;  %v1671_v8 = vmax.f32 %v1581_v45, 0.0 }
 0x1ed   : > { %v1674_v58 = vmax.f32 %v1592_v59, 0.0  ;;  %2274 = vrot.lane.b32.xlu1 %v1973_v53, %s5959_s15 }
 0x1ee   : > { %v1672_v11 = vmax.f32 %v1584_v61, 0.0 }
 0x1ef   : > { %v1717_v12 = vpack.c.bf16 %v1674_v58, %v1673_v63 }
 0x1f0   : > { %v1716_v42 = vpack.c.bf16 %v1672_v11, %v1671_v8  ;;  %2092 = vrot.lane.b32.xlu0 %v1961_v50, %s8756_s24 }
 0x1f1   : > { %v1776_v1 = vshrl.u32 %v1717_v12, 16  ;;  %2094 = vrot.lane.b32.xlu1 %v1973_v53, %s8756_s24  ;;  %v1779_v13 = vshll.u32 %v1717_v12, 16 }
 0x1f2   : > { %v1769_v52 = vshrl.u32 %v1716_v42, 16  ;;  %v1772_v25 = vshll.u32 %v1716_v42, 16 }
 0x1f3   : > { %v1778_v39 = vrot.slane %v1776_v1, 7 }
 0x1f4   : > { %v1771_v14 = vrot.slane %v1769_v52, 7 }
 0x1f5   : > { %v1781_v15 = vor.u32 %v1779_v13, %v1778_v39  ;;  %v1893_v16 = vsel %vm6070_vm2, %v1778_v39, 0 }
 0x1f6   : > { %v1774_v9 = vor.u32 %v1772_v25, %v1771_v14  ;;  %v1892_v22 = vsel %vm6070_vm2, %v1771_v14, 0  ;;  %v2166_v18 = vrot.slane %v1893_v16, 1  ;;  %v1994_v32 = vshll.u32 %v1893_v16, 16 }
 0x1f7   : > { %v6875_v29 = vsel %vm6070_vm2, 0, %v1781_v15  ;;  %v2163_v33 = vrot.slane %v1892_v22, 1  ;;  %v1982_v43 = vshll.u32 %v1892_v22, 16 }
 0x1f8   : > { %2344 = vrot.lane.b32.xlu0 %v6875_v29, %s8754_s16  ;;  %v6881_v17 = vsel %vm6070_vm2, 0, %v1774_v9  ;;  %v2165_v24 = vrot.slane %v6875_v29, 1  ;;  %v1989_v7 = vshll.u32 %v6875_v29, 16  ;;  %v1987_v49 = vshrl.u32 %v6875_v29, 16 }
 0x1f9   : > { %2342 = vrot.lane.b32.xlu1 %v6881_v17, %s8754_s16  ;;  %v1977_v20 = vshll.u32 %v6881_v17, 16  ;;  %v2162_v28 = vrot.slane %v6881_v17, 1  ;;  %v1975_v48 = vshrl.u32 %v6881_v17, 16  ;;  %v1984_v50 = vrot.slane %v1982_v43, 1 }
 0x1fa   : > { %v6898_v36 = vsel %vm886_vm3, %v2165_v24, %v2166_v18  ;;  %v1991_v47 = vrot.slane %v1989_v7, 1  ;;  %v1996_v53 = vrot.slane %v1994_v32, 1 }
 0x1fb   : > { %v1979_v62 = vrot.slane %v1977_v20, 1  ;;  %v6903_v46 = vsel %vm886_vm3, %v2162_v28, %v2163_v33 }
 0x1fc   : > { %2234 = vrot.lane.b32.xlu0 %v6875_v29, %s8760_s29  ;;  %v1992_v55 = vor.u32 %v1991_v47, %v1987_v49 }
 0x1fd   : > { %2232 = vrot.lane.b32.xlu1 %v6881_v17, %s8760_s29  ;;  %v1980_v37 = vor.u32 %v1979_v62, %v1975_v48  ;;  %v2397_v62 = vsel %vm1275_vm9, %v6078_v3, %v2083_v35 }
 0x1fe   : > { %v1997_v45 = vsel %vm629_vm4, %v1992_v55, %v1996_v53  ;;  %v6947_v32 = vsel %vm1407_vm13, %v2397_v62, %v6707_v5 }
 0x1ff   : > { %v1985_v54 = vsel %vm629_vm4, %v1980_v37, %v1984_v50 }
 0x200   : > { %2314 = vrot.lane.b32.xlu0 %v6898_v36, %s8750_s13 }
 0x201   : > { %2312 = vrot.lane.b32.xlu1 %v6903_v46, %s8750_s13 }
 0x204   : > { %2203 = vrot.lane.b32.xlu0 %v6898_v36, %s8758_s30 }
 0x205   : > { %2201 = vrot.lane.b32.xlu1 %v6903_v46, %s8758_s30 }
 0x208   : > { %v5709_v56 = vpop.f32.mrb[16].mxu0  ;;  %2374 = vrot.lane.b32.xlu0 %v1985_v54, %s8752_s12 }
 0x209   : > { %v1605_v57 = vadd.f32 %v5709_v56, %v6673_v38  ;;  %2376 = vrot.lane.b32.xlu1 %v1997_v45, %s8752_s12  ;;  %v1596_v59 = vpop.f32.mrb[17].mxu0 }
 0x20a   : > { %v1597_v60 = vadd.f32 %v6673_v38, %v1596_v59  ;;  %v5710_v61 = vpop.f32.mrb[18].mxu0  ;;  %v2333_v63 = vpop.permute.xlu0 %2332 }
 0x20b   : > { %v1608_v58 = vadd.f32 %v5710_v61, %v6673_v38  ;;  %v2221_v8 = vpop.permute.xlu1 %2220  ;;  %v1599_v11 = vpop.f32.mrb[19].mxu0  ;;  %v1677_v42 = vmax.f32 %v1605_v57, 0.0 }
 0x20c   : > { %v1600_v12 = vadd.f32 %v6673_v38, %v1599_v11  ;;  %2276 = vrot.lane.b32.xlu0 %v1985_v54, %s5959_s15  ;;  %v1675_v52 = vmax.f32 %v1597_v60, 0.0  ;;  %v2461_v55 = vsel %vm2459_vm15, %v6947_v32, %v2221_v8 }
 0x20d   : > { %v1678_v1 = vmax.f32 %v1608_v58, 0.0  ;;  %2278 = vrot.lane.b32.xlu1 %v1997_v45, %s5959_s15 }
 0x20e   : > { %v1676_v39 = vmax.f32 %v1600_v12, 0.0  ;;  %v6923_v13 = vpop.permute.xlu0 %2222 }
 0x20f   : > { %v1719_v14 = vpack.c.bf16 %v1678_v1, %v1677_v42  ;;  %v2301_v25 = vpop.permute.xlu1 %2300 }
 0x210   : > { %v1718_v15 = vpack.c.bf16 %v1676_v39, %v1675_v52  ;;  %2096 = vrot.lane.b32.xlu0 %v1985_v54, %s8756_s24 }
 0x211   : > { %v1790_v9 = vshrl.u32 %v1719_v14, 16  ;;  %2098 = vrot.lane.b32.xlu1 %v1997_v45, %s8756_s24  ;;  %v1793_v20 = vshll.u32 %v1719_v14, 16 }
 0x212   : > { %v1783_v16 = vshrl.u32 %v1718_v15, 16  ;;  %v6927_v22 = vpop.permute.xlu0 %2302  ;;  %v1786_v7 = vshll.u32 %v1718_v15, 16 }
 0x213   : > { %v1792_v24 = vrot.slane %v1790_v9, 7  ;;  %v6929_v33 = vpop.permute.xlu1 %2189 }
 0x214   : > { %v1785_v28 = vrot.slane %v1783_v16, 7 }
 0x215   : > { %v1795_v18 = vor.u32 %v1793_v20, %v1792_v24  ;;  %v1895_v37 = vsel %vm6070_vm2, %v1792_v24, 0 }
 0x216   : > { %v1788_v47 = vor.u32 %v1786_v7, %v1785_v28  ;;  %v6933_v48 = vpop.permute.xlu0 %2191  ;;  %v1894_v35 = vsel %vm6070_vm2, %v1785_v28, 0  ;;  %v2172_v58 = vrot.slane %v1895_v37, 1  ;;  %v2018_v15 = vshll.u32 %v1895_v37, 16 }
 0x217   : > { %v6937_v43 = vsel %vm6070_vm2, 0, %v1795_v18  ;;  %v2365_v53 = vpop.permute.xlu1 %2364  ;;  %v2169_v11 = vrot.slane %v1894_v35, 1  ;;  %v2006_v14 = vshll.u32 %v1894_v35, 16 }
 0x218   : > { %2348 = vrot.lane.b32.xlu0 %v6937_v43, %s8754_s16  ;;  %v6943_v49 = vsel %vm6070_vm2, 0, %v1788_v47  ;;  %v2171_v56 = vrot.slane %v6937_v43, 1  ;;  %v2013_v60 = vshll.u32 %v6937_v43, 16  ;;  %v2020_v20 = vrot.slane %v2018_v15, 1 }
 0x219   : > { %2346 = vrot.lane.b32.xlu1 %v6943_v49, %s8754_s16  ;;  %v2001_v45 = vshll.u32 %v6943_v49, 16  ;;  %v2168_v59 = vrot.slane %v6943_v49, 1  ;;  %v1999_v39 = vshrl.u32 %v6943_v49, 16 }
 0x21a   : > { %v2265_v50 = vpop.permute.xlu0 %2264  ;;  %v6970_v12 = vsel %vm886_vm3, %v2171_v56, %v2172_v58  ;;  %v2015_v52 = vrot.slane %v2013_v60, 1 }
 0x21b   : > { %v2494_v54 = vsel %vm2492_vm0, %v2461_v55, %v2265_v50  ;;  %v2003_v42 = vrot.slane %v2001_v45, 1  ;;  %v6977_v1 = vsel %vm886_vm3, %v2168_v59, %v2169_v11 }
 0x21c   : > { %v2527_v57 = vsel %vm2525_vm1, %v2494_v54, %v2301_v25  ;;  %2238 = vrot.lane.b32.xlu0 %v6937_v43, %s8760_s29  ;;  %v2011_v25 = vshrl.u32 %v6937_v43, 16 }
 0x21d   : > { %2236 = vrot.lane.b32.xlu1 %v6943_v49, %s8760_s29  ;;  %v2560_v61 = vsel %vm2558_vm7, %v2527_v57, %v2333_v63  ;;  %v2267_v63 = vpop.permute.xlu1 %2266  ;;  %v2004_v9 = vor.u32 %v2003_v42, %v1999_v39 }
 0x21e   : > { %v2593_v8 = vsel %vm2591_vm6, %v2560_v61, %v2365_v53  ;;  %v2016_v16 = vor.u32 %v2015_v52, %v2011_v25  ;;  %v2085_v24 = vpop.permute.xlu0 %2084 }
 0x21f   : > { %2781 = vmatmul.mubr.bf16.vlgmr.msra.gmra.mrb[0].mxu1 %v2593_v8  ;;  %v2399_v57 = vsel %vm1275_vm9, %v6735_v44, %v2085_v24 }
 0x220   : > { %2318 = vrot.lane.b32.xlu0 %v6970_v12, %s8750_s13  ;;  %5582 = vmatprep.mubr.msk.bf16.mxu1 %vm1275_vm9, %v6799_v30  ;;  %v2008_v30 = vrot.slane %v2006_v14, 1  ;;  %v2021_v62 = vsel %vm629_vm4, %v2016_v16, %v2020_v20  ;;  %v2430_v52 = vsel %vm1407_vm13, %v2399_v57, %v6929_v33 }
 0x221   : > { %2316 = vrot.lane.b32.xlu1 %v6977_v1, %s8750_s13  ;;  %v2087_v28 = vpop.permute.xlu1 %2086  ;;  %v2463_v15 = vsel %vm2459_vm15, %v2430_v52, %v6923_v13 }
 0x222   : > { %v2009_v7 = vsel %vm629_vm4, %v2004_v9, %v2008_v30  ;;  %v2496_v33 = vsel %vm2492_vm0, %v2463_v15, %v2267_v63  ;;  %v2401_v63 = vsel %vm1275_vm9, %v6725_v31, %v2087_v28 }
 0x224   : > { %2207 = vrot.lane.b32.xlu0 %v6970_v12, %s8758_s30 }
 0x225   : > { %2205 = vrot.lane.b32.xlu1 %v6977_v1, %s8758_s30 }
 0x228   : > { %v5713_v18 = vpop.f32.mrb[20].mxu0  ;;  %2378 = vrot.lane.b32.xlu0 %v2009_v7, %s8752_s12 }
 0x229   : > { %v1621_v47 = vadd.f32 %v5713_v18, %v6673_v38  ;;  %2380 = vrot.lane.b32.xlu1 %v2021_v62, %s8752_s12  ;;  %v1612_v37 = vpop.f32.mrb[21].mxu0 }
 0x22a   : > { %v1613_v55 = vadd.f32 %v6673_v38, %v1612_v37  ;;  %v5714_v50 = vpop.f32.mrb[22].mxu0  ;;  %v6993_v35 = vpop.permute.xlu0 %2336 }
 0x22b   : > { %v1624_v53 = vadd.f32 %v5714_v50, %v6673_v38  ;;  %v2335_v54 = vpop.permute.xlu1 %2334  ;;  %v1615_v56 = vpop.f32.mrb[23].mxu0  ;;  %v1681_v59 = vmax.f32 %v1621_v47, 0.0 }
 0x22c   : > { %v1616_v45 = vadd.f32 %v6673_v38, %v1615_v56  ;;  %2280 = vrot.lane.b32.xlu0 %v2009_v7, %s5959_s15  ;;  %v1679_v61 = vmax.f32 %v1613_v55, 0.0  ;;  %v2529_v55 = vsel %vm2525_vm1, %v2496_v33, %v6927_v22 }
 0x22d   : > { %v1682_v60 = vmax.f32 %v1624_v53, 0.0  ;;  %2282 = vrot.lane.b32.xlu1 %v2021_v62, %s5959_s15  ;;  %v2562_v53 = vsel %vm2558_vm7, %v2529_v55, %v2335_v54  ;;  %v2432_v54 = vsel %vm1407_vm13, %v2401_v63, %v6933_v48 }
 0x22e   : > { %v1680_v58 = vmax.f32 %v1616_v45, 0.0  ;;  %v7001_v8 = vpop.permute.xlu0 %2226 }
 0x22f   : > { %v1721_v11 = vpack.c.bf16 %v1682_v60, %v1681_v59  ;;  %v2225_v42 = vpop.permute.xlu1 %2224 }
 0x230   : > { %v1720_v39 = vpack.c.bf16 %v1680_v58, %v1679_v61  ;;  %2100 = vrot.lane.b32.xlu0 %v2009_v7, %s8756_s24  ;;  %v2465_v58 = vsel %vm2459_vm15, %v2432_v54, %v2225_v42 }
 0x231   : > { %v1804_v14 = vshrl.u32 %v1721_v11, 16  ;;  %2102 = vrot.lane.b32.xlu1 %v2021_v62, %s8756_s24  ;;  %v1807_v16 = vshll.u32 %v1721_v11, 16 }
 0x232   : > { %v1797_v44 = vshrl.u32 %v1720_v39, 16  ;;  %v7007_v25 = vpop.permute.xlu0 %2306  ;;  %v1800_v20 = vshll.u32 %v1720_v39, 16 }
 0x233   : > { %v1806_v9 = vrot.slane %v1804_v14, 7  ;;  %v2305_v30 = vpop.permute.xlu1 %2304 }
 0x234   : > { %v1799_v24 = vrot.slane %v1797_v44, 7 }
 0x235   : > { %v1809_v18 = vor.u32 %v1807_v16, %v1806_v9  ;;  %v1897_v50 = vsel %vm6070_vm2, %v1806_v9, 0 }
 0x236   : > { %v1802_v47 = vor.u32 %v1800_v20, %v1799_v24  ;;  %v7012_v37 = vpop.permute.xlu0 %2195  ;;  %v1896_v45 = vsel %vm6070_vm2, %v1799_v24, 0  ;;  %v2178_v61 = vrot.slane %v1897_v50, 1 }
 0x237   : > { %v7014_v7 = vpop.permute.xlu1 %2193  ;;  %v7018_v62 = vsel %vm6070_vm2, 0, %v1809_v18  ;;  %v2175_v52 = vrot.slane %v1896_v45, 1  ;;  %v2030_v24 = vshll.u32 %v1896_v45, 16  ;;  %v2042_v18 = vshll.u32 %v1897_v50, 16 }
 0x238   : > { %2352 = vrot.lane.b32.xlu0 %v7018_v62, %s8754_s16  ;;  %v7024_v13 = vsel %vm6070_vm2, 0, %v1802_v47  ;;  %v2177_v22 = vrot.slane %v7018_v62, 1  ;;  %v2037_v28 = vshll.u32 %v7018_v62, 16 }
 0x239   : > { %2350 = vrot.lane.b32.xlu1 %v7024_v13, %s8754_s16  ;;  %v2025_v60 = vshll.u32 %v7024_v13, 16  ;;  %v2174_v31 = vrot.slane %v7024_v13, 1  ;;  %v2023_v16 = vshrl.u32 %v7024_v13, 16  ;;  %v2044_v63 = vrot.slane %v2042_v18, 1 }
 0x23a   : > { %v2367_v56 = vpop.permute.xlu0 %2366  ;;  %v7053_v14 = vsel %vm886_vm3, %v2177_v22, %v2178_v61 }
 0x23b   : > { %v2369_v57 = vpop.permute.xlu1 %2368  ;;  %v2596_v59 = vsel %vm2591_vm6, %v2562_v53, %v2367_v56  ;;  %v2027_v44 = vrot.slane %v2025_v60, 1  ;;  %v7059_v48 = vsel %vm886_vm3, %v2174_v31, %v2175_v52 }
 0x23c   : > { %2242 = vrot.lane.b32.xlu0 %v7018_v62, %s8760_s29  ;;  %2789 = vmatmul.mubr.bf16.gmra.mrb[4].mxu1 %v2596_v59 }
 0x23d   : > { %2240 = vrot.lane.b32.xlu1 %v7024_v13, %s8760_s29  ;;  %5583 = vmatprep.mubr.msk.bf16.mxu1 %vm1275_vm9, %v6794_v41  ;;  %v2039_v41 = vrot.slane %v2037_v28, 1  ;;  %v2028_v33 = vor.u32 %v2027_v44, %v2023_v16 }
 0x23e   : > { %v2269_v11 = vpop.permute.xlu0 %2268 }
 0x23f   : > { %v2498_v39 = vsel %vm2492_vm0, %v2465_v58, %v2269_v11  ;;  %v2271_v9 = vpop.permute.xlu1 %2270 }
 0x240   : > { %v2531_v15 = vsel %vm2525_vm1, %v2498_v39, %v2305_v30  ;;  %2322 = vrot.lane.b32.xlu0 %v7053_v14, %s8750_s13  ;;  %v2035_v30 = vshrl.u32 %v7018_v62, 16 }
 0x241   : > { %2320 = vrot.lane.b32.xlu1 %v7059_v48, %s8750_s13  ;;  %v2564_v42 = vsel %vm2558_vm7, %v2531_v15, %v6993_v35  ;;  %v2032_v35 = vrot.slane %v2030_v24, 1 }
 0x242   : > { %v2599_v20 = vsel %vm2591_vm6, %v2564_v42, %v2369_v57  ;;  %v2040_v47 = vor.u32 %v2039_v41, %v2035_v30  ;;  %v2089_v55 = vpop.permute.xlu0 %2088 }
 0x243   : > { %v2091_v53 = vpop.permute.xlu1 %2090  ;;  %v2033_v56 = vsel %vm629_vm4, %v2028_v33, %v2032_v35  ;;  %v2403_v58 = vsel %vm1275_vm9, %v6777_v27, %v2089_v55 }
 0x244   : > { %2211 = vrot.lane.b32.xlu0 %v7053_v14, %s8758_s30  ;;  %2797 = vmatmul.mubr.bf16.gmra.mrb[8].mxu1 %v2599_v20  ;;  %v2045_v45 = vsel %vm629_vm4, %v2040_v47, %v2044_v63  ;;  %v2434_v16 = vsel %vm1407_vm13, %v2403_v58, %v7014_v7 }
 0x245   : > { %2209 = vrot.lane.b32.xlu1 %v7059_v48, %s8758_s30  ;;  %5584 = vmatprep.mubr.msk.bf16.mxu1 %vm1275_vm9, %v6851_v40  ;;  %v2467_v30 = vsel %vm2459_vm15, %v2434_v16, %v7001_v8 }
 0x246   : > { %v2500_v7 = vsel %vm2492_vm0, %v2467_v30, %v2271_v9 }
 0x247   : > { %v2533_v9 = vsel %vm2525_vm1, %v2500_v7, %v7007_v25 }
 0x248   : > { %2382 = vrot.lane.b32.xlu0 %v2033_v56, %s8752_s12  ;;  %v5717_v50 = vpop.f32.mrb[24].mxu0 }
 0x249   : > { %v1637_v57 = vadd.f32 %v5717_v50, %v6673_v38  ;;  %2384 = vrot.lane.b32.xlu1 %v2045_v45, %s8752_s12  ;;  %v1628_v59 = vpop.f32.mrb[25].mxu0 }
 0x24a   : > { %v1629_v22 = vadd.f32 %v6673_v38, %v1628_v59  ;;  %v5718_v60 = vpop.f32.mrb[26].mxu0  ;;  %v7080_v40 = vpop.permute.xlu0 %2340 }
 0x24b   : > { %v1640_v31 = vadd.f32 %v5718_v60, %v6673_v38  ;;  %v2339_v28 = vpop.permute.xlu1 %2338  ;;  %v1631_v54 = vpop.f32.mrb[27].mxu0  ;;  %v1685_v11 = vmax.f32 %v1637_v57, 0.0 }
 0x24c   : > { %v1632_v61 = vadd.f32 %v6673_v38, %v1631_v54  ;;  %2284 = vrot.lane.b32.xlu0 %v2033_v56, %s5959_s15  ;;  %v1683_v39 = vmax.f32 %v1629_v22, 0.0  ;;  %v2405_v54 = vsel %vm1275_vm9, %v6771_v26, %v2091_v53 }
 0x24d   : > { %v1686_v52 = vmax.f32 %v1640_v31, 0.0  ;;  %2286 = vrot.lane.b32.xlu1 %v2045_v45, %s5959_s15  ;;  %v2436_v26 = vsel %vm1407_vm13, %v2405_v54, %v7012_v37 }
 0x24e   : > { %v1684_v44 = vmax.f32 %v1632_v61, 0.0  ;;  %v7088_v15 = vpop.permute.xlu0 %2230  ;;  %v2566_v61 = vsel %vm2558_vm7, %v2533_v9, %v2339_v28  ;;  %v5847_v9 = vld [vmem:[%s8772_s2] ss:$0 sm:$0xff] }
 0x24f   : > { %v1723_v41 = vpack.c.bf16 %v1686_v52, %v1685_v11  ;;  %v2229_v42 = vpop.permute.xlu1 %2228 }
 0x250   : > { %v1722_v24 = vpack.c.bf16 %v1684_v44, %v1683_v39  ;;  %2104 = vrot.lane.b32.xlu0 %v2033_v56, %s8756_s24 }
 0x251   : > { %v1818_v38 = vshrl.u32 %v1723_v41, 16  ;;  %2106 = vrot.lane.b32.xlu1 %v2045_v45, %s8756_s24  ;;  %v1821_v33 = vshll.u32 %v1723_v41, 16 }
 0x252   : > { %v1811_v27 = vshrl.u32 %v1722_v24, 16  ;;  %v7094_v20 = vpop.permute.xlu0 %2310  ;;  %v1814_v55 = vshll.u32 %v1722_v24, 16  ;;  %v2469_v24 = vsel %vm2459_vm15, %v2436_v26, %v2229_v42 }
 0x253   : > { %v1820_v18 = vrot.slane %v1818_v38, 7  ;;  %v2309_v47 = vpop.permute.xlu1 %2308 }
 0x254   : > { %v1813_v35 = vrot.slane %v1811_v27, 7 }
 0x255   : > { %v1823_v63 = vor.u32 %v1821_v33, %v1820_v18  ;;  %v7124_v11 = vsel %vm6070_vm2, %v1820_v18, 0 }
 0x256   : > { %v1816_v50 = vor.u32 %v1814_v55, %v1813_v35  ;;  %v1898_v56 = vsel %vm6070_vm2, %v1813_v35, 0  ;;  %v7101_v57 = vpop.permute.xlu0 %2199  ;;  %v2066_v18 = vshll.u32 %v7124_v11, 16 }
 0x257   : > { %v7105_v45 = vsel %vm6070_vm2, 0, %v1823_v63  ;;  %v7107_v59 = vpop.permute.xlu1 %2197  ;;  %v2054_v31 = vshll.u32 %v1898_v56, 16  ;;  %v2181_v27 = vrot.slane %v1898_v56, 1 }
 0x258   : > { %v7111_v8 = vsel %vm6070_vm2, 0, %v1816_v50  ;;  %v2061_v22 = vshll.u32 %v7105_v45, 16  ;;  %v2059_v30 = vshrl.u32 %v7105_v45, 16  ;;  %v2068_v50 = vrot.slane %v2066_v18, 1 }
 0x259   : > { %2354 = vrot.lane.b32.xlu1 %v7111_v8, %s8754_s16  ;;  %v2049_v60 = vshll.u32 %v7111_v8, 16  ;;  %v2047_v25 = vshrl.u32 %v7111_v8, 16  ;;  %v2180_v41 = vrot.slane %v7111_v8, 1  ;;  %v2056_v28 = vrot.slane %v2054_v31, 1 }
 0x25a   : > { %v2371_v58 = vpop.permute.xlu0 %2370  ;;  %v2063_v16 = vrot.slane %v2061_v22, 1 }
 0x25b   : > { %v2373_v52 = vpop.permute.xlu1 %2372  ;;  %v2602_v39 = vsel %vm2591_vm6, %v2566_v61, %v2371_v58  ;;  %v2051_v44 = vrot.slane %v2049_v60, 1 }
 0x25c   : > { %2805 = vmatmul.mubr.bf16.gmra.mrb[12].mxu1 %v2602_v39  ;;  %v2064_v55 = vor.u32 %v2063_v16, %v2059_v30 }
 0x25d   : > { %2244 = vrot.lane.b32.xlu1 %v7111_v8, %s8760_s29  ;;  %5585 = vmatprep.mubr.msk.bf16.mxu1 %vm1275_vm9, %v6846_v34  ;;  %v2052_v53 = vor.u32 %v2051_v44, %v2047_v25  ;;  %v7143_v34 = vsel %vm886_vm3, %v2180_v41, %v2181_v27  ;;  %v2183_v27 = vrot.slane %v7105_v45, 1 }
 0x25e   : > { %v2273_v38 = vpop.permute.xlu0 %2272 }
 0x25f   : > { %v2502_v33 = vsel %vm2492_vm0, %v2469_v24, %v2273_v38  ;;  %v2057_v37 = vsel %vm629_vm4, %v2052_v53, %v2056_v28  ;;  %v2275_v63 = vpop.permute.xlu1 %2274 }
 0x260   : > { %v2535_v35 = vsel %vm2525_vm1, %v2502_v33, %v2309_v47  ;;  %2386 = vrot.lane.b32.xlu0 %v2057_v37, %s8752_s12  ;;  %v7152_v47 = vsel %vm629_vm4, %v2064_v55, %v2068_v50  ;;  %v2184_v33 = vrot.slane %v7124_v11, 1 }
 0x261   : > { %2324 = vrot.lane.b32.xlu1 %v7143_v34, %s8750_s13  ;;  %v2568_v42 = vsel %vm2558_vm7, %v2535_v35, %v7080_v40  ;;  %s8773_s13 = smov 80  }
 0x262   : > { %v2605_v7 = vsel %vm2591_vm6, %v2568_v42, %v2373_v52  ;;  %v2093_v56 = vpop.permute.xlu0 %2092 }
 0x263   : > { %v2095_v22 = vpop.permute.xlu1 %2094  ;;  %v2407_v44 = vsel %vm1275_vm9, %v6829_v21, %v2093_v56  ;;  %v7185_v56 = vsel %vm886_vm3, %v2183_v27, %v2184_v33 }
 0x264   : > { %2288 = vrot.lane.b32.xlu0 %v2057_v37, %s5959_s15  ;;  %2813 = vmatmul.mubr.bf16.gmra.mrb[16].mxu1 %v2605_v7  ;;  %v2438_v30 = vsel %vm1407_vm13, %v2407_v44, %v7107_v59  ;;  %v2409_v44 = vsel %vm1275_vm9, %v6823_v19, %v2095_v22 }
 0x265   : > { %2388 = vrot.lane.b32.xlu1 %v7152_v47, %s8752_s12  ;;  %5586 = vmatprep.mubr.msk.bf16.mxu1 %vm1275_vm9, %v6903_v46  ;;  %v2471_v55 = vsel %vm2459_vm15, %v2438_v30, %v7088_v15  ;;  %v2440_v30 = vsel %vm1407_vm13, %v2409_v44, %v7101_v57 }
 0x266   : > { %v2504_v11 = vsel %vm2492_vm0, %v2471_v55, %v2275_v63 }
 0x268   : > { %2356 = vrot.lane.b32.xlu0 %v7105_v45, %s8754_s16  ;;  %v5721_v40 = vpop.f32.mrb[28].mxu0 }
 0x269   : > { %v1653_v60 = vadd.f32 %v5847_v9, %v5721_v40  ;;  %2213 = vrot.lane.b32.xlu1 %v7143_v34, %s8758_s30  ;;  %v1644_v31 = vpop.f32.mrb[29].mxu0 }
 0x26a   : > { %v1645_v54 = vadd.f32 %v5847_v9, %v1644_v31  ;;  %v5722_v61 = vpop.f32.mrb[30].mxu0  ;;  %v7165_v58 = vpop.permute.xlu0 %2344 }
 0x26b   : > { %v1656_v46 = vadd.f32 %v5847_v9, %v5722_v61  ;;  %v2343_v52 = vpop.permute.xlu1 %2342  ;;  %v1647_v39 = vpop.f32.mrb[31].mxu0  ;;  %v1689_v41 = vmax.f32 %v1653_v60, 0.0 }
 0x26c   : > { %v1648_v25 = vadd.f32 %v5847_v9, %v1647_v39  ;;  %2108 = vrot.lane.b32.xlu0 %v2057_v37, %s8756_s24  ;;  %v1687_v26 = vmax.f32 %v1645_v54, 0.0  ;;  %v2537_v39 = vsel %vm2525_vm1, %v2504_v11, %v7094_v20 }
 0x26d   : > { %v1690_v16 = vmax.f32 %v1656_v46, 0.0  ;;  %2290 = vrot.lane.b32.xlu1 %v7152_v47, %s5959_s15 }
 0x26e   : > { %v1688_v53 = vmax.f32 %v1648_v25, 0.0  ;;  %v7172_v28 = vpop.permute.xlu0 %2234 }
 0x26f   : > { %v1725_v24 = vpack.c.bf16 %v1690_v16, %v1689_v41  ;;  %v2233_v38 = vpop.permute.xlu1 %2232  ;;  %v2570_v41 = vsel %vm2558_vm7, %v2537_v39, %v2343_v52 }
 0x270   : > { %v1724_v18 = vpack.c.bf16 %v1688_v53, %v1687_v26  ;;  %2246 = vrot.lane.b32.xlu0 %v7105_v45, %s8760_s29  ;;  %v2473_v52 = vsel %vm2459_vm15, %v2440_v30, %v2233_v38 }
 0x271   : > { %v1832_v21 = vshrl.u32 %v1725_v24, 16  ;;  %v1835_v7 = vshll.u32 %v1725_v24, 16 }
 0x272   : > { %v1825_v37 = vshrl.u32 %v1724_v18, 16  ;;  %v7180_v35 = vpop.permute.xlu0 %2314  ;;  %v1828_v40 = vshll.u32 %v1724_v18, 16 }
 0x273   : > { %v1834_v42 = vrot.slane %v1832_v21, 7  ;;  %v2313_v50 = vpop.permute.xlu1 %2312 }
 0x274   : > { %v1827_v59 = vrot.slane %v1825_v37, 7  ;;  %2326 = vrot.lane.b32.xlu0 %v7185_v56, %s8773_s13 }
 0x275   : > { %v1837_v9 = vor.u32 %v1835_v7, %v1834_v42  ;;  %v1901_v21 = vsel %vm6070_vm2, %v1834_v42, 0 }
 0x276   : > { %v1830_v60 = vor.u32 %v1828_v40, %v1827_v59  ;;  %v1900_v31 = vsel %vm6070_vm2, %v1827_v59, 0  ;;  %v7192_v54 = vpop.permute.xlu0 %2203  ;;  %v2260_v40 = vshll.u32 %v1901_v21, 16 }
 0x277   : > { %v2202_v15 = vpop.permute.xlu1 %2201  ;;  %v7200_v46 = vsel %vm6070_vm2, 0, %v1837_v9  ;;  %v2078_v25 = vshll.u32 %v1900_v31, 16  ;;  %v2187_v7 = vrot.slane %v1900_v31, 1 }
 0x278   : > { %v7196_v61 = vsel %vm6070_vm2, 0, %v1830_v60  ;;  %v2255_v20 = vshll.u32 %v7200_v46, 16  ;;  %v2253_v59 = vshrl.u32 %v7200_v46, 16  ;;  %v2262_v11 = vrot.slane %v2260_v40, 1 }
 0x279   : > { %2358 = vrot.lane.b32.xlu1 %v7196_v61, %s8754_s16  ;;  %v2073_v63 = vshll.u32 %v7196_v61, 16  ;;  %v2071_v24 = vshrl.u32 %v7196_v61, 16  ;;  %v2080_v22 = vrot.slane %v2078_v25, 1 }
 0x27a   : > { %v2375_v16 = vpop.permute.xlu0 %2374  ;;  %v2257_v55 = vrot.slane %v2255_v20, 1 }
 0x27b   : > { %v2377_v26 = vpop.permute.xlu1 %2376  ;;  %v2608_v53 = vsel %vm2591_vm6, %v2570_v41, %v2375_v16  ;;  %v2075_v27 = vrot.slane %v2073_v63, 1 }
 0x27c   : > { %2821 = vmatmul.mubr.bf16.gmra.mrb[20].mxu1 %v2608_v53  ;;  %v2258_v9 = vor.u32 %v2257_v55, %v2253_v59 }
 0x27d   : > { %2110 = vrot.lane.b32.xlu1 %v7152_v47, %s8756_s24  ;;  %5587 = vmatprep.mubr.msk.bf16.mxu1 %vm1275_vm9, %v6898_v36  ;;  %v2076_v19 = vor.u32 %v2075_v27, %v2071_v24  ;;  %v2186_v47 = vrot.slane %v7196_v61, 1  ;;  %v2297_v24 = vrot.slane %v7200_v46, 1 }
 0x27e   : > { %v2277_v18 = vpop.permute.xlu0 %2276  ;;  %v2263_v31 = vsel %vm629_vm4, %v2258_v9, %v2262_v11 }
 0x27f   : > { %v2506_v33 = vsel %vm2492_vm0, %v2473_v52, %v2277_v18  ;;  %v2081_v37 = vsel %vm629_vm4, %v2076_v19, %v2080_v22  ;;  %v2279_v36 = vpop.permute.xlu1 %2278 }
 0x280   : > { %v2539_v57 = vsel %vm2525_vm1, %v2506_v33, %v2313_v50  ;;  %2390 = vrot.lane.b32.xlu0 %v2081_v37, %s8752_s12  ;;  %v7236_v50 = vsel %vm886_vm3, %v2186_v47, %v2187_v7 }
 0x281   : > { %2248 = vrot.lane.b32.xlu1 %v7196_v61, %s8760_s29  ;;  %v2572_v38 = vsel %vm2558_vm7, %v2539_v57, %v7165_v58 }
 0x282   : > { %v2611_v42 = vsel %vm2591_vm6, %v2572_v38, %v2377_v26  ;;  %v2097_v58 = vpop.permute.xlu0 %2096 }
 0x283   : > { %v2099_v60 = vpop.permute.xlu1 %2098  ;;  %v2411_v25 = vsel %vm1275_vm9, %v6881_v17, %v2097_v58  ;;  %v2298_v17 = vrot.slane %v1901_v21, 1 }
 0x284   : > { %2215 = vrot.lane.b32.xlu0 %v7185_v56, %s8758_s30  ;;  %2829 = vmatmul.mubr.bf16.gmra.mrb[24].mxu1 %v2611_v42  ;;  %v2442_v41 = vsel %vm1407_vm13, %v2411_v25, %v2202_v15 }
 0x285   : > { %2328 = vrot.lane.b32.xlu1 %v7236_v50, %s8773_s13  ;;  %5588 = vmatprep.mubr.msk.bf16.mxu1 %vm1275_vm9, %v6977_v1  ;;  %v2475_v26 = vsel %vm2459_vm15, %v2442_v41, %v7172_v28  ;;  %v7263_v30 = vsel %vm886_vm3, %v2297_v24, %v2298_v17 }
 0x286   : > { %v2508_v15 = vsel %vm2492_vm0, %v2475_v26, %v2279_v36 }
 0x287   : > { %v2541_v28 = vsel %vm2525_vm1, %v2508_v15, %v7180_v35 }
 0x288   : > { %2292 = vrot.lane.b32.xlu0 %v2081_v37, %s5959_s15 }
 0x289   : > { %2392 = vrot.lane.b32.xlu1 %v2263_v31, %s8752_s12 }
 0x28a   : > { %v2349_v39 = vpop.permute.xlu0 %2348 }
 0x28b   : > { %v2347_v63 = vpop.permute.xlu1 %2346 }
 0x28c   : > { %2360 = vrot.lane.b32.xlu0 %v7200_v46, %s8754_s16  ;;  %v2574_v19 = vsel %vm2558_vm7, %v2541_v28, %v2347_v63 }
 0x28d   : > { %2217 = vrot.lane.b32.xlu1 %v7236_v50, %s8758_s30 }
 0x28e   : > { %v2239_v1 = vpop.permute.xlu0 %2238 }
 0x28f   : > { %v2237_v44 = vpop.permute.xlu1 %2236 }
 0x290   : > { %2112 = vrot.lane.b32.xlu0 %v2081_v37, %s8756_s24  ;;  %s8776_s24 = smov 112  }
 0x291   : > { %2294 = vrot.lane.b32.xlu1 %v2263_v31, %s5959_s15 }
 0x292   : > { %v2319_v16 = vpop.permute.xlu0 %2318 }
 0x293   : > { %v2317_v53 = vpop.permute.xlu1 %2316 }
 0x294   : > { %2250 = vrot.lane.b32.xlu0 %v7200_v46, %s8760_s29  ;;  %v2413_v46 = vsel %vm1275_vm9, %v6875_v29, %v2099_v60 }
 0x295   : > { %2362 = vrot.lane.b32.xlu1 %v6078_v3, %s8754_s16  ;;  %v2444_v18 = vsel %vm1407_vm13, %v2413_v46, %v7192_v54  ;;  %s8777_s16 = smov 32  }
 0x296   : > { %v2208_v27 = vpop.permute.xlu0 %2207  ;;  %v2477_v35 = vsel %vm2459_vm15, %v2444_v18, %v2237_v44 }
 0x297   : > { %v2206_v20 = vpop.permute.xlu1 %2205 }
 0x298   : > { %2330 = vrot.lane.b32.xlu0 %v7263_v30, %s8773_s13 }
 0x29a   : > { %v2379_v22 = vpop.permute.xlu0 %2378 }
 0x29b   : > { %v2381_v3 = vpop.permute.xlu1 %2380  ;;  %v2614_v52 = vsel %vm2591_vm6, %v2574_v19, %v2379_v22 }
 0x29c   : > { %2394 = vrot.lane.b32.xlu0 %v6103_v23, %s8752_s12  ;;  %2837 = vmatmul.mubr.bf16.gmra.mrb[28].mxu1 %v2614_v52  ;;  %s8774_s12 = smov 16  }
 0x29d   : > { %5589 = vmatprep.mubr.msk.bf16.mxu1 %vm1275_vm9, %v6970_v12 }
 0x29e   : > { %v2281_v21 = vpop.permute.xlu0 %2280 }
 0x29f   : > { %v2510_v29 = vsel %vm2492_vm0, %v2477_v35, %v2281_v21  ;;  %v2283_v37 = vpop.permute.xlu1 %2282 }
 0x2a0   : > { %v2543_v33 = vsel %vm2525_vm1, %v2510_v29, %v2317_v53 }
 0x2a1   : > { %v2576_v57 = vsel %vm2558_vm7, %v2543_v33, %v2349_v39 }
 0x2a2   : > { %v2617_v47 = vsel %vm2591_vm6, %v2576_v57, %v2381_v3  ;;  %v2101_v23 = vpop.permute.xlu0 %2100 }
 0x2a3   : > { %v2103_v54 = vpop.permute.xlu1 %2102  ;;  %v2415_v36 = vsel %vm1275_vm9, %v6943_v49, %v2101_v23 }
 0x2a4   : > { %2845 = vmatmul.mubr.bf16.gmra.mrb[32].mxu1 %v2617_v47  ;;  %v2446_v7 = vsel %vm1407_vm13, %v2415_v36, %v2206_v20  ;;  %v2417_v31 = vsel %vm1275_vm9, %v6937_v43, %v2103_v54 }
 0x2a5   : > { %5590 = vmatprep.mubr.msk.bf16.mxu1 %vm1275_vm9, %v7059_v48  ;;  %v2479_v40 = vsel %vm2459_vm15, %v2446_v7, %v2239_v1  ;;  %v2448_v44 = vsel %vm1407_vm13, %v2417_v31, %v2208_v27 }
 0x2a6   : > { %v2512_v58 = vsel %vm2492_vm0, %v2479_v40, %v2283_v37 }
 0x2a7   : > { %v2545_v48 = vsel %vm2525_vm1, %v2512_v58, %v2319_v16 }
 0x2aa   : > { %v2353_v55 = vpop.permute.xlu0 %2352 }
 0x2ab   : > { %v2351_v12 = vpop.permute.xlu1 %2350 }
 0x2ac   : > { %v2578_v39 = vsel %vm2558_vm7, %v2545_v48, %v2351_v12 }
 0x2ae   : > { %v2243_v38 = vpop.permute.xlu0 %2242 }
 0x2af   : > { %v2241_v42 = vpop.permute.xlu1 %2240 }
 0x2b0   : > { %v2481_v1 = vsel %vm2459_vm15, %v2448_v44, %v2241_v42 }
 0x2b2   : > { %v2323_v59 = vpop.permute.xlu0 %2322 }
 0x2b3   : > { %v2321_v9 = vpop.permute.xlu1 %2320 }
 0x2b6   : > { %v2212_v11 = vpop.permute.xlu0 %2211 }
 0x2b7   : > { %v2210_v60 = vpop.permute.xlu1 %2209 }
 0x2ba   : > { %v2383_v49 = vpop.permute.xlu0 %2382 }
 0x2bb   : > { %v2385_v63 = vpop.permute.xlu1 %2384  ;;  %v2620_v25 = vsel %vm2591_vm6, %v2578_v39, %v2383_v49 }
 0x2bc   : > { %2853 = vmatmul.mubr.bf16.gmra.mrb[36].mxu1 %v2620_v25 }
 0x2bd   : > { %5591 = vmatprep.mubr.msk.bf16.mxu1 %vm1275_vm9, %v7053_v14 }
 0x2be   : > { %v2285_v41 = vpop.permute.xlu0 %2284 }
 0x2bf   : > { %v2514_v16 = vsel %vm2492_vm0, %v2481_v1, %v2285_v41  ;;  %v2287_v43 = vpop.permute.xlu1 %2286 }
 0x2c0   : > { %v2547_v26 = vsel %vm2525_vm1, %v2514_v16, %v2321_v9 }
 0x2c1   : > { %v2580_v53 = vsel %vm2558_vm7, %v2547_v26, %v2353_v55 }
 0x2c2   : > { %v2105_v24 = vpop.permute.xlu0 %2104  ;;  %v2623_v17 = vsel %vm2591_vm6, %v2580_v53, %v2385_v63 }
 0x2c3   : > { %v2419_v15 = vsel %vm1275_vm9, %v7024_v13, %v2105_v24  ;;  %v2107_v14 = vpop.permute.xlu1 %2106 }
 0x2c4   : > { %2861 = vmatmul.mubr.bf16.gmra.mrb[40].mxu1 %v2623_v17  ;;  %v2450_v27 = vsel %vm1407_vm13, %v2419_v15, %v2210_v60  ;;  %v2421_v3 = vsel %vm1275_vm9, %v7018_v62, %v2107_v14 }
 0x2c5   : > { %5592 = vmatprep.mubr.msk.bf16.mxu1 %vm1275_vm9, %v7143_v34  ;;  %v2483_v20 = vsel %vm2459_vm15, %v2450_v27, %v2243_v38  ;;  %v2452_v34 = vsel %vm1407_vm13, %v2421_v3, %v2212_v11  ;;  %v5836_v38 = vld [vmem:[%s8729_s5 + $0x8] sm:$0xff]   ;;  %v7342_v11 = vld [vmem:[%s8728_s4] ss:$0 sm:$0xff] }
 0x2c6   : > { %v2516_v46 = vsel %vm2492_vm0, %v2483_v20, %v2287_v43 }
 0x2c7   : > { %v2549_v22 = vsel %vm2525_vm1, %v2516_v46, %v2323_v59 }
 0x2cb   : > { %v2355_v28 = vpop.permute.xlu1 %2354 }
 0x2cc   : > { %v2582_v52 = vsel %vm2558_vm7, %v2549_v22, %v2355_v28 }
 0x2cf   : > { %v2245_v19 = vpop.permute.xlu1 %2244 }
 0x2d0   : > { %v2485_v21 = vsel %vm2459_vm15, %v2452_v34, %v2245_v19  ;;  %v5838_v34 = vld [vmem:[%s8729_s5 + $0x18] sm:$0xff]  }
 0x2d2   : > { %v2387_v13 = vpop.permute.xlu0 %2386 }
 0x2d3   : > { %v2626_v18 = vsel %vm2591_vm6, %v2582_v52, %v2387_v13  ;;  %v2325_v35 = vpop.permute.xlu1 %2324 }
 0x2d4   : > { %2869 = vmatmul.mubr.bf16.gmra.mrb[44].mxu1 %v2626_v18 }
 0x2d5   : > { %5593 = vmatprep.mubr.msk.bf16.mxu1 %vm1275_vm9, %v7185_v56  ;;  %v5835_v56 = vld [vmem:[%s8729_s5] sm:$0xff]  }
 0x2d6   : > { %v2289_v29 = vpop.permute.xlu0 %2288  ;;  %3980 = vmatpush1.bf16.msra.mxu0 %v5835_v56 }
 0x2d7   : > { %v2518_v33 = vsel %vm2492_vm0, %v2485_v21, %v2289_v29  ;;  %v2389_v57 = vpop.permute.xlu1 %2388  ;;  %3981 = vmatprep.subr.bf16.mxu0 %v5946_v0 }
 0x2d8   : > { %v2551_v37 = vsel %vm2525_vm1, %v2518_v33, %v2325_v35 }
 0x2da   : > { %v2357_v62 = vpop.permute.xlu0 %2356  ;;  %3982 = vmatpush1.bf16.msra.mxu0 %v5836_v38 }
 0x2db   : > { %v2584_v47 = vsel %vm2558_vm7, %v2551_v37, %v2357_v62  ;;  %v2214_v54 = vpop.permute.xlu1 %2213  ;;  %3983 = vmatprep.subr.bf16.mxu0 %v5946_v0 }
 0x2dc   : > { %v2629_v23 = vsel %vm2591_vm6, %v2584_v47, %v2389_v57 }
 0x2dd   : > { %2877 = vmatmul.mubr.bf16.gmra.mrb[48].mxu1 %v2629_v23 }
 0x2de   : > { %5594 = vmatprep.mubr.msk.bf16.mxu1 %vm1275_vm9, %v7236_v50  ;;  %v2109_v55 = vpop.permute.xlu0 %2108 }
 0x2df   : > { %v2291_v12 = vpop.permute.xlu1 %2290  ;;  %v2423_v42 = vsel %vm1275_vm9, %v7111_v8, %v2109_v55 }
 0x2e0   : > { %v2454_v50 = vsel %vm1407_vm13, %v2423_v42, %v2214_v54 }
 0x2e2   : > { %v2247_v36 = vpop.permute.xlu0 %2246 }
 0x2e3   : > { %v2487_v59 = vsel %vm2459_vm15, %v2454_v50, %v2247_v36 }
 0x2e4   : > { %v2520_v58 = vsel %vm2492_vm0, %v2487_v59, %v2291_v12 }
 0x2e6   : > { %v2327_v40 = vpop.permute.xlu0 %2326 }
 0x2e7   : > { %v2553_v8 = vsel %vm2525_vm1, %v2520_v58, %v2327_v40  ;;  %v5840_v40 = vld [vmem:[%s8729_s5 + $0x28] sm:$0xff]  }
 0x2eb   : > { %v2359_v7 = vpop.permute.xlu1 %2358 }
 0x2ec   : > { %v2586_v60 = vsel %vm2558_vm7, %v2553_v8, %v2359_v7  ;;  %v5839_v7 = vld [vmem:[%s8729_s5 + $0x20] sm:$0xff]  }
 0x2ef   : > { %v2111_v9 = vpop.permute.xlu1 %2110 }
 0x2f0   : > { %v2425_v16 = vsel %vm1275_vm9, %v7105_v45, %v2111_v9 }
 0x2f2   : > { %v2782_v48 = vpop.f32.mrb[0].mxu1  ;;  %v2391_v31 = vpop.permute.xlu0 %2390 }
 0x2f3   : > { %v2783_v39 = vadd.f32 %v7342_v11, %v2782_v48  ;;  %v2249_v49 = vpop.permute.xlu1 %2248  ;;  %v2784_v63 = vpop.f32.mrb[1].mxu1  ;;  %v2632_v25 = vsel %vm2591_vm6, %v2586_v60, %v2391_v31  ;;  %v5841_v48 = vld [vmem:[%s8729_s5 + $0x30] sm:$0xff]  }
 0x2f4   : > { %v2785_v44 = vpop.f32.mrb[2].mxu1  ;;  %2885 = vmatmul.mubr.bf16.gmra.mrb[52].mxu1 %v2632_v25 }
 0x2f5   : > { %v2786_v1 = vadd.f32 %v7342_v11, %v2785_v44  ;;  %v2787_v41 = vpop.f32.mrb[3].mxu1  ;;  %5595 = vmatprep.mubr.msk.bf16.mxu1 %vm1275_vm9, %v7263_v30  ;;  %v2909_v43 = vmax.f32 %v2783_v39, 0.0  ;;  %v5837_v30 = vld [vmem:[%s8729_s5 + $0x10] sm:$0xff]  }
 0x2f6   : > { %v2216_v26 = vpop.permute.xlu0 %2215  ;;  %3984 = vmatpush1.bf16.msra.mxu0 %v5837_v30 }
 0x2f7   : > { %v2910_v53 = vmax.f32 %v2786_v1, 0.0  ;;  %v2456_v24 = vsel %vm1407_vm13, %v2425_v16, %v2216_v26  ;;  %v2329_v17 = vpop.permute.xlu1 %2328  ;;  %3985 = vmatprep.subr.bf16.mxu0 %v5946_v0  ;;  %v5842_v26 = vld [vmem:[%s8729_s5 + $0x38] sm:$0xff]  }
 0x2f8   : > { %v2489_v14 = vsel %vm2459_vm15, %v2456_v24, %v2249_v49 }
 0x2f9   : > { %v2960_v15 = vpack.c.bf16 %v2910_v53, %v2909_v43 }
 0x2fa   : > { %v2293_v27 = vpop.permute.xlu0 %2292  ;;  %3986 = vmatpush1.bf16.msra.mxu0 %v5838_v34 }
 0x2fb   : > { %v2977_v20 = vshrl.u32 %v2960_v15, 16  ;;  %v2522_v28 = vsel %vm2492_vm0, %v2489_v14, %v2293_v27  ;;  %v2393_v46 = vpop.permute.xlu1 %2392  ;;  %v2980_v45 = vshll.u32 %v2960_v15, 16  ;;  %3987 = vmatprep.subr.bf16.mxu0 %v5946_v0  ;;  %v5843_v15 = vld [vmem:[%s8729_s5 + $0x40] sm:$0xff]  }
 0x2fc   : > { %v2555_v22 = vsel %vm2525_vm1, %v2522_v28, %v2329_v17 }
 0x2fd   : > { %v2979_v19 = vrot.slane %v2977_v20, 7 }
 0x2fe   : > { %v2361_v3 = vpop.permute.xlu0 %2360  ;;  %3988 = vmatpush1.bf16.msra.mxu0 %v5839_v7 }
 0x2ff   : > { %v2982_v52 = vor.u32 %v2980_v45, %v2979_v19  ;;  %v3136_v13 = vsel %vm6070_vm2, %v2979_v19, 0  ;;  %v2588_v18 = vsel %vm2558_vm7, %v2555_v22, %v2361_v3  ;;  %v2218_v21 = vpop.permute.xlu1 %2217  ;;  %3989 = vmatprep.subr.bf16.mxu0 %v5946_v0 }
 0x300   : > { %v2635_v35 = vsel %vm2591_vm6, %v2588_v18, %v2393_v46  ;;  %v3393_v62 = vrot.slane %v3136_v13, 1  ;;  %v3160_v47 = vshll.u32 %v3136_v13, 16 }
 0x301   : > { %2893 = vmatmul.mubr.bf16.gmra.mrb[56].mxu1 %v2635_v35  ;;  %v7370_v29 = vsel %vm6070_vm2, 0, %v2982_v52 }
 0x302   : > { %3468 = vrot.lane.b32.xlu1 %v7370_v29, %s8760_s29  ;;  %v2113_v33 = vpop.permute.xlu0 %2112  ;;  %v3392_v37 = vrot.slane %v7370_v29, 1  ;;  %v3155_v57 = vshll.u32 %v7370_v29, 16  ;;  %5596 = vmatprep.mubr.msk.bf16.mxu1 %vm1275_vm9, %v6087_v10  ;;  %v3153_v55 = vshrl.u32 %v7370_v29, 16  ;;  %v3162_v42 = vrot.slane %v3160_v47, 1 }
 0x303   : > { %v2427_v23 = vsel %vm1275_vm9, %v7196_v61, %v2113_v33  ;;  %v2295_v61 = vpop.permute.xlu1 %2294  ;;  %3990 = vmatpush1.bf16.msra.mxu0 %v5840_v40 }
 0x304   : > { %v3394_v54 = vsel %vm886_vm3, %v3392_v37, %v3393_v62  ;;  %v3157_v56 = vrot.slane %v3155_v57, 1  ;;  %v2458_v12 = vsel %vm1407_vm13, %v2427_v23, %v2218_v21  ;;  %3991 = vmatprep.subr.bf16.mxu0 %v5946_v0 }
 0x306   : > { %3548 = vrot.lane.b32.xlu1 %v3394_v54, %s8773_s13  ;;  %v2251_v36 = vpop.permute.xlu0 %2250  ;;  %v3158_v38 = vor.u32 %v3157_v56, %v3153_v55 }
 0x307   : > { %v2491_v50 = vsel %vm2459_vm15, %v2458_v12, %v2251_v36  ;;  %v7398_v60 = vpop.permute.xlu1 %2362  ;;  %3992 = vmatpush1.bf16.msra.mxu0 %v5841_v48 }
 0x308   : > { %v3163_v59 = vsel %vm629_vm4, %v3158_v38, %v3162_v42  ;;  %v2524_v9 = vsel %vm2492_vm0, %v2491_v50, %v2295_v61  ;;  %3993 = vmatprep.subr.bf16.mxu0 %v5946_v0 }
 0x309   : > { %3512 = vrot.lane.b32.xlu0 %v3163_v59, %s5959_s15 }
 0x30a   : > { %3437 = vrot.lane.b32.xlu1 %v3394_v54, %s8758_s30  ;;  %v2331_v58 = vpop.permute.xlu0 %2330  ;;  %s8775_s30 = smov 96  }
 0x30b   : > { %v2557_v8 = vsel %vm2525_vm1, %v2524_v9, %v2331_v58  ;;  %3994 = vmatpush1.bf16.msra.mxu0 %v5842_v26 }
 0x30c   : > { %v2590_v31 = vsel %vm2558_vm7, %v2557_v8, %v7398_v60  ;;  %3995 = vmatprep.subr.bf16.mxu0 %v5946_v0 }
 0x30d   : > { %3332 = vrot.lane.b32.xlu0 %v3163_v59, %s8774_s12 }
 0x30e   : > { %v7407_v39 = vpop.permute.xlu0 %2394 }
 0x30f   : > { %v2790_v49 = vpop.f32.mrb[4].mxu1  ;;  %v2638_v63 = vsel %vm2591_vm6, %v2590_v31, %v7407_v39  ;;  %3996 = vmatpush1.bf16.msra.mxu0 %v5843_v15 }
 0x310   : > { %v2791_v25 = vadd.f32 %v7342_v11, %v2790_v49  ;;  %v2792_v44 = vpop.f32.mrb[5].mxu1  ;;  %2901 = vmatmul.mubr.bf16.gmra.mrb[60].mxu1 %v2638_v63 }
 0x311   : > { %v2793_v1 = vpop.f32.mrb[6].mxu1 }
 0x312   : > { %v2794_v41 = vadd.f32 %v7342_v11, %v2793_v1  ;;  %v2795_v16 = vpop.f32.mrb[7].mxu1  ;;  %v2911_v43 = vmax.f32 %v2791_v25, 0.0 }
 0x314   : > { %v2912_v53 = vmax.f32 %v2794_v41, 0.0 }
 0x316   : > { %v2961_v24 = vpack.c.bf16 %v2912_v53, %v2911_v43 }
 0x317   : > { %v2798_v17 = vpop.f32.mrb[8].mxu1 }
 0x318   : > { %v2984_v14 = vshrl.u32 %v2961_v24, 16  ;;  %v2799_v27 = vadd.f32 %v7342_v11, %v2798_v17  ;;  %v2800_v20 = vpop.f32.mrb[9].mxu1  ;;  %v2987_v30 = vshll.u32 %v2961_v24, 16 }
 0x319   : > { %v2801_v28 = vpop.f32.mrb[10].mxu1 }
 0x31a   : > { %v2986_v46 = vrot.slane %v2984_v14, 7  ;;  %v2802_v19 = vadd.f32 %v7342_v11, %v2801_v28  ;;  %v2803_v45 = vpop.f32.mrb[11].mxu1  ;;  %v2913_v3 = vmax.f32 %v2799_v27, 0.0 }
 0x31c   : > { %v2989_v22 = vor.u32 %v2987_v30, %v2986_v46  ;;  %v3137_v0 = vsel %vm6070_vm2, %v2986_v46, 0  ;;  %v2914_v52 = vmax.f32 %v2802_v19, 0.0 }
 0x31d   : > { %v3396_v35 = vrot.slane %v3137_v0, 1  ;;  %v3172_v33 = vshll.u32 %v3137_v0, 16 }
 0x31e   : > { %v2962_v13 = vpack.c.bf16 %v2914_v52, %v2913_v3  ;;  %v7427_v18 = vsel %vm6070_vm2, 0, %v2989_v22 }
 0x31f   : > { %3580 = vrot.lane.b32.xlu0 %v7427_v18, %s8775_s30  ;;  %v3395_v34 = vrot.slane %v7427_v18, 1  ;;  %v3167_v21 = vshll.u32 %v7427_v18, 16  ;;  %v3165_v57 = vshrl.u32 %v7427_v18, 16  ;;  %v3174_v56 = vrot.slane %v3172_v33, 1 }
 0x320   : > { %v2991_v37 = vshrl.u32 %v2962_v13, 16  ;;  %v2994_v54 = vshll.u32 %v2962_v13, 16 }
 0x321   : > { %v3397_v62 = vsel %vm886_vm3, %v3395_v34, %v3396_v35  ;;  %v3169_v47 = vrot.slane %v3167_v21, 1 }
 0x322   : > { %v2993_v23 = vrot.slane %v2991_v37, 7  ;;  %5607 = vmatprep.mubr.msk.bf16.mxu0 %vm1275_vm9, %v3397_v62 }
 0x323   : > { %3470 = vrot.lane.b32.xlu0 %v7427_v18, %s8760_s29  ;;  %v3170_v55 = vor.u32 %v3169_v47, %v3165_v57 }
 0x324   : > { %v2996_v12 = vor.u32 %v2994_v54, %v2993_v23  ;;  %v3138_v36 = vsel %vm6070_vm2, %v2993_v23, 0 }
 0x325   : > { %v3175_v38 = vsel %vm629_vm4, %v3170_v55, %v3174_v56  ;;  %v3184_v61 = vshll.u32 %v3138_v36, 16  ;;  %v3399_v43 = vrot.slane %v3138_v36, 1 }
 0x326   : > { %v7443_v42 = vsel %vm6070_vm2, 0, %v2996_v12  ;;  %3610 = vrot.lane.b32.xlu1 %v3175_v38, %s8776_s24 }
 0x327   : > { %3550 = vrot.lane.b32.xlu0 %v3397_v62, %s8773_s13  ;;  %v3179_v7 = vshll.u32 %v7443_v42, 16  ;;  %v3177_v50 = vshrl.u32 %v7443_v42, 16  ;;  %v3186_v9 = vrot.slane %v3184_v61, 1  ;;  %v3398_v41 = vrot.slane %v7443_v42, 1 }
 0x329   : > { %v3181_v59 = vrot.slane %v3179_v7, 1  ;;  %v7465_v14 = vsel %vm886_vm3, %v3398_v41, %v3399_v43 }
 0x32a   : > { %3514 = vrot.lane.b32.xlu1 %v3175_v38, %s5959_s15 }
 0x32b   : > { %3439 = vrot.lane.b32.xlu0 %v3397_v62, %s8777_s16  ;;  %v3182_v40 = vor.u32 %v3181_v59, %v3177_v50 }
 0x32d   : > { %v3187_v58 = vsel %vm629_vm4, %v3182_v40, %v3186_v9 }
 0x32e   : > { %3334 = vrot.lane.b32.xlu1 %v3175_v38, %s8774_s12 }
 0x32f   : > { %3612 = vrot.lane.b32.xlu0 %v3187_v58, %s8776_s24  ;;  %v2806_v8 = vpop.f32.mrb[12].mxu1 }
 0x330   : > { %v2807_v48 = vadd.f32 %v7342_v11, %v2806_v8  ;;  %v2808_v31 = vpop.f32.mrb[13].mxu1 }
 0x331   : > { %v2809_v49 = vpop.f32.mrb[14].mxu1 }
 0x332   : > { %v2810_v63 = vadd.f32 %v7342_v11, %v2809_v49  ;;  %3582 = vrot.lane.b32.xlu1 %v7443_v42, %s8775_s30  ;;  %v2811_v25 = vpop.f32.mrb[15].mxu1  ;;  %v2915_v44 = vmax.f32 %v2807_v48, 0.0 }
 0x333   : > { %3516 = vrot.lane.b32.xlu0 %v3187_v58, %s5959_s15 }
 0x334   : > { %v2916_v1 = vmax.f32 %v2810_v63, 0.0 }
 0x336   : > { %v2963_v16 = vpack.c.bf16 %v2916_v1, %v2915_v44  ;;  %3472 = vrot.lane.b32.xlu1 %v7443_v42, %s8760_s29 }
 0x337   : > { %3336 = vrot.lane.b32.xlu0 %v3187_v58, %s8774_s12  ;;  %v2814_v26 = vpop.f32.mrb[16].mxu1 }
 0x338   : > { %v2998_v53 = vshrl.u32 %v2963_v16, 16  ;;  %v2815_v24 = vadd.f32 %v7342_v11, %v2814_v26  ;;  %v2816_v17 = vpop.f32.mrb[17].mxu1  ;;  %v3001_v20 = vshll.u32 %v2963_v16, 16 }
 0x339   : > { %v2817_v15 = vpop.f32.mrb[18].mxu1 }
 0x33a   : > { %v3000_v27 = vrot.slane %v2998_v53, 7  ;;  %v2818_v28 = vadd.f32 %v7342_v11, %v2817_v15  ;;  %3552 = vrot.lane.b32.xlu1 %v7465_v14, %s8773_s13  ;;  %v2819_v46 = vpop.f32.mrb[19].mxu1  ;;  %v2917_v45 = vmax.f32 %v2815_v24, 0.0 }
 0x33c   : > { %v3003_v30 = vor.u32 %v3001_v20, %v3000_v27  ;;  %v3139_v19 = vsel %vm6070_vm2, %v3000_v27, 0  ;;  %v2918_v22 = vmax.f32 %v2818_v28, 0.0 }
 0x33d   : > { %v3196_v13 = vshll.u32 %v3139_v19, 16  ;;  %v3402_v55 = vrot.slane %v3139_v19, 1 }
 0x33e   : > { %v2964_v0 = vpack.c.bf16 %v2918_v22, %v2917_v45  ;;  %3441 = vrot.lane.b32.xlu1 %v7465_v14, %s8777_s16  ;;  %v7476_v3 = vsel %vm6070_vm2, 0, %v3003_v30 }
 0x33f   : > { %3584 = vrot.lane.b32.xlu0 %v7476_v3, %s8775_s30  ;;  %v3191_v52 = vshll.u32 %v7476_v3, 16  ;;  %v3189_v35 = vshrl.u32 %v7476_v3, 16  ;;  %v3401_v62 = vrot.slane %v7476_v3, 1  ;;  %v3198_v47 = vrot.slane %v3196_v13, 1 }
 0x340   : > { %v3005_v34 = vshrl.u32 %v2964_v0, 16  ;;  %v3008_v37 = vshll.u32 %v2964_v0, 16 }
 0x341   : > { %v3193_v21 = vrot.slane %v3191_v52, 1  ;;  %v7494_v36 = vsel %vm886_vm3, %v3401_v62, %v3402_v55 }
 0x342   : > { %v3007_v33 = vrot.slane %v3005_v34, 7 }
 0x343   : > { %3474 = vrot.lane.b32.xlu0 %v7476_v3, %s8760_s29  ;;  %v3194_v57 = vor.u32 %v3193_v21, %v3189_v35 }
 0x344   : > { %v3010_v23 = vor.u32 %v3008_v37, %v3007_v33  ;;  %v3140_v54 = vsel %vm6070_vm2, %v3007_v33, 0 }
 0x345   : > { %v3199_v56 = vsel %vm629_vm4, %v3194_v57, %v3198_v47  ;;  %v3208_v7 = vshll.u32 %v3140_v54, 16  ;;  %v3405_v26 = vrot.slane %v3140_v54, 1 }
 0x346   : > { %v7490_v12 = vsel %vm6070_vm2, 0, %v3010_v23  ;;  %3614 = vrot.lane.b32.xlu1 %v3199_v56, %s8776_s24 }
 0x347   : > { %3554 = vrot.lane.b32.xlu0 %v7494_v36, %s8773_s13  ;;  %v3203_v38 = vshll.u32 %v7490_v12, 16  ;;  %v3201_v61 = vshrl.u32 %v7490_v12, 16  ;;  %v3210_v40 = vrot.slane %v3208_v7, 1  ;;  %v3404_v1 = vrot.slane %v7490_v12, 1 }
 0x349   : > { %v3205_v50 = vrot.slane %v3203_v38, 1  ;;  %v7517_v15 = vsel %vm886_vm3, %v3404_v1, %v3405_v26 }
 0x34a   : > { %3518 = vrot.lane.b32.xlu1 %v3199_v56, %s5959_s15 }
 0x34b   : > { %3443 = vrot.lane.b32.xlu0 %v7494_v36, %s8777_s16  ;;  %v3206_v59 = vor.u32 %v3205_v50, %v3201_v61 }
 0x34d   : > { %v3211_v9 = vsel %vm629_vm4, %v3206_v59, %v3210_v40 }
 0x34e   : > { %3338 = vrot.lane.b32.xlu1 %v3199_v56, %s8774_s12 }
 0x34f   : > { %3616 = vrot.lane.b32.xlu0 %v3211_v9, %s8776_s24  ;;  %v2822_v58 = vpop.f32.mrb[20].mxu1 }
 0x350   : > { %v2823_v8 = vadd.f32 %v7342_v11, %v2822_v58  ;;  %v2824_v48 = vpop.f32.mrb[21].mxu1 }
 0x351   : > { %v2825_v31 = vpop.f32.mrb[22].mxu1 }
 0x352   : > { %v2826_v49 = vadd.f32 %v7342_v11, %v2825_v31  ;;  %3586 = vrot.lane.b32.xlu1 %v7490_v12, %s8775_s30  ;;  %v2827_v63 = vpop.f32.mrb[23].mxu1  ;;  %v2919_v25 = vmax.f32 %v2823_v8, 0.0 }
 0x353   : > { %3520 = vrot.lane.b32.xlu0 %v3211_v9, %s5959_s15 }
 0x354   : > { %v2920_v44 = vmax.f32 %v2826_v49, 0.0 }
 0x356   : > { %v2965_v41 = vpack.c.bf16 %v2920_v44, %v2919_v25  ;;  %3476 = vrot.lane.b32.xlu1 %v7490_v12, %s8760_s29 }
 0x357   : > { %3340 = vrot.lane.b32.xlu0 %v3211_v9, %s8774_s12  ;;  %v2830_v16 = vpop.f32.mrb[24].mxu1 }
 0x358   : > { %v3012_v43 = vshrl.u32 %v2965_v41, 16  ;;  %v2831_v53 = vadd.f32 %v7342_v11, %v2830_v16  ;;  %v2832_v24 = vpop.f32.mrb[25].mxu1  ;;  %v3015_v20 = vshll.u32 %v2965_v41, 16 }
 0x359   : > { %v2833_v17 = vpop.f32.mrb[26].mxu1 }
 0x35a   : > { %v3014_v27 = vrot.slane %v3012_v43, 7  ;;  %v2834_v28 = vadd.f32 %v7342_v11, %v2833_v17  ;;  %3556 = vrot.lane.b32.xlu1 %v7517_v15, %s8773_s13  ;;  %v2835_v46 = vpop.f32.mrb[27].mxu1  ;;  %v2921_v45 = vmax.f32 %v2831_v53, 0.0 }
 0x35c   : > { %v3017_v30 = vor.u32 %v3015_v20, %v3014_v27  ;;  %v3141_v19 = vsel %vm6070_vm2, %v3014_v27, 0  ;;  %v2922_v22 = vmax.f32 %v2834_v28, 0.0 }
 0x35d   : > { %v3220_v34 = vshll.u32 %v3141_v19, 16  ;;  %v3408_v56 = vrot.slane %v3141_v19, 1 }
 0x35e   : > { %v2966_v0 = vpack.c.bf16 %v2922_v22, %v2921_v45  ;;  %3445 = vrot.lane.b32.xlu1 %v7517_v15, %s8777_s16  ;;  %v7528_v52 = vsel %vm6070_vm2, 0, %v3017_v30 }
 0x35f   : > { %3588 = vrot.lane.b32.xlu0 %v7528_v52, %s8775_s30  ;;  %v3215_v13 = vshll.u32 %v7528_v52, 16  ;;  %v3213_v21 = vshrl.u32 %v7528_v52, 16  ;;  %v3407_v57 = vrot.slane %v7528_v52, 1  ;;  %v3222_v23 = vrot.slane %v3220_v34, 1 }
 0x360   : > { %v3019_v35 = vshrl.u32 %v2966_v0, 16  ;;  %v3022_v62 = vshll.u32 %v2966_v0, 16 }
 0x361   : > { %v3217_v33 = vrot.slane %v3215_v13, 1  ;;  %v7546_v61 = vsel %vm886_vm3, %v3407_v57, %v3408_v56 }
 0x362   : > { %v3021_v37 = vrot.slane %v3019_v35, 7 }
 0x363   : > { %3478 = vrot.lane.b32.xlu0 %v7528_v52, %s8760_s29  ;;  %v3218_v47 = vor.u32 %v3217_v33, %v3213_v21 }
 0x364   : > { %v3024_v54 = vor.u32 %v3022_v62, %v3021_v37  ;;  %v3142_v55 = vsel %vm6070_vm2, %v3021_v37, 0 }
 0x365   : > { %v3223_v38 = vsel %vm629_vm4, %v3218_v47, %v3222_v23  ;;  %v3232_v59 = vshll.u32 %v3142_v55, 16  ;;  %v3411_v24 = vrot.slane %v3142_v55, 1 }
 0x366   : > { %v7542_v7 = vsel %vm6070_vm2, 0, %v3024_v54  ;;  %3618 = vrot.lane.b32.xlu1 %v3223_v38, %s8776_s24 }
 0x367   : > { %3558 = vrot.lane.b32.xlu0 %v7546_v61, %s8773_s13  ;;  %v3227_v50 = vshll.u32 %v7542_v7, 16  ;;  %v3225_v40 = vshrl.u32 %v7542_v7, 16  ;;  %v3234_v8 = vrot.slane %v3232_v59, 1  ;;  %v3410_v26 = vrot.slane %v7542_v7, 1 }
 0x369   : > { %v3229_v9 = vrot.slane %v3227_v50, 1  ;;  %v7569_v46 = vsel %vm886_vm3, %v3410_v26, %v3411_v24 }
 0x36a   : > { %3522 = vrot.lane.b32.xlu1 %v3223_v38, %s5959_s15 }
 0x36b   : > { %3447 = vrot.lane.b32.xlu0 %v7546_v61, %s8777_s16  ;;  %v3230_v58 = vor.u32 %v3229_v9, %v3225_v40 }
 0x36d   : > { %v3235_v48 = vsel %vm629_vm4, %v3230_v58, %v3234_v8 }
 0x36e   : > { %3342 = vrot.lane.b32.xlu1 %v3223_v38, %s8774_s12 }
 0x36f   : > { %3620 = vrot.lane.b32.xlu0 %v3235_v48, %s8776_s24  ;;  %v2838_v31 = vpop.f32.mrb[28].mxu1 }
 0x370   : > { %v2839_v49 = vadd.f32 %v7342_v11, %v2838_v31  ;;  %v2840_v63 = vpop.f32.mrb[29].mxu1 }
 0x371   : > { %v2841_v25 = vpop.f32.mrb[30].mxu1 }
 0x372   : > { %v2842_v44 = vadd.f32 %v7342_v11, %v2841_v25  ;;  %3590 = vrot.lane.b32.xlu1 %v7542_v7, %s8775_s30  ;;  %v2843_v1 = vpop.f32.mrb[31].mxu1  ;;  %v2923_v41 = vmax.f32 %v2839_v49, 0.0 }
 0x373   : > { %3524 = vrot.lane.b32.xlu0 %v3235_v48, %s5959_s15 }
 0x374   : > { %v2924_v16 = vmax.f32 %v2842_v44, 0.0  ;;  %v3469_v25 = vpop.permute.xlu1 %3468 }
 0x376   : > { %v2967_v43 = vpack.c.bf16 %v2924_v16, %v2923_v41  ;;  %3480 = vrot.lane.b32.xlu1 %v7542_v7, %s8760_s29 }
 0x377   : > { %3344 = vrot.lane.b32.xlu0 %v3235_v48, %s8774_s12  ;;  %v2846_v53 = vpop.f32.mrb[32].mxu1 }
 0x378   : > { %v3026_v17 = vshrl.u32 %v2967_v43, 16  ;;  %v2847_v27 = vadd.f32 %v7342_v11, %v2846_v53  ;;  %v2848_v20 = vpop.f32.mrb[33].mxu1  ;;  %v3029_v19 = vshll.u32 %v2967_v43, 16  ;;  %v3549_v53 = vpop.permute.xlu1 %3548 }
 0x379   : > { %v2849_v28 = vpop.f32.mrb[34].mxu1 }
 0x37a   : > { %v3028_v30 = vrot.slane %v3026_v17, 7  ;;  %v2850_v45 = vadd.f32 %v7342_v11, %v2849_v28  ;;  %3560 = vrot.lane.b32.xlu1 %v7569_v46, %s8773_s13  ;;  %v2851_v22 = vpop.f32.mrb[35].mxu1  ;;  %v2925_v34 = vmax.f32 %v2847_v27, 0.0 }
 0x37b   : > { %v3513_v31 = vpop.permute.xlu0 %3512 }
 0x37c   : > { %v3031_v0 = vor.u32 %v3029_v19, %v3028_v30  ;;  %v3143_v13 = vsel %vm6070_vm2, %v3028_v30, 0  ;;  %v2926_v35 = vmax.f32 %v2850_v45, 0.0  ;;  %v3701_v45 = vsel %vm2459_vm15, %v6947_v32, %v3469_v25 }
 0x37d   : > { %v3244_v62 = vshll.u32 %v3143_v13, 16  ;;  %v3414_v9 = vrot.slane %v3143_v13, 1  ;;  %v3733_v22 = vsel %vm2492_vm0, %v3701_v45, %v3513_v31 }
 0x37e   : > { %v2968_v21 = vpack.c.bf16 %v2926_v35, %v2925_v34  ;;  %3449 = vrot.lane.b32.xlu1 %v7569_v46, %s8777_s16  ;;  %v7580_v33 = vsel %vm6070_vm2, 0, %v3031_v0  ;;  %v3438_v0 = vpop.permute.xlu1 %3437 }
 0x37f   : > { %3592 = vrot.lane.b32.xlu0 %v7580_v33, %s8775_s30  ;;  %v3239_v37 = vshll.u32 %v7580_v33, 16  ;;  %v3237_v47 = vshrl.u32 %v7580_v33, 16  ;;  %v3413_v56 = vrot.slane %v7580_v33, 1  ;;  %v3246_v50 = vrot.slane %v3244_v62, 1  ;;  %v3333_v26 = vpop.permute.xlu0 %3332 }
 0x380   : > { %v3033_v57 = vshrl.u32 %v2968_v21, 16  ;;  %v3036_v55 = vshll.u32 %v2968_v21, 16  ;;  %v3765_v62 = vsel %vm2525_vm1, %v3733_v22, %v3549_v53 }
 0x381   : > { %v3241_v23 = vrot.slane %v3239_v37, 1  ;;  %v7598_v48 = vsel %vm886_vm3, %v3413_v56, %v3414_v9 }
 0x382   : > { %v3035_v54 = vrot.slane %v3033_v57, 7 }
 0x383   : > { %3482 = vrot.lane.b32.xlu0 %v7580_v33, %s8760_s29  ;;  %v3242_v38 = vor.u32 %v3241_v23, %v3237_v47 }
 0x384   : > { %v3038_v59 = vor.u32 %v3036_v55, %v3035_v54  ;;  %v3144_v40 = vsel %vm6070_vm2, %v3035_v54, 0 }
 0x385   : > { %v3247_v58 = vsel %vm629_vm4, %v3242_v38, %v3246_v50  ;;  %v3256_v63 = vshll.u32 %v3144_v40, 16  ;;  %v3417_v32 = vrot.slane %v3144_v40, 1 }
 0x386   : > { %v7594_v8 = vsel %vm6070_vm2, 0, %v3038_v59  ;;  %3622 = vrot.lane.b32.xlu1 %v3247_v58, %s8776_s24 }
 0x387   : > { %3562 = vrot.lane.b32.xlu0 %v7598_v48, %s8773_s13  ;;  %v3251_v49 = vshll.u32 %v7594_v8, 16  ;;  %v3249_v44 = vshrl.u32 %v7594_v8, 16  ;;  %v3258_v16 = vrot.slane %v3256_v63, 1  ;;  %v3416_v21 = vrot.slane %v7594_v8, 1 }
 0x388   : > { %v3641_v63 = vsel %vm1275_vm9, %v7370_v29, %v3333_v26 }
 0x389   : > { %v3253_v1 = vrot.slane %v3251_v49, 1  ;;  %v7627_v9 = vsel %vm886_vm3, %v3416_v21, %v3417_v32  ;;  %v3671_v29 = vsel %vm1407_vm13, %v3641_v63, %v3438_v0 }
 0x38a   : > { %3526 = vrot.lane.b32.xlu1 %v3247_v58, %s5959_s15 }
 0x38b   : > { %3451 = vrot.lane.b32.xlu0 %v7598_v48, %s8777_s16  ;;  %v3254_v41 = vor.u32 %v3253_v1, %v3249_v44 }
 0x38d   : > { %v3259_v43 = vsel %vm629_vm4, %v3254_v41, %v3258_v16 }
 0x38e   : > { %3346 = vrot.lane.b32.xlu1 %v3247_v58, %s8774_s12 }
 0x38f   : > { %3624 = vrot.lane.b32.xlu0 %v3259_v43, %s8776_s24  ;;  %v2854_v24 = vpop.f32.mrb[36].mxu1 }
 0x390   : > { %v2855_v17 = vadd.f32 %v7342_v11, %v2854_v24  ;;  %v2856_v27 = vpop.f32.mrb[37].mxu1 }
 0x391   : > { %v2857_v20 = vpop.f32.mrb[38].mxu1  ;;  %v3581_v28 = vpop.permute.xlu0 %3580 }
 0x392   : > { %v2858_v30 = vadd.f32 %v7342_v11, %v2857_v20  ;;  %3594 = vrot.lane.b32.xlu1 %v7594_v8, %s8775_s30  ;;  %v2859_v19 = vpop.f32.mrb[39].mxu1  ;;  %v2927_v13 = vmax.f32 %v2855_v17, 0.0  ;;  %v3797_v23 = vsel %vm2558_vm7, %v3765_v62, %v3581_v28 }
 0x393   : > { %3528 = vrot.lane.b32.xlu0 %v3259_v43, %s5959_s15 }
 0x394   : > { %v2928_v34 = vmax.f32 %v2858_v30, 0.0 }
 0x395   : > { %v3471_v35 = vpop.permute.xlu0 %3470 }
 0x396   : > { %v2969_v37 = vpack.c.bf16 %v2928_v34, %v2927_v13  ;;  %3484 = vrot.lane.b32.xlu1 %v7594_v8, %s8760_s29  ;;  %v3703_v17 = vsel %vm2459_vm15, %v3671_v29, %v3471_v35 }
 0x397   : > { %3348 = vrot.lane.b32.xlu0 %v3259_v43, %s8774_s12  ;;  %v2862_v57 = vpop.f32.mrb[40].mxu1 }
 0x398   : > { %v3040_v47 = vshrl.u32 %v2969_v37, 16  ;;  %v2863_v54 = vadd.f32 %v7342_v11, %v2862_v57  ;;  %v3611_v55 = vpop.permute.xlu1 %3610  ;;  %v2864_v56 = vpop.f32.mrb[41].mxu1  ;;  %v3043_v31 = vshll.u32 %v2969_v37, 16 }
 0x399   : > { %v3828_v38 = vsel %vm2591_vm6, %v3797_v23, %v3611_v55  ;;  %v2865_v50 = vpop.f32.mrb[42].mxu1  ;;  %v3551_v59 = vpop.permute.xlu0 %3550 }
 0x39a   : > { %v3042_v58 = vrot.slane %v3040_v47, 7  ;;  %v2866_v49 = vadd.f32 %v7342_v11, %v2865_v50  ;;  %3564 = vrot.lane.b32.xlu1 %v7627_v9, %s8773_s13  ;;  %v2867_v40 = vpop.f32.mrb[43].mxu1  ;;  %4012 = vmatmul.mubr.bf16.vlgmr.msra.gmra.mrb[32].mxu0 %v3828_v38  ;;  %v2929_v1 = vmax.f32 %v2863_v54, 0.0 }
 0x39b   : > { %5608 = vmatprep.mubr.msk.bf16.mxu0 %vm1275_vm9, %v7465_v14 }
 0x39c   : > { %v3045_v25 = vor.u32 %v3043_v31, %v3042_v58  ;;  %v3145_v44 = vsel %vm6070_vm2, %v3042_v58, 0  ;;  %v2930_v41 = vmax.f32 %v2866_v49, 0.0  ;;  %v3515_v16 = vpop.permute.xlu1 %3514 }
 0x39d   : > { %v7638_v43 = vpop.permute.xlu0 %3439  ;;  %v3268_v26 = vshll.u32 %v3145_v44, 16  ;;  %v3735_v28 = vsel %vm2492_vm0, %v3703_v17, %v3515_v16  ;;  %v3420_v32 = vrot.slane %v3145_v44, 1 }
 0x39e   : > { %v2970_v53 = vpack.c.bf16 %v2930_v41, %v2929_v1  ;;  %3453 = vrot.lane.b32.xlu1 %v7627_v9, %s8777_s16  ;;  %v7644_v24 = vsel %vm6070_vm2, 0, %v3045_v25  ;;  %v3767_v57 = vsel %vm2525_vm1, %v3735_v28, %v3551_v59 }
 0x39f   : > { %3596 = vrot.lane.b32.xlu0 %v7644_v24, %s8775_s30  ;;  %v3263_v14 = vshll.u32 %v7644_v24, 16  ;;  %v3261_v19 = vshrl.u32 %v7644_v24, 16  ;;  %v3419_v0 = vrot.slane %v7644_v24, 1  ;;  %v3270_v21 = vrot.slane %v3268_v26, 1 }
 0x3a0   : > { %v3047_v27 = vshrl.u32 %v2970_v53, 16  ;;  %v3335_v20 = vpop.permute.xlu1 %3334  ;;  %v3050_v13 = vshll.u32 %v2970_v53, 16 }
 0x3a1   : > { %v3613_v30 = vpop.permute.xlu0 %3612  ;;  %v3265_v45 = vrot.slane %v3263_v14, 1  ;;  %v7669_v55 = vsel %vm886_vm3, %v3419_v0, %v3420_v32  ;;  %v3643_v28 = vsel %vm1275_vm9, %v7427_v18, %v3335_v20 }
 0x3a2   : > { %v3049_v22 = vrot.slane %v3047_v27, 7  ;;  %v3673_v0 = vsel %vm1407_vm13, %v3643_v28, %v7638_v43 }
 0x3a3   : > { %3486 = vrot.lane.b32.xlu0 %v7644_v24, %s8760_s29  ;;  %v3266_v34 = vor.u32 %v3265_v45, %v3261_v19 }
 0x3a4   : > { %v3052_v37 = vor.u32 %v3050_v13, %v3049_v22  ;;  %v7658_v35 = vsel %vm6070_vm2, %v3049_v22, 0  ;;  %v3583_v62 = vpop.permute.xlu1 %3582 }
 0x3a5   : > { %v3799_v47 = vsel %vm2558_vm7, %v3767_v57, %v3583_v62  ;;  %v3271_v23 = vsel %vm629_vm4, %v3266_v34, %v3270_v21  ;;  %v3517_v38 = vpop.permute.xlu0 %3516  ;;  %v3280_v58 = vshll.u32 %v7658_v35, 16 }
 0x3a6   : > { %v7665_v54 = vsel %vm6070_vm2, 0, %v3052_v37  ;;  %3626 = vrot.lane.b32.xlu1 %v3271_v23, %s8776_s24  ;;  %v3831_v56 = vsel %vm2591_vm6, %v3799_v47, %v3613_v30 }
 0x3a7   : > { %3566 = vrot.lane.b32.xlu0 %v7669_v55, %s8773_s13  ;;  %v2870_v50 = vpop.f32.mrb[44].mxu1  ;;  %4020 = vmatmul.mubr.bf16.gmra.mrb[36].mxu0 %v3831_v56  ;;  %v3275_v59 = vshll.u32 %v7665_v54, 16  ;;  %v3273_v25 = vshrl.u32 %v7665_v54, 16  ;;  %v3282_v53 = vrot.slane %v3280_v58, 1  ;;  %v3422_v43 = vrot.slane %v7665_v54, 1 }
 0x3a8   : > { %v2871_v31 = vadd.f32 %v7342_v11, %v2870_v50  ;;  %v3473_v49 = vpop.permute.xlu1 %3472  ;;  %v2872_v40 = vpop.f32.mrb[45].mxu1  ;;  %5609 = vmatprep.mubr.msk.bf16.mxu0 %vm1275_vm9, %v7494_v36 }
 0x3a9   : > { %v2873_v63 = vpop.f32.mrb[46].mxu1  ;;  %v3277_v44 = vrot.slane %v3275_v59, 1  ;;  %v3337_v26 = vpop.permute.xlu0 %3336  ;;  %v3705_v62 = vsel %vm2459_vm15, %v3673_v0, %v3473_v49 }
 0x3aa   : > { %v2874_v1 = vadd.f32 %v7342_v11, %v2873_v63  ;;  %3530 = vrot.lane.b32.xlu1 %v3271_v23, %s5959_s15  ;;  %v2875_v41 = vpop.f32.mrb[47].mxu1  ;;  %v2931_v29 = vmax.f32 %v2871_v31, 0.0  ;;  %v3737_v50 = vsel %vm2492_vm0, %v3705_v62, %v3517_v38  ;;  %v3423_v31 = vrot.slane %v7658_v35, 1 }
 0x3ab   : > { %3455 = vrot.lane.b32.xlu0 %v7669_v55, %s8777_s16  ;;  %v3278_v16 = vor.u32 %v3277_v44, %v3273_v25 }
 0x3ac   : > { %v2932_v14 = vmax.f32 %v2874_v1, 0.0  ;;  %v3553_v27 = vpop.permute.xlu1 %3552  ;;  %v7713_v1 = vsel %vm886_vm3, %v3422_v43, %v3423_v31  ;;  %v7757_v31 = vld [vmem:[%s8728_s4] ss:$0 sm:$0xff] }
 0x3ad   : > { %v3283_v17 = vsel %vm629_vm4, %v3278_v16, %v3282_v53 }
 0x3ae   : > { %v2971_v36 = vpack.c.bf16 %v2932_v14, %v2931_v29  ;;  %3350 = vrot.lane.b32.xlu1 %v3271_v23, %s8774_s12 }
 0x3af   : > { %3628 = vrot.lane.b32.xlu0 %v3283_v17, %s8776_s24 }
 0x3b0   : > { %v3054_v30 = vshrl.u32 %v2971_v36, 16  ;;  %v2878_v19 = vpop.f32.mrb[48].mxu1  ;;  %v3057_v21 = vshll.u32 %v2971_v36, 16  ;;  %v3442_v32 = vpop.permute.xlu1 %3441 }
 0x3b1   : > { %v2879_v45 = vadd.f32 %v7342_v11, %v2878_v19  ;;  %v2880_v22 = vpop.f32.mrb[49].mxu1  ;;  %v3585_v13 = vpop.permute.xlu0 %3584 }
 0x3b2   : > { %v3056_v34 = vrot.slane %v3054_v30, 7  ;;  %3598 = vrot.lane.b32.xlu1 %v7665_v54, %s8775_s30  ;;  %v2881_v37 = vpop.f32.mrb[50].mxu1  ;;  %v3645_v30 = vsel %vm1275_vm9, %v7443_v42, %v3337_v26 }
 0x3b3   : > { %v2882_v18 = vadd.f32 %v7342_v11, %v2881_v37  ;;  %3532 = vrot.lane.b32.xlu0 %v3283_v17, %s5959_s15  ;;  %v2883_v20 = vpop.f32.mrb[51].mxu1  ;;  %v2933_v47 = vmax.f32 %v2879_v45, 0.0  ;;  %v3769_v11 = vsel %vm2525_vm1, %v3737_v50, %v3553_v27  ;;  %v3675_v45 = vsel %vm1407_vm13, %v3645_v30, %v3442_v32 }
 0x3b4   : > { %v3059_v57 = vor.u32 %v3057_v21, %v3056_v34  ;;  %v3147_v40 = vsel %vm6070_vm2, %v3056_v34, 0  ;;  %v3801_v38 = vsel %vm2558_vm7, %v3769_v11, %v3585_v13 }
 0x3b5   : > { %v2934_v23 = vmax.f32 %v2882_v18, 0.0  ;;  %v3475_v56 = vpop.permute.xlu0 %3474  ;;  %v3292_v14 = vshll.u32 %v3147_v40, 16  ;;  %v3426_v34 = vrot.slane %v3147_v40, 1 }
 0x3b6   : > { %3488 = vrot.lane.b32.xlu1 %v7665_v54, %s8760_s29  ;;  %v7703_v59 = vsel %vm6070_vm2, 0, %v3059_v57  ;;  %v3707_v13 = vsel %vm2459_vm15, %v3675_v45, %v3475_v56 }
 0x3b7   : > { %v2972_v58 = vpack.c.bf16 %v2934_v23, %v2933_v47  ;;  %3352 = vrot.lane.b32.xlu0 %v3283_v17, %s8774_s12  ;;  %v3287_v49 = vshll.u32 %v7703_v59, 16  ;;  %v3285_v29 = vshrl.u32 %v7703_v59, 16  ;;  %v3425_v19 = vrot.slane %v7703_v59, 1 }
 0x3b8   : > { %v3615_v63 = vpop.permute.xlu1 %3614  ;;  %v3294_v22 = vrot.slane %v3292_v14, 1 }
 0x3b9   : > { %v3061_v25 = vshrl.u32 %v2972_v58, 16  ;;  %v3555_v44 = vpop.permute.xlu0 %3554  ;;  %v3834_v41 = vsel %vm2591_vm6, %v3801_v38, %v3615_v63  ;;  %v3289_v16 = vrot.slane %v3287_v49, 1  ;;  %v3064_v53 = vshll.u32 %v2972_v58, 16 }
 0x3ba   : > { %3568 = vrot.lane.b32.xlu1 %v7713_v1, %s8773_s13  ;;  %4028 = vmatmul.mubr.bf16.gmra.mrb[40].mxu0 %v3834_v41  ;;  %v7743_v18 = vsel %vm886_vm3, %v3425_v19, %v3426_v34 }
 0x3bb   : > { %v3063_v35 = vrot.slane %v3061_v25, 7  ;;  %3600 = vrot.lane.b32.xlu0 %v7703_v59, %s8775_s30  ;;  %5610 = vmatprep.mubr.msk.bf16.mxu0 %vm1275_vm9, %v7517_v15  ;;  %v3290_v28 = vor.u32 %v3289_v16, %v3285_v29 }
 0x3bc   : > { %v3519_v17 = vpop.permute.xlu1 %3518 }
 0x3bd   : > { %v3066_v36 = vor.u32 %v3064_v53, %v3063_v35  ;;  %v3444_v27 = vpop.permute.xlu0 %3443  ;;  %v3148_v26 = vsel %vm6070_vm2, %v3063_v35, 0  ;;  %v3739_v21 = vsel %vm2492_vm0, %v3707_v13, %v3519_v17  ;;  %v3295_v62 = vsel %vm629_vm4, %v3290_v28, %v3294_v22 }
 0x3be   : > { %3457 = vrot.lane.b32.xlu1 %v7713_v1, %s8777_s16  ;;  %v3771_v32 = vsel %vm2525_vm1, %v3739_v21, %v3555_v44  ;;  %v3304_v23 = vshll.u32 %v3148_v26, 16  ;;  %v3429_v34 = vrot.slane %v3148_v26, 1 }
 0x3bf   : > { %v7731_v15 = vsel %vm6070_vm2, 0, %v3066_v36  ;;  %3490 = vrot.lane.b32.xlu0 %v7703_v59, %s8760_s29  ;;  %s8778_s29 = smov 48  }
 0x3c0   : > { %v3339_v0 = vpop.permute.xlu1 %3338  ;;  %v3299_v42 = vshll.u32 %v7731_v15, 16  ;;  %v3297_v47 = vshrl.u32 %v7731_v15, 16  ;;  %v3306_v63 = vrot.slane %v3304_v23, 1  ;;  %v3428_v30 = vrot.slane %v7731_v15, 1 }
 0x3c1   : > { %v3617_v37 = vpop.permute.xlu0 %3616 }
 0x3c2   : > { %3630 = vrot.lane.b32.xlu1 %v3295_v62, %s8776_s24  ;;  %v3301_v20 = vrot.slane %v3299_v42, 1 }
 0x3c3   : > { %3570 = vrot.lane.b32.xlu0 %v7743_v18, %s8773_s13 }
 0x3c4   : > { %v3587_v57 = vpop.permute.xlu1 %3586  ;;  %v3302_v50 = vor.u32 %v3301_v20, %v3297_v47  ;;  %v7781_v20 = vsel %vm886_vm3, %v3428_v30, %v3429_v34 }
 0x3c5   : > { %v3803_v56 = vsel %vm2558_vm7, %v3771_v32, %v3587_v57  ;;  %v3521_v11 = vpop.permute.xlu0 %3520 }
 0x3c6   : > { %3534 = vrot.lane.b32.xlu1 %v3295_v62, %s5959_s15  ;;  %v3837_v43 = vsel %vm2591_vm6, %v3803_v56, %v3617_v37  ;;  %v3307_v16 = vsel %vm629_vm4, %v3302_v50, %v3306_v63 }
 0x3c7   : > { %3459 = vrot.lane.b32.xlu0 %v7743_v18, %s8777_s16  ;;  %v2886_v58 = vpop.f32.mrb[52].mxu1  ;;  %4036 = vmatmul.mubr.bf16.gmra.mrb[44].mxu0 %v3837_v43 }
 0x3c8   : > { %v2887_v49 = vadd.f32 %v7757_v31, %v2886_v58  ;;  %v3477_v40 = vpop.permute.xlu1 %3476  ;;  %v2888_v38 = vpop.f32.mrb[53].mxu1  ;;  %5611 = vmatprep.mubr.msk.bf16.mxu0 %vm1275_vm9, %v7546_v61  ;;  %v3647_v61 = vsel %vm1275_vm9, %v7476_v3, %v3339_v0 }
 0x3c9   : > { %v2889_v25 = vpop.f32.mrb[54].mxu1  ;;  %v3341_v29 = vpop.permute.xlu0 %3340  ;;  %v3677_v19 = vsel %vm1407_vm13, %v3647_v61, %v3444_v27 }
 0x3ca   : > { %v2890_v44 = vadd.f32 %v7757_v31, %v2889_v25  ;;  %3354 = vrot.lane.b32.xlu1 %v3295_v62, %s8774_s12  ;;  %v2891_v41 = vpop.f32.mrb[55].mxu1  ;;  %v2935_v35 = vmax.f32 %v2887_v49, 0.0  ;;  %v3709_v13 = vsel %vm2459_vm15, %v3677_v19, %v3477_v40  ;;  %v3649_v30 = vsel %vm1275_vm9, %v7490_v12, %v3341_v29 }
 0x3cb   : > { %3632 = vrot.lane.b32.xlu0 %v3307_v16, %s8776_s24  ;;  %v3741_v57 = vsel %vm2492_vm0, %v3709_v13, %v3521_v11 }
 0x3cc   : > { %v2936_v53 = vmax.f32 %v2890_v44, 0.0  ;;  %v3557_v17 = vpop.permute.xlu1 %3556 }
 0x3cd   : > { %v3773_v47 = vsel %vm2525_vm1, %v3741_v57, %v3557_v17 }
 0x3ce   : > { %v2973_v14 = vpack.c.bf16 %v2936_v53, %v2935_v35  ;;  %3602 = vrot.lane.b32.xlu1 %v7731_v15, %s8775_s30 }
 0x3cf   : > { %3536 = vrot.lane.b32.xlu0 %v3307_v16, %s5959_s15 }
 0x3d0   : > { %v3068_v36 = vshrl.u32 %v2973_v14, 16  ;;  %v3071_v22 = vshll.u32 %v2973_v14, 16  ;;  %v3446_v0 = vpop.permute.xlu1 %3445 }
 0x3d1   : > { %v3589_v28 = vpop.permute.xlu0 %3588 }
 0x3d2   : > { %v3070_v45 = vrot.slane %v3068_v36, 7  ;;  %3492 = vrot.lane.b32.xlu1 %v7731_v15, %s8778_s29  ;;  %v3805_v11 = vsel %vm2558_vm7, %v3773_v47, %v3589_v28 }
 0x3d3   : > { %3356 = vrot.lane.b32.xlu0 %v3307_v16, %s8774_s12 }
 0x3d4   : > { %v3073_v42 = vor.u32 %v3071_v22, %v3070_v45  ;;  %v3149_v3 = vsel %vm6070_vm2, %v3070_v45, 0  ;;  %v2894_v21 = vpop.f32.mrb[56].mxu1  ;;  %v3679_v45 = vsel %vm1407_vm13, %v3649_v30, %v3446_v0 }
 0x3d5   : > { %v2895_v37 = vadd.f32 %v7757_v31, %v2894_v21  ;;  %v2896_v62 = vpop.f32.mrb[57].mxu1  ;;  %v3479_v27 = vpop.permute.xlu0 %3478  ;;  %v3316_v50 = vshll.u32 %v3149_v3, 16  ;;  %v3432_v17 = vrot.slane %v3149_v3, 1 }
 0x3d6   : > { %3572 = vrot.lane.b32.xlu1 %v7781_v20, %s8773_s13  ;;  %v2897_v32 = vpop.f32.mrb[58].mxu1  ;;  %v7788_v26 = vsel %vm6070_vm2, 0, %v3073_v42  ;;  %v3711_v13 = vsel %vm2459_vm15, %v3679_v45, %v3479_v27 }
 0x3d7   : > { %v2898_v23 = vadd.f32 %v7757_v31, %v2897_v32  ;;  %v2899_v56 = vpop.f32.mrb[59].mxu1  ;;  %3604 = vrot.lane.b32.xlu0 %v7788_v26, %s8775_s30  ;;  %v3311_v43 = vshll.u32 %v7788_v26, 16  ;;  %v2937_v58 = vmax.f32 %v2895_v37, 0.0  ;;  %v3309_v25 = vshrl.u32 %v7788_v26, 16 }
 0x3d8   : > { %v3619_v49 = vpop.permute.xlu1 %3618  ;;  %v3431_v41 = vrot.slane %v7788_v26, 1  ;;  %v3318_v53 = vrot.slane %v3316_v50, 1 }
 0x3d9   : > { %v2938_v40 = vmax.f32 %v2898_v23, 0.0  ;;  %v3559_v38 = vpop.permute.xlu0 %3558  ;;  %v3840_v63 = vsel %vm2591_vm6, %v3805_v11, %v3619_v49  ;;  %v3313_v44 = vrot.slane %v3311_v43, 1 }
 0x3da   : > { %3461 = vrot.lane.b32.xlu1 %v7781_v20, %s8777_s16  ;;  %4044 = vmatmul.mubr.bf16.gmra.mrb[48].mxu0 %v3840_v63  ;;  %v7810_v19 = vsel %vm886_vm3, %v3431_v41, %v3432_v17 }
 0x3db   : > { %v2974_v16 = vpack.c.bf16 %v2938_v40, %v2937_v58  ;;  %3494 = vrot.lane.b32.xlu0 %v7788_v26, %s8778_s29  ;;  %5612 = vmatprep.mubr.msk.bf16.mxu0 %vm1275_vm9, %v7569_v46  ;;  %v3314_v35 = vor.u32 %v3313_v44, %v3309_v25 }
 0x3dc   : > { %v3523_v14 = vpop.permute.xlu1 %3522 }
 0x3dd   : > { %v3075_v61 = vshrl.u32 %v2974_v16, 16  ;;  %v3448_v36 = vpop.permute.xlu0 %3447  ;;  %v3319_v28 = vsel %vm629_vm4, %v3314_v35, %v3318_v53  ;;  %v3078_v46 = vshll.u32 %v2974_v16, 16  ;;  %v3743_v12 = vsel %vm2492_vm0, %v3711_v13, %v3523_v14 }
 0x3de   : > { %3634 = vrot.lane.b32.xlu1 %v3319_v28, %s8776_s24  ;;  %v3775_v27 = vsel %vm2525_vm1, %v3743_v12, %v3559_v38 }
 0x3df   : > { %v3077_v22 = vrot.slane %v3075_v61, 7  ;;  %3574 = vrot.lane.b32.xlu0 %v7810_v19, %s8773_s13 }
 0x3e0   : > { %v3343_v34 = vpop.permute.xlu1 %3342 }
 0x3e1   : > { %v3080_v42 = vor.u32 %v3078_v46, %v3077_v22  ;;  %v3150_v3 = vsel %vm6070_vm2, %v3077_v22, 0  ;;  %v3621_v29 = vpop.permute.xlu0 %3620 }
 0x3e2   : > { %3538 = vrot.lane.b32.xlu1 %v3319_v28, %s5959_s15  ;;  %v3328_v47 = vshll.u32 %v3150_v3, 16  ;;  %v3435_v30 = vrot.slane %v3150_v3, 1 }
 0x3e3   : > { %3463 = vrot.lane.b32.xlu0 %v7810_v19, %s8777_s16  ;;  %v2902_v0 = vpop.f32.mrb[60].mxu1  ;;  %v7824_v21 = vsel %vm6070_vm2, 0, %v3080_v42 }
 0x3e4   : > { %v2903_v37 = vadd.f32 %v7757_v31, %v2902_v0  ;;  %v3591_v62 = vpop.permute.xlu1 %3590  ;;  %v2904_v57 = vpop.f32.mrb[61].mxu1  ;;  %v3323_v32 = vshll.u32 %v7824_v21, 16  ;;  %v3321_v58 = vshrl.u32 %v7824_v21, 16  ;;  %v3330_v41 = vrot.slane %v3328_v47, 1 }
 0x3e5   : > { %v3807_v23 = vsel %vm2558_vm7, %v3775_v27, %v3591_v62  ;;  %v2905_v56 = vpop.f32.mrb[62].mxu1  ;;  %v3525_v40 = vpop.permute.xlu0 %3524  ;;  %v3434_v14 = vrot.slane %v7824_v21, 1 }
 0x3e6   : > { %v2906_v43 = vadd.f32 %v7757_v31, %v2905_v56  ;;  %3358 = vrot.lane.b32.xlu1 %v3319_v28, %s8774_s12  ;;  %v2907_v50 = vpop.f32.mrb[63].mxu1  ;;  %v3843_v11 = vsel %vm2591_vm6, %v3807_v23, %v3621_v29  ;;  %v3325_v49 = vrot.slane %v3323_v32, 1  ;;  %v2939_v38 = vmax.f32 %v2903_v37, 0.0 }
 0x3e7   : > { %4052 = vmatmul.mubr.bf16.gmra.mrb[52].mxu0 %v3843_v11  ;;  %v7849_v13 = vsel %vm886_vm3, %v3434_v14, %v3435_v30 }
 0x3e8   : > { %v2940_v63 = vmax.f32 %v2906_v43, 0.0  ;;  %v3481_v25 = vpop.permute.xlu1 %3480  ;;  %5613 = vmatprep.mubr.msk.bf16.mxu0 %vm1275_vm9, %v7598_v48  ;;  %v3326_v44 = vor.u32 %v3325_v49, %v3321_v58  ;;  %v3651_v48 = vsel %vm1275_vm9, %v7528_v52, %v3343_v34 }
 0x3e9   : > { %v3345_v53 = vpop.permute.xlu0 %3344  ;;  %v3681_v42 = vsel %vm1407_vm13, %v3651_v48, %v3448_v36 }
 0x3ea   : > { %v2975_v16 = vpack.c.bf16 %v2940_v63, %v2939_v38  ;;  %3606 = vrot.lane.b32.xlu1 %v7824_v21, %s8775_s30  ;;  %v3331_v31 = vsel %vm629_vm4, %v3326_v44, %v3330_v41  ;;  %v3713_v52 = vsel %vm2459_vm15, %v3681_v42, %v3481_v25  ;;  %v3653_v38 = vsel %vm1275_vm9, %v7542_v7, %v3345_v53 }
 0x3eb   : > { %3636 = vrot.lane.b32.xlu0 %v3331_v31, %s8776_s24  ;;  %v3745_v27 = vsel %vm2492_vm0, %v3713_v52, %v3525_v40 }
 0x3ec   : > { %v3082_v35 = vshrl.u32 %v2975_v16, 16  ;;  %v3085_v61 = vshll.u32 %v2975_v16, 16  ;;  %v3561_v28 = vpop.permute.xlu1 %3560 }
 0x3ed   : > { %v3777_v36 = vsel %vm2525_vm1, %v3745_v27, %v3561_v28 }
 0x3ee   : > { %v3084_v17 = vrot.slane %v3082_v35, 7  ;;  %3496 = vrot.lane.b32.xlu1 %v7824_v21, %s8778_s29 }
 0x3ef   : > { %3540 = vrot.lane.b32.xlu0 %v3331_v31, %s5959_s15 }
 0x3f0   : > { %v3087_v45 = vor.u32 %v3085_v61, %v3084_v17  ;;  %v3151_v22 = vsel %vm6070_vm2, %v3084_v17, 0  ;;  %v3450_v29 = vpop.permute.xlu1 %3449 }
 0x3f1   : > { %v3593_v46 = vpop.permute.xlu0 %3592  ;;  %v3508_v3 = vshll.u32 %v3151_v22, 16  ;;  %v3546_v49 = vrot.slane %v3151_v22, 1  ;;  %v3683_v25 = vsel %vm1407_vm13, %v3653_v38, %v3450_v29 }
 0x3f2   : > { %3576 = vrot.lane.b32.xlu1 %v7849_v13, %s8773_s13  ;;  %v3135_v12 = vsel %vm6070_vm2, 0, %v3087_v45  ;;  %v3809_v47 = vsel %vm2558_vm7, %v3777_v36, %v3593_v46 }
 0x3f3   : > { %3360 = vrot.lane.b32.xlu0 %v3331_v31, %s8774_s12  ;;  %v3503_v34 = vshll.u32 %v3135_v12, 16  ;;  %v3501_v37 = vshrl.u32 %v3135_v12, 16  ;;  %v3510_v32 = vrot.slane %v3508_v3, 1  ;;  %v3545_v11 = vrot.slane %v3135_v12, 1 }
 0x3f5   : > { %v3483_v0 = vpop.permute.xlu0 %3482  ;;  %v3505_v62 = vrot.slane %v3503_v34, 1  ;;  %v7873_v63 = vsel %vm886_vm3, %v3545_v11, %v3546_v49 }
 0x3f6   : > { %v3715_v44 = vsel %vm2459_vm15, %v3683_v25, %v3483_v0 }
 0x3f7   : > { %3608 = vrot.lane.b32.xlu0 %v3135_v12, %s8775_s30  ;;  %v3506_v57 = vor.u32 %v3505_v62, %v3501_v37  ;;  %s8779_s30 = smov 12  }
 0x3f8   : > { %v3623_v23 = vpop.permute.xlu1 %3622 }
 0x3f9   : > { %v3563_v56 = vpop.permute.xlu0 %3562  ;;  %v3511_v43 = vsel %vm629_vm4, %v3506_v57, %v3510_v32  ;;  %v3846_v50 = vsel %vm2591_vm6, %v3809_v47, %v3623_v23 }
 0x3fa   : > { %3638 = vrot.lane.b32.xlu1 %v3511_v43, %s8776_s24  ;;  %4060 = vmatmul.mubr.bf16.gmra.mrb[56].mxu0 %v3846_v50  ;;  %s8780_s24 = smov 8  }
 0x3fb   : > { %3498 = vrot.lane.b32.xlu0 %v3135_v12, %s8778_s29  ;;  %5614 = vmatprep.mubr.msk.bf16.mxu0 %vm1275_vm9, %v7627_v9  ;;  %s8782_s29 = smov 4  }
 0x3fc   : > { %v3527_v58 = vpop.permute.xlu1 %3526 }
 0x3fd   : > { %v3452_v40 = vpop.permute.xlu0 %3451  ;;  %v3747_v41 = vsel %vm2492_vm0, %v3715_v44, %v3527_v58 }
 0x3fe   : > { %3465 = vrot.lane.b32.xlu1 %v7849_v13, %s8777_s16  ;;  %v3779_v31 = vsel %vm2525_vm1, %v3747_v41, %v3563_v56 }
 0x3ff   : > { %3578 = vrot.lane.b32.xlu0 %v7873_v63, %s8773_s13 }
 0x400   : > { %v3347_v9 = vpop.permute.xlu1 %3346 }
 0x401   : > { %v3625_v16 = vpop.permute.xlu0 %3624  ;;  %v3655_v48 = vsel %vm1275_vm9, %v7580_v33, %v3347_v9 }
 0x402   : > { %3542 = vrot.lane.b32.xlu1 %v3511_v43, %s5959_s15  ;;  %v3685_v45 = vsel %vm1407_vm13, %v3655_v48, %v3452_v40  ;;  %s8783_s15 = smov 24  }
 0x404   : > { %v3595_v7 = vpop.permute.xlu1 %3594 }
 0x405   : > { %v3811_v35 = vsel %vm2558_vm7, %v3779_v31, %v3595_v7  ;;  %v3529_v14 = vpop.permute.xlu0 %3528 }
 0x406   : > { %v3849_v53 = vsel %vm2591_vm6, %v3811_v35, %v3625_v16 }
 0x407   : > { %4068 = vmatmul.mubr.bf16.gmra.mrb[60].mxu0 %v3849_v53 }
 0x408   : > { %v3485_v17 = vpop.permute.xlu1 %3484  ;;  %5615 = vmatprep.mubr.msk.bf16.mxu0 %vm1275_vm9, %v7669_v55 }
 0x409   : > { %v3349_v61 = vpop.permute.xlu0 %3348  ;;  %v3717_v22 = vsel %vm2459_vm15, %v3685_v45, %v3485_v17 }
 0x40a   : > { %v3749_v12 = vsel %vm2492_vm0, %v3717_v22, %v3529_v14  ;;  %v3657_v37 = vsel %vm1275_vm9, %v7594_v8, %v3349_v61 }
 0x40c   : > { %v3565_v28 = vpop.permute.xlu1 %3564 }
 0x40d   : > { %v3781_v52 = vsel %vm2525_vm1, %v3749_v12, %v3565_v28 }
 0x410   : > { %v3454_v46 = vpop.permute.xlu1 %3453 }
 0x411   : > { %v3597_v30 = vpop.permute.xlu0 %3596  ;;  %v3687_v62 = vsel %vm1407_vm13, %v3657_v37, %v3454_v46 }
 0x412   : > { %v3813_v34 = vsel %vm2558_vm7, %v3781_v52, %v3597_v30 }
 0x415   : > { %v3487_v42 = vpop.permute.xlu0 %3486 }
 0x416   : > { %v3719_v27 = vsel %vm2459_vm15, %v3687_v62, %v3487_v42 }
 0x418   : > { %v3627_v3 = vpop.permute.xlu1 %3626 }
 0x419   : > { %v3567_v55 = vpop.permute.xlu0 %3566  ;;  %v3852_v29 = vsel %vm2591_vm6, %v3813_v34, %v3627_v3 }
 0x41a   : > { %4076 = vmatmul.mubr.bf16.gmra.mrb[64].mxu0 %v3852_v29 }
 0x41b   : > { %5616 = vmatprep.mubr.msk.bf16.mxu0 %vm1275_vm9, %v7713_v1 }
 0x41c   : > { %v3531_v33 = vpop.permute.xlu1 %3530 }
 0x41d   : > { %v3456_v0 = vpop.permute.xlu0 %3455  ;;  %v3751_v57 = vsel %vm2492_vm0, %v3719_v27, %v3531_v33 }
 0x41e   : > { %v3783_v23 = vsel %vm2525_vm1, %v3751_v57, %v3567_v55 }
 0x420   : > { %v3351_v36 = vpop.permute.xlu1 %3350 }
 0x421   : > { %v3629_v32 = vpop.permute.xlu0 %3628  ;;  %v3659_v8 = vsel %vm1275_vm9, %v7644_v24, %v3351_v36 }
 0x422   : > { %v3689_v58 = vsel %vm1407_vm13, %v3659_v8, %v3456_v0 }
 0x424   : > { %v3599_v47 = vpop.permute.xlu1 %3598 }
 0x425   : > { %v3815_v56 = vsel %vm2558_vm7, %v3783_v23, %v3599_v47  ;;  %v3533_v43 = vpop.permute.xlu0 %3532 }
 0x426   : > { %v3855_v1 = vsel %vm2591_vm6, %v3815_v56, %v3629_v32 }
 0x427   : > { %4084 = vmatmul.mubr.bf16.gmra.mrb[68].mxu0 %v3855_v1 }
 0x428   : > { %v3489_v50 = vpop.permute.xlu1 %3488  ;;  %5617 = vmatprep.mubr.msk.bf16.mxu0 %vm1275_vm9, %v7743_v18 }
 0x429   : > { %v3353_v11 = vpop.permute.xlu0 %3352  ;;  %v3721_v40 = vsel %vm2459_vm15, %v3689_v58, %v3489_v50 }
 0x42a   : > { %v3753_v25 = vsel %vm2492_vm0, %v3721_v40, %v3533_v43  ;;  %v3661_v24 = vsel %vm1275_vm9, %v7665_v54, %v3353_v11 }
 0x42c   : > { %v3569_v49 = vpop.permute.xlu1 %3568 }
 0x42d   : > { %v3601_v38 = vpop.permute.xlu0 %3600  ;;  %v3785_v9 = vsel %vm2525_vm1, %v3753_v25, %v3569_v49 }
 0x42e   : > { %v3817_v16 = vsel %vm2558_vm7, %v3785_v9, %v3601_v38 }
 0x430   : > { %v3458_v44 = vpop.permute.xlu1 %3457 }
 0x431   : > { %v3491_v41 = vpop.permute.xlu0 %3490  ;;  %v3691_v53 = vsel %vm1407_vm13, %v3661_v24, %v3458_v44 }
 0x432   : > { %v3723_v17 = vsel %vm2459_vm15, %v3691_v53, %v3491_v41 }
 0x434   : > { %v3631_v7 = vpop.permute.xlu1 %3630 }
 0x435   : > { %v3571_v18 = vpop.permute.xlu0 %3570  ;;  %v3858_v31 = vsel %vm2591_vm6, %v3817_v16, %v3631_v7 }
 0x436   : > { %4092 = vmatmul.mubr.bf16.gmra.mrb[72].mxu0 %v3858_v31 }
 0x437   : > { %5618 = vmatprep.mubr.msk.bf16.mxu0 %vm1275_vm9, %v7781_v20 }
 0x438   : > { %v3535_v35 = vpop.permute.xlu1 %3534 }
 0x439   : > { %v3460_v14 = vpop.permute.xlu0 %3459  ;;  %v3755_v28 = vsel %vm2492_vm0, %v3723_v17, %v3535_v35 }
 0x43a   : > { %v3787_v45 = vsel %vm2525_vm1, %v3755_v28, %v3571_v18 }
 0x43c   : > { %v3355_v61 = vpop.permute.xlu1 %3354 }
 0x43d   : > { %v3633_v48 = vpop.permute.xlu0 %3632  ;;  %v3663_v42 = vsel %vm1275_vm9, %v7703_v59, %v3355_v61 }
 0x43e   : > { %v3693_v52 = vsel %vm1407_vm13, %v3663_v42, %v3460_v14 }
 0x440   : > { %v3603_v30 = vpop.permute.xlu1 %3602 }
 0x441   : > { %v3819_v22 = vsel %vm2558_vm7, %v3787_v45, %v3603_v30  ;;  %v3537_v46 = vpop.permute.xlu0 %3536  ;;  %v5849_v45 = vld [vmem:[%s6092_s14] sm:$0xff] }
 0x442   : > { %v3861_v20 = vsel %vm2591_vm6, %v3819_v22, %v3633_v48 }
 0x443   : > { %4100 = vmatmul.mubr.bf16.gmra.mrb[76].mxu0 %v3861_v20 }
 0x444   : > { %v3493_v54 = vpop.permute.xlu1 %3492  ;;  %5619 = vmatprep.mubr.msk.bf16.mxu0 %vm1275_vm9, %v7810_v19 }
 0x445   : > { %v3357_v12 = vpop.permute.xlu0 %3356  ;;  %v3725_v3 = vsel %vm2459_vm15, %v3693_v52, %v3493_v54 }
 0x446   : > { %v3757_v29 = vsel %vm2492_vm0, %v3725_v3, %v3537_v46  ;;  %v3665_v36 = vsel %vm1275_vm9, %v7731_v15, %v3357_v12  ;;  %v5850_v46 = vld [vmem:[%s6092_s14 + $0x8] sm:$0xff] }
 0x448   : > { %v3573_v34 = vpop.permute.xlu1 %3572 }
 0x449   : > { %v3605_v55 = vpop.permute.xlu0 %3604  ;;  %v3789_v0 = vsel %vm2525_vm1, %v3757_v29, %v3573_v34 }
 0x44a   : > { %v3821_v62 = vsel %vm2558_vm7, %v3789_v0, %v3605_v55 }
 0x44c   : > { %v3462_v33 = vpop.permute.xlu1 %3461 }
 0x44d   : > { %v3495_v37 = vpop.permute.xlu0 %3494  ;;  %v3695_v32 = vsel %vm1407_vm13, %v3665_v36, %v3462_v33 }
 0x44e   : > { %v3727_v47 = vsel %vm2459_vm15, %v3695_v32, %v3495_v37 }
 0x450   : > { %v3635_v27 = vpop.permute.xlu1 %3634 }
 0x451   : > { %v3864_v19 = vsel %vm2591_vm6, %v3821_v62, %v3635_v27  ;;  %v3575_v59 = vpop.permute.xlu0 %3574 }
 0x452   : > { %4108 = vmatmul.mubr.bf16.gmra.mrb[80].mxu0 %v3864_v19 }
 0x453   : > { %5620 = vmatprep.mubr.msk.bf16.mxu0 %vm1275_vm9, %v7849_v13 }
 0x454   : > { %v3539_v57 = vpop.permute.xlu1 %3538 }
 0x455   : > { %v3759_v56 = vsel %vm2492_vm0, %v3727_v47, %v3539_v57  ;;  %v3464_v43 = vpop.permute.xlu0 %3463 }
 0x456   : > { %v3791_v50 = vsel %vm2525_vm1, %v3759_v56, %v3575_v59  ;;  %v5851_v56 = vld [vmem:[%s6092_s14 + $0x10] sm:$0xff] }
 0x458   : > { %v3359_v23 = vpop.permute.xlu1 %3358 }
 0x459   : > { %v3667_v49 = vsel %vm1275_vm9, %v7788_v26, %v3359_v23 }
 0x45a   : > { %v3697_v38 = vsel %vm1407_vm13, %v3667_v49, %v3464_v43 }
 0x45c   : > { %v3607_v1 = vpop.permute.xlu1 %3606 }
 0x45d   : > { %v3823_v8 = vsel %vm2558_vm7, %v3791_v50, %v3607_v1  ;;  %v3637_v11 = vpop.permute.xlu0 %3636  ;;  %v5852_v1 = vld [vmem:[%s6092_s14 + $0x18] sm:$0xff] }
 0x45e   : > { %v3867_v13 = vsel %vm2591_vm6, %v3823_v8, %v3637_v11 }
 0x45f   : > { %4116 = vmatmul.mubr.bf16.gmra.mrb[84].mxu0 %v3867_v13 }
 0x460   : > { %5621 = vmatprep.mubr.msk.bf16.mxu0 %vm1275_vm9, %v7873_v63  ;;  %v3497_v58 = vpop.permute.xlu1 %3496  ;;  %v7955_v63 = vld [vmem:[%s8730_s6] ss:$0 sm:$0xff] }
 0x461   : > { %v3541_v15 = vpop.permute.xlu0 %3540  ;;  %v3729_v25 = vsel %vm2459_vm15, %v3697_v38, %v3497_v58 }
 0x462   : > { %v3761_v41 = vsel %vm2492_vm0, %v3729_v25, %v3541_v15 }
 0x464   : > { %v3577_v44 = vpop.permute.xlu1 %3576 }
 0x465   : > { %v3361_v40 = vpop.permute.xlu0 %3360  ;;  %v3793_v16 = vsel %vm2525_vm1, %v3761_v41, %v3577_v44 }
 0x466   : > { %v3669_v17 = vsel %vm1275_vm9, %v7824_v21, %v3361_v40 }
 0x469   : > { %v3609_v9 = vpop.permute.xlu0 %3608 }
 0x46a   : > { %v3825_v7 = vsel %vm2558_vm7, %v3793_v16, %v3609_v9 }
 0x46c   : > { %v3639_v26 = vpop.permute.xlu1 %3638 }
 0x46d   : > { %v4013_v18 = vpop.f32.mrb[32].mxu0  ;;  %v3870_v31 = vsel %vm2591_vm6, %v3825_v7, %v3639_v26  ;;  %v3499_v53 = vpop.permute.xlu0 %3498 }
 0x46e   : > { %v4014_v24 = vadd.f32 %v7955_v63, %v4013_v18  ;;  %v4015_v35 = vpop.f32.mrb[33].mxu0  ;;  %4124 = vmatmul.mubr.bf16.gmra.mrb[88].mxu0 %v3870_v31 }
 0x46f   : > { %v4016_v14 = vpop.f32.mrb[34].mxu0  ;;  %5622 = vmatprep.mubr.msk.bf16.mxu0 %vm1275_vm9, %v6087_v10 }
 0x470   : > { %v4017_v61 = vadd.f32 %v7955_v63, %v4016_v14  ;;  %v3466_v28 = vpop.permute.xlu1 %3465  ;;  %v4018_v48 = vpop.f32.mrb[35].mxu0  ;;  %v4140_v22 = vadd.f32 %v5849_v45, %v4014_v24 }
 0x471   : > { %v3699_v30 = vsel %vm1407_vm13, %v3669_v17, %v3466_v28  ;;  %v3579_v52 = vpop.permute.xlu0 %3578 }
 0x472   : > { %v4141_v20 = vadd.f32 %v5850_v46, %v4017_v61  ;;  %v3731_v12 = vsel %vm2459_vm15, %v3699_v30, %v3499_v53  ;;  %v5844_v30 = vld [vmem:[%s8731_s7] sm:$0xff]  }
 0x473   : > { %5723 = vmatprep.subr.bf16.mxu0 %v5844_v30  ;;  %5761 = vmatprep.subr.bf16.mxu1 %v5844_v30 }
 0x474   : > { %v4178_v54 = vpack.c.bf16 %v4141_v20, %v4140_v22  ;;  %v3543_v42 = vpop.permute.xlu1 %3542  ;;  %5724 = vmatpush3.bf16.msra.mxu0 %v5844_v30  ;;  %5764 = vmatpush3.bf16.msra.mxu1 %v5844_v30 }
 0x475   : > { %v3763_v10 = vsel %vm2492_vm0, %v3731_v12, %v3543_v42  ;;  %v5854_v12 = vld [vmem:[%s6092_s14 + $0x28] sm:$0xff] }
 0x476   : > { %v4195_v34 = vshrl.u32 %v4178_v54, 16  ;;  %v3795_v21 = vsel %vm2525_vm1, %v3763_v10, %v3579_v52  ;;  %v4198_v29 = vshll.u32 %v4178_v54, 16  ;;  %v5853_v54 = vld [vmem:[%s6092_s14 + $0x20] sm:$0xff]  ;;  %v5845_v10 = vld [vmem:[%s8731_s7 + $0x8] sm:$0xff]  }
 0x477   : > { %v3826_v3 = vsel %vm2558_vm7, %v3795_v21, %v7398_v60  ;;  %5725 = vmatprep.subr.bf16.mxu0 %v5845_v10  ;;  %5762 = vmatprep.subr.bf16.mxu1 %v5845_v10 }
 0x478   : > { %v4197_v55 = vrot.slane %v4195_v34, 7  ;;  %v3872_v33 = vsel %vm2591_vm6, %v3826_v3, %v7407_v39  ;;  %5726 = vmatpush3.bf16.msra.mxu0 %v5845_v10  ;;  %v5846_v3 = vld [vmem:[%s8731_s7 + $0x10] ss:$0 sps:$4 sm:$0x33]   ;;  %5765 = vmatpush3.bf16.msra.mxu1 %v5845_v10  ;;  %vm8785_vm6 = vcmask 64512  }
 0x479   : > { %4132 = vmatmul.mubr.bf16.gmra.mrb[92].mxu0 %v3872_v33  ;;  %5768 = vmatprep.subr.msk.bf16.mxu0 %vm1494_vm5, %v5846_v3  ;;  %v5191_v33 = vsel %vm1494_vm5, %v5846_v3, 0  ;;  %vm8787_vm15 = vmmov %vm8785_vm6 }
 0x47a   : > { %v4021_v0 = vpop.f32.mrb[36].mxu0  ;;  %v4200_v37 = vor.u32 %v4198_v29, %v4197_v55  ;;  %v4354_v62 = vsel %vm6070_vm2, %v4197_v55, 0  ;;  %5769 = vmatprep.subr.msk.bf16.mxu1 %vm1494_vm5, %v5846_v3  ;;  %vm8784_vm5 = vcmask 31744   ;;  %vm8789_vm1 = vmmov %vm8785_vm6 }
 0x47b   : > { %v4022_v27 = vadd.f32 %v7955_v63, %v4021_v0  ;;  %v4023_v19 = vpop.f32.mrb[37].mxu0  ;;  %v4611_v32 = vrot.slane %v4354_v62, 1  ;;  %v4378_v23 = vshll.u32 %v4354_v62, 16  ;;  %vm8786_vm7 = vmmov %vm8784_vm5 }
 0x47c   : > { %v4024_v59 = vpop.f32.mrb[38].mxu0  ;;  %v7980_v60 = vsel %vm6070_vm2, 0, %v4200_v37  ;;  %5728 = vmatpush3.bf16.msra.mxu0 %v5191_v33  ;;  %5766 = vmatpush3.bf16.msra.mxu1 %v5191_v33  ;;  %vm8788_vm0 = vmmov %vm8784_vm5 }
 0x47d   : > { %v4025_v36 = vadd.f32 %v7955_v63, %v4024_v59  ;;  %4686 = vrot.lane.b32.xlu1 %v7980_v60, %s8779_s30  ;;  %v4026_v39 = vpop.f32.mrb[39].mxu0  ;;  %v4610_v57 = vrot.slane %v7980_v60, 1  ;;  %v4373_v47 = vshll.u32 %v7980_v60, 16  ;;  %v4142_v43 = vadd.f32 %v5851_v56, %v4022_v27 }
 0x47e   : > { %v4371_v11 = vshrl.u32 %v7980_v60, 16  ;;  %v4380_v49 = vrot.slane %v4378_v23, 1 }
 0x47f   : > { %v4143_v50 = vadd.f32 %v5852_v1, %v4025_v36  ;;  %v4612_v8 = vsel %vm886_vm3, %v4610_v57, %v4611_v32  ;;  %v4375_v13 = vrot.slane %v4373_v47, 1 }
 0x480   : > { %4655 = vrot.lane.b32.xlu0 %v4612_v8, %s8780_s24 }
 0x481   : > { %v4179_v15 = vpack.c.bf16 %v4143_v50, %v4142_v43  ;;  %4766 = vrot.lane.b32.xlu1 %v4612_v8, %s8781_s22  ;;  %v4376_v58 = vor.u32 %v4375_v13, %v4371_v11  ;;  %v5855_v43 = vld [vmem:[%s6092_s14 + $0x30] sm:$0xff]  ;;  %v5856_v50 = vld [vmem:[%s6092_s14 + $0x38] sm:$0xff] }
 0x483   : > { %v4202_v40 = vshrl.u32 %v4179_v15, 16  ;;  %v4381_v38 = vsel %vm629_vm4, %v4376_v58, %v4380_v49  ;;  %v4205_v44 = vshll.u32 %v4179_v15, 16 }
 0x485   : > { %v4204_v25 = vrot.slane %v4202_v40, 7  ;;  %4550 = vrot.lane.b32.xlu1 %v4381_v38, %s8782_s29 }
 0x487   : > { %v4207_v9 = vor.u32 %v4205_v44, %v4204_v25  ;;  %v4355_v41 = vsel %vm6070_vm2, %v4204_v25, 0 }
 0x488   : > { %v4614_v26 = vrot.slane %v4355_v41, 1  ;;  %v4390_v31 = vshll.u32 %v4355_v41, 16 }
 0x489   : > { %4730 = vrot.lane.b32.xlu1 %v4381_v38, %s8774_s12  ;;  %v8000_v16 = vsel %vm6070_vm2, 0, %v4207_v9 }
 0x48a   : > { %4688 = vrot.lane.b32.xlu0 %v8000_v16, %s8779_s30  ;;  %v4613_v7 = vrot.slane %v8000_v16, 1  ;;  %v4385_v18 = vshll.u32 %v8000_v16, 16  ;;  %v4383_v35 = vshrl.u32 %v8000_v16, 16  ;;  %v4392_v48 = vrot.slane %v4390_v31, 1 }
 0x48c   : > { %v4615_v24 = vsel %vm886_vm3, %v4613_v7, %v4614_v26  ;;  %v4387_v53 = vrot.slane %v4385_v18, 1 }
 0x48d   : > { %4798 = vrot.lane.b32.xlu1 %v8000_v16, %s8783_s15  ;;  %v4029_v14 = vpop.f32.mrb[40].mxu0 }
 0x48e   : > { %v4030_v17 = vadd.f32 %v7955_v63, %v4029_v14  ;;  %4768 = vrot.lane.b32.xlu0 %v4615_v24, %s8781_s22  ;;  %v4031_v61 = vpop.f32.mrb[41].mxu0  ;;  %v4388_v28 = vor.u32 %v4387_v53, %v4383_v35 }
 0x48f   : > { %v4032_v45 = vpop.f32.mrb[42].mxu0 }
 0x490   : > { %v4033_v22 = vadd.f32 %v7955_v63, %v4032_v45  ;;  %v4034_v46 = vpop.f32.mrb[43].mxu0  ;;  %v4393_v20 = vsel %vm629_vm4, %v4388_v28, %v4392_v48  ;;  %v4144_v42 = vadd.f32 %v5853_v54, %v4030_v17 }
 0x491   : > { %4858 = vrot.lane.b32.xlu1 %v4615_v24, %s8777_s16 }
 0x492   : > { %v4145_v52 = vadd.f32 %v5854_v12, %v4033_v22  ;;  %4732 = vrot.lane.b32.xlu0 %v4393_v20, %s8774_s12 }
 0x494   : > { %v4180_v34 = vpack.c.bf16 %v4145_v52, %v4144_v42  ;;  %v5858_v42 = vld [vmem:[%s6092_s14 + $0x48] sm:$0xff] }
 0x495   : > { %4657 = vrot.lane.b32.xlu1 %v4615_v24, %s8780_s24 }
 0x496   : > { %v4209_v21 = vshrl.u32 %v4180_v34, 16  ;;  %4552 = vrot.lane.b32.xlu0 %v4393_v20, %s8782_s29  ;;  %v4212_v29 = vshll.u32 %v4180_v34, 16 }
 0x498   : > { %v4211_v55 = vrot.slane %v4209_v21, 7 }
 0x499   : > { %4828 = vrot.lane.b32.xlu1 %v4393_v20, %s8771_s25  ;;  %v5857_v20 = vld [vmem:[%s6092_s14 + $0x40] sm:$0xff] }
 0x49a   : > { %v4214_v0 = vor.u32 %v4212_v29, %v4211_v55  ;;  %v4037_v37 = vpop.f32.mrb[44].mxu0  ;;  %v4356_v62 = vsel %vm6070_vm2, %v4211_v55, 0 }
 0x49b   : > { %v4038_v27 = vadd.f32 %v7955_v63, %v4037_v37  ;;  %v4039_v19 = vpop.f32.mrb[45].mxu0  ;;  %v4617_v47 = vrot.slane %v4356_v62, 1  ;;  %v4402_v56 = vshll.u32 %v4356_v62, 16 }
 0x49c   : > { %v4040_v59 = vpop.f32.mrb[46].mxu0  ;;  %v8038_v36 = vsel %vm6070_vm2, 0, %v4214_v0 }
 0x49d   : > { %v4041_v39 = vadd.f32 %v7955_v63, %v4040_v59  ;;  %4690 = vrot.lane.b32.xlu1 %v8038_v36, %s8779_s30  ;;  %4800 = vrot.lane.b32.xlu0 %v8038_v36, %s8783_s15  ;;  %v4042_v57 = vpop.f32.mrb[47].mxu0  ;;  %v4616_v32 = vrot.slane %v8038_v36, 1  ;;  %v4397_v23 = vshll.u32 %v8038_v36, 16  ;;  %v4146_v1 = vadd.f32 %v5855_v43, %v4038_v27 }
 0x49e   : > { %v4395_v13 = vshrl.u32 %v8038_v36, 16  ;;  %v4404_v40 = vrot.slane %v4402_v56, 1  ;;  %v5859_v56 = vld [vmem:[%s6092_s14 + $0x50] sm:$0xff] }
 0x49f   : > { %v4147_v8 = vadd.f32 %v5856_v50, %v4041_v39  ;;  %v4618_v11 = vsel %vm886_vm3, %v4616_v32, %v4617_v47  ;;  %v4399_v15 = vrot.slane %v4397_v23, 1 }
 0x4a1   : > { %v4181_v58 = vpack.c.bf16 %v4147_v8, %v4146_v1  ;;  %4860 = vrot.lane.b32.xlu1 %v4618_v11, %s8777_s16  ;;  %4659 = vrot.lane.b32.xlu0 %v4618_v11, %s8780_s24  ;;  %v4400_v49 = vor.u32 %v4399_v15, %v4395_v13  ;;  %v5860_v1 = vld [vmem:[%s6092_s14 + $0x58] sm:$0xff] }
 0x4a3   : > { %v4216_v38 = vshrl.u32 %v4181_v58, 16  ;;  %v4405_v25 = vsel %vm629_vm4, %v4400_v49, %v4404_v40  ;;  %v4219_v9 = vshll.u32 %v4181_v58, 16 }
 0x4a5   : > { %v4218_v44 = vrot.slane %v4216_v38, 7  ;;  %4770 = vrot.lane.b32.xlu1 %v4618_v11, %s8781_s22  ;;  %4830 = vrot.lane.b32.xlu0 %v4405_v25, %s8771_s25 }
 0x4a7   : > { %v4221_v41 = vor.u32 %v4219_v9, %v4218_v44  ;;  %v4357_v18 = vsel %vm6070_vm2, %v4218_v44, 0 }
 0x4a8   : > { %v4620_v17 = vrot.slane %v4357_v18, 1  ;;  %v4414_v28 = vshll.u32 %v4357_v18, 16 }
 0x4a9   : > { %4734 = vrot.lane.b32.xlu1 %v4405_v25, %s8774_s12  ;;  %4554 = vrot.lane.b32.xlu0 %v4405_v25, %s8782_s29  ;;  %v8060_v7 = vsel %vm6070_vm2, 0, %v4221_v41 }
 0x4aa   : > { %v4409_v26 = vshll.u32 %v8060_v7, 16  ;;  %v4619_v31 = vrot.slane %v8060_v7, 1  ;;  %v4407_v61 = vshrl.u32 %v8060_v7, 16  ;;  %v4416_v52 = vrot.slane %v4414_v28, 1 }
 0x4ac   : > { %v4411_v24 = vrot.slane %v4409_v26, 1  ;;  %v4621_v22 = vsel %vm886_vm3, %v4619_v31, %v4620_v17 }
 0x4ad   : > { %4802 = vrot.lane.b32.xlu1 %v8060_v7, %s8783_s15  ;;  %4692 = vrot.lane.b32.xlu0 %v8060_v7, %s8779_s30  ;;  %v4045_v35 = vpop.f32.mrb[48].mxu0 }
 0x4ae   : > { %v4046_v53 = vadd.f32 %v7955_v63, %v4045_v35  ;;  %v4047_v14 = vpop.f32.mrb[49].mxu0  ;;  %v4412_v46 = vor.u32 %v4411_v24, %v4407_v61 }
 0x4af   : > { %v4048_v48 = vpop.f32.mrb[50].mxu0 }
 0x4b0   : > { %v4049_v30 = vadd.f32 %v7955_v63, %v4048_v48  ;;  %v4050_v45 = vpop.f32.mrb[51].mxu0  ;;  %v4148_v54 = vadd.f32 %v5857_v20, %v4046_v53  ;;  %v4417_v34 = vsel %vm629_vm4, %v4412_v46, %v4416_v52  ;;  %v5861_v20 = vld [vmem:[%s6092_s14 + $0x60] sm:$0xff] }
 0x4b1   : > { %4862 = vrot.lane.b32.xlu1 %v4621_v22, %s8777_s16  ;;  %4772 = vrot.lane.b32.xlu0 %v4621_v22, %s8781_s22 }
 0x4b2   : > { %v4149_v12 = vadd.f32 %v5858_v42, %v4049_v30  ;;  %v5862_v42 = vld [vmem:[%s6092_s14 + $0x68] sm:$0xff] }
 0x4b4   : > { %v4182_v10 = vpack.c.bf16 %v4149_v12, %v4148_v54 }
 0x4b5   : > { %4661 = vrot.lane.b32.xlu1 %v4621_v22, %s8780_s24  ;;  %4736 = vrot.lane.b32.xlu0 %v4417_v34, %s8774_s12 }
 0x4b6   : > { %v4223_v21 = vshrl.u32 %v4182_v10, 16  ;;  %v4226_v55 = vshll.u32 %v4182_v10, 16 }
 0x4b8   : > { %v4225_v3 = vrot.slane %v4223_v21, 7 }
 0x4b9   : > { %4832 = vrot.lane.b32.xlu1 %v4417_v34, %s8771_s25  ;;  %4556 = vrot.lane.b32.xlu0 %v4417_v34, %s8782_s29 }
 0x4ba   : > { %v4228_v29 = vor.u32 %v4226_v55, %v4225_v3  ;;  %v4053_v33 = vpop.f32.mrb[52].mxu0  ;;  %v4358_v0 = vsel %vm6070_vm2, %v4225_v3, 0 }
 0x4bb   : > { %v4054_v37 = vadd.f32 %v7955_v63, %v4053_v33  ;;  %v4055_v62 = vpop.f32.mrb[53].mxu0  ;;  %v4623_v32 = vrot.slane %v4358_v0, 1  ;;  %v4426_v23 = vshll.u32 %v4358_v0, 16 }
 0x4bc   : > { %v4056_v27 = vpop.f32.mrb[54].mxu0  ;;  %v8088_v19 = vsel %vm6070_vm2, 0, %v4228_v29 }
 0x4bd   : > { %v4057_v59 = vadd.f32 %v7955_v63, %v4056_v27  ;;  %4694 = vrot.lane.b32.xlu1 %v8088_v19, %s8779_s30  ;;  %4804 = vrot.lane.b32.xlu0 %v8088_v19, %s8783_s15  ;;  %v4058_v39 = vpop.f32.mrb[55].mxu0  ;;  %v4622_v57 = vrot.slane %v8088_v19, 1  ;;  %v4421_v47 = vshll.u32 %v8088_v19, 16  ;;  %v4150_v43 = vadd.f32 %v5859_v56, %v4054_v37 }
 0x4be   : > { %v4419_v11 = vshrl.u32 %v8088_v19, 16  ;;  %v4428_v49 = vrot.slane %v4426_v23, 1 }
 0x4bf   : > { %v4151_v50 = vadd.f32 %v5860_v1, %v4057_v59  ;;  %v4624_v8 = vsel %vm886_vm3, %v4622_v57, %v4623_v32  ;;  %v4423_v13 = vrot.slane %v4421_v47, 1 }
 0x4c1   : > { %v4183_v15 = vpack.c.bf16 %v4151_v50, %v4150_v43  ;;  %4864 = vrot.lane.b32.xlu1 %v4624_v8, %s8777_s16  ;;  %4663 = vrot.lane.b32.xlu0 %v4624_v8, %s8780_s24  ;;  %v4424_v58 = vor.u32 %v4423_v13, %v4419_v11  ;;  %v5863_v43 = vld [vmem:[%s6092_s14 + $0x70] sm:$0xff]  ;;  %v5864_v50 = vld [vmem:[%s6092_s14 + $0x78] sm:$0xff] }
 0x4c3   : > { %v4230_v40 = vshrl.u32 %v4183_v15, 16  ;;  %v4429_v38 = vsel %vm629_vm4, %v4424_v58, %v4428_v49  ;;  %v4233_v44 = vshll.u32 %v4183_v15, 16 }
 0x4c5   : > { %v4232_v25 = vrot.slane %v4230_v40, 7  ;;  %4774 = vrot.lane.b32.xlu1 %v4624_v8, %s8781_s22  ;;  %4834 = vrot.lane.b32.xlu0 %v4429_v38, %s8771_s25 }
 0x4c7   : > { %v4235_v9 = vor.u32 %v4233_v44, %v4232_v25  ;;  %v4359_v18 = vsel %vm6070_vm2, %v4232_v25, 0 }
 0x4c8   : > { %v4626_v17 = vrot.slane %v4359_v18, 1  ;;  %v4438_v28 = vshll.u32 %v4359_v18, 16 }
 0x4c9   : > { %4738 = vrot.lane.b32.xlu1 %v4429_v38, %s8774_s12  ;;  %4558 = vrot.lane.b32.xlu0 %v4429_v38, %s8782_s29  ;;  %v8110_v41 = vsel %vm6070_vm2, 0, %v4235_v9 }
 0x4ca   : > { %v4433_v26 = vshll.u32 %v8110_v41, 16  ;;  %v4625_v31 = vrot.slane %v8110_v41, 1  ;;  %v4431_v61 = vshrl.u32 %v8110_v41, 16  ;;  %v4440_v52 = vrot.slane %v4438_v28, 1 }
 0x4cc   : > { %v4435_v24 = vrot.slane %v4433_v26, 1  ;;  %v4627_v22 = vsel %vm886_vm3, %v4625_v31, %v4626_v17 }
 0x4cd   : > { %4806 = vrot.lane.b32.xlu1 %v8110_v41, %s8783_s15  ;;  %4696 = vrot.lane.b32.xlu0 %v8110_v41, %s8779_s30  ;;  %v4061_v35 = vpop.f32.mrb[56].mxu0 }
 0x4ce   : > { %v4062_v53 = vadd.f32 %v7955_v63, %v4061_v35  ;;  %v4063_v14 = vpop.f32.mrb[57].mxu0  ;;  %v4436_v46 = vor.u32 %v4435_v24, %v4431_v61 }
 0x4cf   : > { %v4064_v48 = vpop.f32.mrb[58].mxu0 }
 0x4d0   : > { %v4065_v30 = vadd.f32 %v7955_v63, %v4064_v48  ;;  %v4066_v45 = vpop.f32.mrb[59].mxu0  ;;  %v4152_v54 = vadd.f32 %v5861_v20, %v4062_v53  ;;  %v4441_v34 = vsel %vm629_vm4, %v4436_v46, %v4440_v52 }
 0x4d1   : > { %4866 = vrot.lane.b32.xlu1 %v4627_v22, %s8777_s16  ;;  %4776 = vrot.lane.b32.xlu0 %v4627_v22, %s8781_s22 }
 0x4d2   : > { %v4153_v12 = vadd.f32 %v5862_v42, %v4065_v30 }
 0x4d4   : > { %v4184_v10 = vpack.c.bf16 %v4153_v12, %v4152_v54  ;;  %v5865_v12 = vld [vmem:[%s6092_s14 + $0x80] sm:$0xff] }
 0x4d5   : > { %4665 = vrot.lane.b32.xlu1 %v4627_v22, %s8780_s24  ;;  %4740 = vrot.lane.b32.xlu0 %v4441_v34, %s8774_s12 }
 0x4d6   : > { %v4237_v21 = vshrl.u32 %v4184_v10, 16  ;;  %v4240_v55 = vshll.u32 %v4184_v10, 16  ;;  %v5866_v10 = vld [vmem:[%s6092_s14 + $0x88] sm:$0xff] }
 0x4d8   : > { %v4239_v3 = vrot.slane %v4237_v21, 7 }
 0x4d9   : > { %4836 = vrot.lane.b32.xlu1 %v4441_v34, %s8771_s25  ;;  %4560 = vrot.lane.b32.xlu0 %v4441_v34, %s8782_s29 }
 0x4da   : > { %v4242_v29 = vor.u32 %v4240_v55, %v4239_v3  ;;  %v4069_v33 = vpop.f32.mrb[60].mxu0  ;;  %v4360_v0 = vsel %vm6070_vm2, %v4239_v3, 0 }
 0x4db   : > { %v4070_v37 = vadd.f32 %v7955_v63, %v4069_v33  ;;  %v4071_v62 = vpop.f32.mrb[61].mxu0  ;;  %v4629_v47 = vrot.slane %v4360_v0, 1  ;;  %v4450_v56 = vshll.u32 %v4360_v0, 16 }
 0x4dc   : > { %v4072_v27 = vpop.f32.mrb[62].mxu0  ;;  %v8138_v59 = vsel %vm6070_vm2, 0, %v4242_v29 }
 0x4dd   : > { %v4073_v39 = vadd.f32 %v7955_v63, %v4072_v27  ;;  %4698 = vrot.lane.b32.xlu1 %v8138_v59, %s8779_s30  ;;  %4808 = vrot.lane.b32.xlu0 %v8138_v59, %s8783_s15  ;;  %v4074_v57 = vpop.f32.mrb[63].mxu0  ;;  %v4628_v32 = vrot.slane %v8138_v59, 1  ;;  %v4445_v23 = vshll.u32 %v8138_v59, 16  ;;  %v4154_v1 = vadd.f32 %v5863_v43, %v4070_v37 }
 0x4de   : > { %v4443_v13 = vshrl.u32 %v8138_v59, 16  ;;  %v4452_v40 = vrot.slane %v4450_v56, 1 }
 0x4df   : > { %v4155_v8 = vadd.f32 %v5864_v50, %v4073_v39  ;;  %v4630_v11 = vsel %vm886_vm3, %v4628_v32, %v4629_v47  ;;  %v4447_v15 = vrot.slane %v4445_v23, 1 }
 0x4e1   : > { %v4185_v58 = vpack.c.bf16 %v4155_v8, %v4154_v1  ;;  %4868 = vrot.lane.b32.xlu1 %v4630_v11, %s8777_s16  ;;  %4667 = vrot.lane.b32.xlu0 %v4630_v11, %s8780_s24  ;;  %v4448_v49 = vor.u32 %v4447_v15, %v4443_v13 }
 0x4e3   : > { %v4244_v38 = vshrl.u32 %v4185_v58, 16  ;;  %v4453_v25 = vsel %vm629_vm4, %v4448_v49, %v4452_v40  ;;  %v4247_v9 = vshll.u32 %v4185_v58, 16  ;;  %v5867_v40 = vld [vmem:[%s6092_s14 + $0x90] sm:$0xff] }
 0x4e5   : > { %v4246_v44 = vrot.slane %v4244_v38, 7  ;;  %4778 = vrot.lane.b32.xlu1 %v4630_v11, %s8781_s22  ;;  %4838 = vrot.lane.b32.xlu0 %v4453_v25, %s8771_s25 }
 0x4e7   : > { %v4249_v26 = vor.u32 %v4247_v9, %v4246_v44  ;;  %v4361_v24 = vsel %vm6070_vm2, %v4246_v44, 0 }
 0x4e8   : > { %v4632_v28 = vrot.slane %v4361_v24, 1  ;;  %v4462_v30 = vshll.u32 %v4361_v24, 16 }
 0x4e9   : > { %4742 = vrot.lane.b32.xlu1 %v4453_v25, %s8774_s12  ;;  %4562 = vrot.lane.b32.xlu0 %v4453_v25, %s8782_s29  ;;  %v8160_v18 = vsel %vm6070_vm2, 0, %v4249_v26  ;;  %v5868_v25 = vld [vmem:[%s6092_s14 + $0x98] sm:$0xff] }
 0x4ea   : > { %v4457_v31 = vshll.u32 %v8160_v18, 16  ;;  %v4631_v35 = vrot.slane %v8160_v18, 1  ;;  %v4455_v48 = vshrl.u32 %v8160_v18, 16  ;;  %v4464_v21 = vrot.slane %v4462_v30, 1 }
 0x4ec   : > { %v4459_v53 = vrot.slane %v4457_v31, 1  ;;  %v4633_v54 = vsel %vm886_vm3, %v4631_v35, %v4632_v28 }
 0x4ed   : > { %4810 = vrot.lane.b32.xlu1 %v8160_v18, %s8783_s15  ;;  %v4077_v14 = vpop.f32.mrb[64].mxu0  ;;  %4700 = vrot.lane.b32.xlu0 %v8160_v18, %s8779_s30 }
 0x4ee   : > { %v4078_v17 = vadd.f32 %v7955_v63, %v4077_v14  ;;  %v4079_v61 = vpop.f32.mrb[65].mxu0  ;;  %v4460_v42 = vor.u32 %v4459_v53, %v4455_v48 }
 0x4ef   : > { %v8172_v45 = vpop.permute.xlu1 %4686  ;;  %v4080_v22 = vpop.f32.mrb[66].mxu0 }
 0x4f0   : > { %v4081_v46 = vadd.f32 %v7955_v63, %v4080_v22  ;;  %v4082_v20 = vpop.f32.mrb[67].mxu0  ;;  %v4156_v52 = vadd.f32 %v5865_v12, %v4078_v17  ;;  %v4465_v29 = vsel %vm629_vm4, %v4460_v42, %v4464_v21 }
 0x4f1   : > { %4870 = vrot.lane.b32.xlu1 %v4633_v54, %s8777_s16  ;;  %4780 = vrot.lane.b32.xlu0 %v4633_v54, %s8781_s22  ;;  %v4949_v20 = vsel %vm1242_vm8, %v6338_v4, %v8172_v45 }
 0x4f2   : > { %v4157_v34 = vadd.f32 %v5866_v10, %v4081_v46  ;;  %v8185_v27 = vpop.permute.xlu0 %4655 }
 0x4f3   : > { %v4767_v3 = vpop.permute.xlu1 %4766 }
 0x4f4   : > { %v4186_v55 = vpack.c.bf16 %v4157_v34, %v4156_v52 }
 0x4f5   : > { %4669 = vrot.lane.b32.xlu1 %v4633_v54, %s8780_s24  ;;  %4744 = vrot.lane.b32.xlu0 %v4465_v29, %s8774_s12 }
 0x4f6   : > { %v4251_v33 = vshrl.u32 %v4186_v55, 16  ;;  %v4254_v62 = vshll.u32 %v4186_v55, 16 }
 0x4f7   : > { %v8183_v0 = vpop.permute.xlu1 %4550 }
 0x4f8   : > { %v4253_v37 = vrot.slane %v4251_v33, 7 }
 0x4f9   : > { %4840 = vrot.lane.b32.xlu1 %v4465_v29, %s8771_s25  ;;  %4564 = vrot.lane.b32.xlu0 %v4465_v29, %s8782_s29 }
 0x4fa   : > { %v4256_v39 = vor.u32 %v4254_v62, %v4253_v37  ;;  %v4085_v57 = vpop.f32.mrb[68].mxu0  ;;  %v4362_v32 = vsel %vm6070_vm2, %v4253_v37, 0 }
 0x4fb   : > { %v4086_v47 = vadd.f32 %v7955_v63, %v4085_v57  ;;  %v4731_v23 = vpop.permute.xlu1 %4730  ;;  %v4087_v56 = vpop.f32.mrb[69].mxu0  ;;  %v4635_v15 = vrot.slane %v4362_v32, 1  ;;  %v4474_v49 = vshll.u32 %v4362_v32, 16 }
 0x4fc   : > { %v4088_v43 = vpop.f32.mrb[70].mxu0  ;;  %v8192_v1 = vpop.permute.xlu0 %4688  ;;  %v8196_v50 = vsel %vm6070_vm2, 0, %v4256_v39  ;;  %v4981_v54 = vsel %vm1275_vm9, %v4949_v20, %v4731_v23 }
 0x4fd   : > { %v4089_v8 = vadd.f32 %v7955_v63, %v4088_v43  ;;  %4702 = vrot.lane.b32.xlu1 %v8196_v50, %s8779_s30  ;;  %v4090_v11 = vpop.f32.mrb[71].mxu0  ;;  %4812 = vrot.lane.b32.xlu0 %v8196_v50, %s8783_s15  ;;  %v4634_v13 = vrot.slane %v8196_v50, 1  ;;  %v4469_v58 = vshll.u32 %v8196_v50, 16  ;;  %v4158_v38 = vadd.f32 %v5867_v40, %v4086_v47  ;;  %v5869_v43 = vld [vmem:[%s6092_s14 + $0xa0] sm:$0xff] }
 0x4fe   : > { %v4467_v24 = vshrl.u32 %v8196_v50, 16  ;;  %v4476_v17 = vrot.slane %v4474_v49, 1  ;;  %v5013_v34 = vsel %vm1308_vm10, %v4981_v54, %v4767_v3  ;;  %v5870_v11 = vld [vmem:[%s6092_s14 + $0xa8] sm:$0xff]  ;;  %v4889_v49 = vsel %vm8784_vm5, %v7980_v60, %v8183_v0  ;;  %vm8790_vm5 = vmmov %vm8788_vm0 }
 0x4ff   : > { %v4159_v44 = vadd.f32 %v5868_v25, %v4089_v8  ;;  %v4799_v9 = vpop.permute.xlu1 %4798  ;;  %v4636_v26 = vsel %vm886_vm3, %v4634_v13, %v4635_v15  ;;  %v4471_v35 = vrot.slane %v4469_v58, 1 }
 0x500   : > { %v8208_v31 = vpop.permute.xlu0 %4768  ;;  %v5045_v29 = vsel %vm1341_vm11, %v5013_v34, %v4799_v9 }
 0x501   : > { %v4187_v53 = vpack.c.bf16 %v4159_v44, %v4158_v38  ;;  %4872 = vrot.lane.b32.xlu1 %v4636_v26, %s8777_s16  ;;  %4671 = vrot.lane.b32.xlu0 %v4636_v26, %s8780_s24  ;;  %v4472_v14 = vor.u32 %v4471_v35, %v4467_v24 }
 0x503   : > { %v4258_v61 = vshrl.u32 %v4187_v53, 16  ;;  %v4859_v28 = vpop.permute.xlu1 %4858  ;;  %v4477_v30 = vsel %vm629_vm4, %v4472_v14, %v4476_v17  ;;  %v4261_v46 = vshll.u32 %v4187_v53, 16 }
 0x504   : > { %v4733_v48 = vpop.permute.xlu0 %4732 }
 0x505   : > { %v4260_v22 = vrot.slane %v4258_v61, 7  ;;  %4782 = vrot.lane.b32.xlu1 %v4636_v26, %s8781_s22  ;;  %4842 = vrot.lane.b32.xlu0 %v4477_v30, %s8771_s25  ;;  %v4919_v26 = vsel %vm8785_vm6, %v4889_v49, %v8185_v27  ;;  %vm8791_vm6 = vmmov %vm8789_vm1 }
 0x506   : > { %v4951_v53 = vsel %vm1242_vm8, %v4919_v26, %v8192_v1 }
 0x507   : > { %v4263_v42 = vor.u32 %v4261_v46, %v4260_v22  ;;  %v8220_v12 = vpop.permute.xlu1 %4657  ;;  %v4363_v55 = vsel %vm6070_vm2, %v4260_v22, 0  ;;  %v4983_v14 = vsel %vm1275_vm9, %v4951_v53, %v4733_v48 }
 0x508   : > { %v8229_v21 = vpop.permute.xlu0 %4552  ;;  %v4638_v23 = vrot.slane %v4363_v55, 1  ;;  %v4486_v58 = vshll.u32 %v4363_v55, 16  ;;  %v5015_v22 = vsel %vm1308_vm10, %v4983_v14, %v8208_v31 }
 0x509   : > { %4746 = vrot.lane.b32.xlu1 %v4477_v30, %s8774_s12  ;;  %v4093_v52 = vpop.f32.mrb[72].mxu0  ;;  %4566 = vrot.lane.b32.xlu0 %v4477_v30, %s8782_s29  ;;  %v8226_v10 = vsel %vm6070_vm2, 0, %v4263_v42 }
 0x50a   : > { %v4094_v4 = vadd.f32 %v7955_v63, %v4093_v52  ;;  %v4095_v45 = vpop.f32.mrb[73].mxu0  ;;  %v4481_v62 = vshll.u32 %v8226_v10, 16  ;;  %v4637_v32 = vrot.slane %v8226_v10, 1  ;;  %v4479_v15 = vshrl.u32 %v8226_v10, 16 }
 0x50b   : > { %v4829_v33 = vpop.permute.xlu1 %4828  ;;  %v4096_v37 = vpop.f32.mrb[74].mxu0  ;;  %v4488_v35 = vrot.slane %v4486_v58, 1 }
 0x50c   : > { %v5076_v39 = vsel %vm1374_vm12, %v5045_v29, %v4829_v33  ;;  %v4097_v3 = vadd.f32 %v7955_v63, %v4096_v37  ;;  %v4098_v57 = vpop.f32.mrb[75].mxu0  ;;  %v4483_v56 = vrot.slane %v4481_v62, 1  ;;  %v4160_v8 = vadd.f32 %v5869_v43, %v4094_v4  ;;  %v5871_v29 = vld [vmem:[%s6092_s14 + $0xb0] sm:$0xff]  ;;  %v5872_v37 = vld [vmem:[%s6092_s14 + $0xb8] sm:$0xff] }
 0x50d   : > { %4814 = vrot.lane.b32.xlu1 %v8226_v10, %s8783_s15  ;;  %4704 = vrot.lane.b32.xlu0 %v8226_v10, %s8779_s30  ;;  %v5107_v47 = vsel %vm1407_vm13, %v5076_v39, %v4859_v28  ;;  %v4639_v44 = vsel %vm886_vm3, %v4637_v32, %v4638_v23 }
 0x50e   : > { %v4161_v13 = vadd.f32 %v5870_v11, %v4097_v3  ;;  %5729 = vmatprep.mubr.msk.bf16.mxu0 %vm1461_vm14, %v5107_v47  ;;  %v4484_v9 = vor.u32 %v4483_v56, %v4479_v15 }
 0x50f   : > { %v8251_v40 = vpop.permute.xlu1 %4690  ;;  %v4801_v38 = vpop.permute.xlu0 %4800 }
 0x510   : > { %v4188_v25 = vpack.c.bf16 %v4161_v13, %v4160_v8  ;;  %v4489_v28 = vsel %vm629_vm4, %v4484_v9, %v4488_v35  ;;  %v5047_v48 = vsel %vm1341_vm11, %v5015_v22, %v4801_v38 }
 0x511   : > { %4874 = vrot.lane.b32.xlu1 %v4639_v44, %s8777_s16  ;;  %4784 = vrot.lane.b32.xlu0 %v4639_v44, %s8781_s22 }
 0x512   : > { %v4265_v24 = vshrl.u32 %v4188_v25, 16  ;;  %v4268_v61 = vshll.u32 %v4188_v25, 16 }
 0x513   : > { %v4861_v60 = vpop.permute.xlu1 %4860  ;;  %v8260_v0 = vpop.permute.xlu0 %4659 }
 0x514   : > { %v4267_v17 = vrot.slane %v4265_v24, 7 }
 0x515   : > { %4673 = vrot.lane.b32.xlu1 %v4639_v44, %s8780_s24  ;;  %4748 = vrot.lane.b32.xlu0 %v4489_v28, %s8774_s12  ;;  %v4891_v44 = vsel %vm8786_vm7, %v8000_v16, %v8229_v21  ;;  %vm8792_vm7 = vmmov %vm8788_vm0 }
 0x516   : > { %v4270_v30 = vor.u32 %v4268_v61, %v4267_v17  ;;  %v4101_v27 = vpop.f32.mrb[76].mxu0  ;;  %v4364_v3 = vsel %vm6070_vm2, %v4267_v17, 0 }
 0x517   : > { %v4102_v1 = vadd.f32 %v7955_v63, %v4101_v27  ;;  %v4771_v46 = vpop.permute.xlu1 %4770  ;;  %v4103_v20 = vpop.f32.mrb[77].mxu0  ;;  %v4641_v56 = vrot.slane %v4364_v3, 1  ;;  %v4498_v8 = vshll.u32 %v4364_v3, 16 }
 0x518   : > { %v4831_v54 = vpop.permute.xlu0 %4830  ;;  %v4104_v42 = vpop.f32.mrb[78].mxu0  ;;  %v8272_v52 = vsel %vm6070_vm2, 0, %v4270_v30 }
 0x519   : > { %v5078_v34 = vsel %vm1374_vm12, %v5047_v48, %v4831_v54  ;;  %v4105_v4 = vadd.f32 %v7955_v63, %v4104_v42  ;;  %4844 = vrot.lane.b32.xlu1 %v4489_v28, %s8771_s25  ;;  %v4106_v31 = vpop.f32.mrb[79].mxu0  ;;  %4568 = vrot.lane.b32.xlu0 %v4489_v28, %s8782_s29  ;;  %v4493_v55 = vshll.u32 %v8272_v52, 16  ;;  %v4162_v33 = vadd.f32 %v5871_v29, %v4102_v1  ;;  %v5873_v48 = vld [vmem:[%s6092_s14 + $0xc0] sm:$0xff]  ;;  %v5874_v42 = vld [vmem:[%s6092_s14 + $0xc8] sm:$0xff] }
 0x51a   : > { %v5109_v45 = vsel %vm1407_vm13, %v5078_v34, %v4861_v60  ;;  %v4640_v32 = vrot.slane %v8272_v52, 1  ;;  %v4491_v43 = vshrl.u32 %v8272_v52, 16  ;;  %v4500_v9 = vrot.slane %v4498_v8, 1 }
 0x51b   : > { %v4163_v62 = vadd.f32 %v5872_v37, %v4105_v4  ;;  %5730 = vmatmul.mubr.msk.bf16.vlgmr.msra.gmra.mrb[96].mxu0 %vm1461_vm14, %v5109_v45  ;;  %v4735_v39 = vpop.permute.xlu1 %4734  ;;  %v4495_v47 = vrot.slane %v4493_v55, 1  ;;  %v4921_v60 = vsel %vm8787_vm15, %v4891_v44, %v8220_v12  ;;  %vm8793_vm15 = vmmov %vm8789_vm1 }
 0x51c   : > { %v8285_v57 = vpop.permute.xlu0 %4554  ;;  %v4642_v58 = vsel %vm886_vm3, %v4640_v32, %v4641_v56  ;;  %v4953_v16 = vsel %vm1242_vm8, %v4921_v60, %v8251_v40 }
 0x51d   : > { %v4189_v23 = vpack.c.bf16 %v4163_v62, %v4162_v33  ;;  %4706 = vrot.lane.b32.xlu1 %v8272_v52, %s8779_s30  ;;  %4816 = vrot.lane.b32.xlu0 %v8272_v52, %s8783_s15  ;;  %v4496_v49 = vor.u32 %v4495_v47, %v4491_v43  ;;  %v4985_v28 = vsel %vm1275_vm9, %v4953_v16, %v4735_v39 }
 0x51e   : > { %v5017_v40 = vsel %vm1308_vm10, %v4985_v28, %v4771_v46 }
 0x51f   : > { %v4272_v11 = vshrl.u32 %v4189_v23, 16  ;;  %v4803_v13 = vpop.permute.xlu1 %4802  ;;  %v4275_v25 = vshll.u32 %v4189_v23, 16  ;;  %v4501_v53 = vsel %vm629_vm4, %v4496_v49, %v4500_v9  ;;  %v4893_v23 = vsel %vm8788_vm0, %v8038_v36, %v8285_v57 }
 0x520   : > { %v8293_v15 = vpop.permute.xlu0 %4692  ;;  %v5049_v4 = vsel %vm1341_vm11, %v5017_v40, %v4803_v13  ;;  %v4923_v49 = vsel %vm8789_vm1, %v4893_v23, %v8260_v0 }
 0x521   : > { %v4274_v38 = vrot.slane %v4272_v11, 7  ;;  %4876 = vrot.lane.b32.xlu1 %v4642_v58, %s8777_s16  ;;  %4675 = vrot.lane.b32.xlu0 %v4642_v58, %s8780_s24  ;;  %v4955_v36 = vsel %vm1242_vm8, %v4923_v49, %v8293_v15 }
 0x523   : > { %v4277_v26 = vor.u32 %v4275_v25, %v4274_v38  ;;  %v4863_v24 = vpop.permute.xlu1 %4862  ;;  %v4365_v45 = vsel %vm6070_vm2, %v4274_v38, 0 }
 0x524   : > { %v8301_v35 = vpop.permute.xlu0 %4772  ;;  %v4644_v3 = vrot.slane %v4365_v45, 1  ;;  %v4510_v47 = vshll.u32 %v4365_v45, 16 }
 0x525   : > { %4786 = vrot.lane.b32.xlu1 %v4642_v58, %s8781_s22  ;;  %v4109_v14 = vpop.f32.mrb[80].mxu0  ;;  %4846 = vrot.lane.b32.xlu0 %v4501_v53, %s8771_s25  ;;  %v8310_v17 = vsel %vm6070_vm2, 0, %v4277_v26 }
 0x526   : > { %v4110_v21 = vadd.f32 %v7955_v63, %v4109_v14  ;;  %v4111_v61 = vpop.f32.mrb[81].mxu0  ;;  %v4505_v20 = vshll.u32 %v8310_v17, 16  ;;  %v4643_v37 = vrot.slane %v8310_v17, 1  ;;  %v4503_v32 = vshrl.u32 %v8310_v17, 16 }
 0x527   : > { %v8316_v12 = vpop.permute.xlu1 %4661  ;;  %v4112_v30 = vpop.f32.mrb[82].mxu0  ;;  %v4512_v44 = vrot.slane %v4510_v47, 1  ;;  %v5875_v61 = vld [vmem:[%s6092_s14 + $0xd0] sm:$0xff] }
 0x528   : > { %v4113_v27 = vadd.f32 %v7955_v63, %v4112_v30  ;;  %v4737_v22 = vpop.permute.xlu0 %4736  ;;  %v4114_v1 = vpop.f32.mrb[83].mxu0  ;;  %v4164_v54 = vadd.f32 %v5873_v48, %v4110_v21  ;;  %v4507_v62 = vrot.slane %v4505_v20, 1  ;;  %v4645_v13 = vsel %vm886_vm3, %v4643_v37, %v4644_v3  ;;  %v5876_v30 = vld [vmem:[%s6092_s14 + $0xd8] sm:$0xff] }
 0x529   : > { %4750 = vrot.lane.b32.xlu1 %v4501_v53, %s8774_s12  ;;  %4570 = vrot.lane.b32.xlu0 %v4501_v53, %s8782_s29 }
 0x52a   : > { %v4165_v34 = vadd.f32 %v5874_v42, %v4113_v27  ;;  %v4508_v58 = vor.u32 %v4507_v62, %v4503_v32 }
 0x52b   : > { %v4833_v31 = vpop.permute.xlu1 %4832 }
 0x52c   : > { %v4190_v55 = vpack.c.bf16 %v4165_v34, %v4164_v54  ;;  %v5080_v29 = vsel %vm1374_vm12, %v5049_v4, %v4833_v31  ;;  %v8329_v33 = vpop.permute.xlu0 %4556  ;;  %v4513_v14 = vsel %vm629_vm4, %v4508_v58, %v4512_v44 }
 0x52d   : > { %4818 = vrot.lane.b32.xlu1 %v8310_v17, %s8783_s15  ;;  %4708 = vrot.lane.b32.xlu0 %v8310_v17, %s8779_s30  ;;  %v5111_v46 = vsel %vm1407_vm13, %v5080_v29, %v4863_v24  ;;  %v4987_v24 = vsel %vm1275_vm9, %v4955_v36, %v4737_v22 }
 0x52e   : > { %v4279_v39 = vshrl.u32 %v4190_v55, 16  ;;  %5733 = vmatprep.mubr.msk.bf16.mxu1 %vm1461_vm14, %v5111_v46  ;;  %v4282_v8 = vshll.u32 %v4190_v55, 16  ;;  %v5019_v21 = vsel %vm1308_vm10, %v4987_v24, %v8301_v35  ;;  %v5878_v24 = vld [vmem:[%s6092_s14 + $0xe0] sm:$0xff] }
 0x52f   : > { %v8342_v56 = vpop.permute.xlu1 %4694 }
 0x530   : > { %v4281_v43 = vrot.slane %v4279_v39, 7  ;;  %v4805_v11 = vpop.permute.xlu0 %4804 }
 0x531   : > { %4878 = vrot.lane.b32.xlu1 %v4645_v13, %s8777_s16  ;;  %4788 = vrot.lane.b32.xlu0 %v4645_v13, %s8781_s22  ;;  %v5051_v1 = vsel %vm1341_vm11, %v5019_v21, %v4805_v11  ;;  %v5877_v11 = vld [vmem:[%s8730_s6] ss:$0 sm:$0xff] }
 0x532   : > { %v4284_v38 = vor.u32 %v4282_v8, %v4281_v43  ;;  %v4117_v25 = vpop.f32.mrb[84].mxu0  ;;  %v4366_v34 = vsel %vm6070_vm2, %v4281_v43, 0  ;;  %v4895_v8 = vsel %vm8790_vm5, %v8060_v7, %v8329_v33  ;;  %vm8794_vm5 = vmmov %vm8788_vm0 }
 0x533   : > { %v4118_v57 = vadd.f32 %v7955_v63, %v4117_v25  ;;  %v4865_v9 = vpop.permute.xlu1 %4864  ;;  %v4119_v26 = vpop.f32.mrb[85].mxu0  ;;  %v4647_v29 = vrot.slane %v4366_v34, 1  ;;  %v4522_v62 = vshll.u32 %v4366_v34, 16  ;;  %v4925_v7 = vsel %vm8791_vm6, %v4895_v8, %v8316_v12  ;;  %vm8798_vm6 = vmmov %vm8788_vm0 }
 0x534   : > { %v8353_v53 = vpop.permute.xlu0 %4663  ;;  %v4120_v60 = vpop.f32.mrb[86].mxu0  ;;  %v8361_v15 = vsel %vm6070_vm2, 0, %v4284_v38  ;;  %v4957_v26 = vsel %vm1242_vm8, %v4925_v7, %v8342_v56 }
 0x535   : > { %v4121_v0 = vadd.f32 %v7955_v63, %v4120_v60  ;;  %4677 = vrot.lane.b32.xlu1 %v4645_v13, %s8780_s24  ;;  %v4122_v16 = vpop.f32.mrb[87].mxu0  ;;  %4752 = vrot.lane.b32.xlu0 %v4513_v14, %s8774_s12  ;;  %v4166_v28 = vadd.f32 %v5875_v61, %v4118_v57  ;;  %v4517_v20 = vshll.u32 %v8361_v15, 16  ;;  %v4646_v31 = vrot.slane %v8361_v15, 1 }
 0x536   : > { %v4515_v37 = vshrl.u32 %v8361_v15, 16  ;;  %v4524_v49 = vrot.slane %v4522_v62, 1 }
 0x537   : > { %v4167_v27 = vadd.f32 %v5876_v30, %v4121_v0  ;;  %v4775_v22 = vpop.permute.xlu1 %4774  ;;  %v4519_v45 = vrot.slane %v4517_v20, 1  ;;  %v4648_v32 = vsel %vm886_vm3, %v4646_v31, %v4647_v29 }
 0x538   : > { %v4835_v63 = vpop.permute.xlu0 %4834 }
 0x539   : > { %v4191_v40 = vpack.c.bf16 %v4167_v27, %v4166_v28  ;;  %v5082_v48 = vsel %vm1374_vm12, %v5051_v1, %v4835_v63  ;;  %4848 = vrot.lane.b32.xlu1 %v4513_v14, %s8771_s25  ;;  %4572 = vrot.lane.b32.xlu0 %v4513_v14, %s8782_s29  ;;  %v4520_v47 = vor.u32 %v4519_v45, %v4515_v37  ;;  %v5879_v14 = vld [vmem:[%s6092_s14 + $0xe8] sm:$0xff] }
 0x53a   : > { %v5113_v54 = vsel %vm1407_vm13, %v5082_v48, %v4865_v9 }
 0x53b   : > { %v4286_v35 = vshrl.u32 %v4191_v40, 16  ;;  %5734 = vmatmul.mubr.msk.bf16.vlgmr.msra.gmra.mrb[64].mxu1 %vm1461_vm14, %v5113_v54  ;;  %v4739_v42 = vpop.permute.xlu1 %4738  ;;  %v4289_v46 = vshll.u32 %v4191_v40, 16  ;;  %v4525_v9 = vsel %vm629_vm4, %v4520_v47, %v4524_v49 }
 0x53c   : > { %v8376_v4 = vpop.permute.xlu0 %4558  ;;  %v4989_v16 = vsel %vm1275_vm9, %v4957_v26, %v4739_v42 }
 0x53d   : > { %v4288_v55 = vrot.slane %v4286_v35, 7  ;;  %4710 = vrot.lane.b32.xlu1 %v8361_v15, %s8779_s30  ;;  %4820 = vrot.lane.b32.xlu0 %v8361_v15, %s8783_s15  ;;  %v5021_v30 = vsel %vm1308_vm10, %v4989_v16, %v4775_v22  ;;  %v4897_v62 = vsel %vm8792_vm7, %v8088_v19, %v8376_v4  ;;  %vm8799_vm7 = vmmov %vm8789_vm1 }
 0x53e   : > { %v4927_v19 = vsel %vm8793_vm15, %v4897_v62, %v8353_v53  ;;  %vm8800_vm15 = vmmov %vm8788_vm0 }
 0x53f   : > { %v4807_v39 = vpop.permute.xlu1 %4806  ;;  %v4291_v23 = vor.u32 %v4289_v46, %v4288_v55  ;;  %v4367_v63 = vsel %vm6070_vm2, %v4288_v55, 0 }
 0x540   : > { %v8384_v3 = vpop.permute.xlu0 %4696  ;;  %v5053_v56 = vsel %vm1341_vm11, %v5021_v30, %v4807_v39  ;;  %v4650_v55 = vrot.slane %v4367_v63, 1  ;;  %v4534_v37 = vshll.u32 %v4367_v63, 16 }
 0x541   : > { %4880 = vrot.lane.b32.xlu1 %v4648_v32, %s8777_s16  ;;  %v4125_v43 = vpop.f32.mrb[88].mxu0  ;;  %4679 = vrot.lane.b32.xlu0 %v4648_v32, %s8780_s24  ;;  %v8404_v33 = vsel %vm6070_vm2, 0, %v4291_v23 }
 0x542   : > { %v4126_v13 = vadd.f32 %v5877_v11, %v4125_v43  ;;  %v4127_v58 = vpop.f32.mrb[89].mxu0  ;;  %v4529_v28 = vshll.u32 %v8404_v33, 16  ;;  %v4649_v54 = vrot.slane %v8404_v33, 1  ;;  %v4527_v29 = vshrl.u32 %v8404_v33, 16 }
 0x543   : > { %v4867_v38 = vpop.permute.xlu1 %4866  ;;  %v4128_v25 = vpop.f32.mrb[90].mxu0  ;;  %v5880_v58 = vld [vmem:[%s6092_s14 + $0xf0] sm:$0xff]  ;;  %v4536_v4 = vrot.slane %v4534_v37, 1 }
 0x544   : > { %v4129_v44 = vadd.f32 %v5877_v11, %v4128_v25  ;;  %v8395_v36 = vpop.permute.xlu0 %4776  ;;  %v4130_v57 = vpop.f32.mrb[91].mxu0  ;;  %v4168_v60 = vadd.f32 %v5878_v24, %v4126_v13  ;;  %v4531_v35 = vrot.slane %v4529_v28, 1  ;;  %v4651_v43 = vsel %vm886_vm3, %v4649_v54, %v4650_v55 }
 0x545   : > { %4790 = vrot.lane.b32.xlu1 %v4648_v32, %s8781_s22  ;;  %4850 = vrot.lane.b32.xlu0 %v4525_v9, %s8771_s25 }
 0x546   : > { %v4169_v0 = vadd.f32 %v5879_v14, %v4129_v44  ;;  %v4532_v8 = vor.u32 %v4531_v35, %v4527_v29 }
 0x547   : > { %v8411_v21 = vpop.permute.xlu1 %4665 }
 0x548   : > { %v4192_v12 = vpack.c.bf16 %v4169_v0, %v4168_v60  ;;  %v4741_v61 = vpop.permute.xlu0 %4740  ;;  %v4537_v26 = vsel %vm629_vm4, %v4532_v8, %v4536_v4 }
 0x549   : > { %4754 = vrot.lane.b32.xlu1 %v4525_v9, %s8774_s12  ;;  %4574 = vrot.lane.b32.xlu0 %v4525_v9, %s8782_s29 }
 0x54a   : > { %v4293_v27 = vshrl.u32 %v4192_v12, 16  ;;  %v4296_v46 = vshll.u32 %v4192_v12, 16 }
 0x54b   : > { %v4837_v1 = vpop.permute.xlu1 %4836 }
 0x54c   : > { %v5084_v20 = vsel %vm1374_vm12, %v5053_v56, %v4837_v1  ;;  %v8421_v40 = vpop.permute.xlu0 %4560  ;;  %v4133_v48 = vpop.f32.mrb[92].mxu0  ;;  %v4295_v42 = vrot.slane %v4293_v27, 7 }
 0x54d   : > { %v4134_v34 = vadd.f32 %v5877_v11, %v4133_v48  ;;  %4822 = vrot.lane.b32.xlu1 %v8404_v33, %s8783_s15  ;;  %v4135_v22 = vpop.f32.mrb[93].mxu0  ;;  %4712 = vrot.lane.b32.xlu0 %v8404_v33, %s8779_s30  ;;  %v5115_v31 = vsel %vm1407_vm13, %v5084_v20, %v4867_v38  ;;  %v5881_v38 = vld [vmem:[%s6092_s14 + $0xf8] sm:$0xff] }
 0x54e   : > { %v4136_v45 = vpop.f32.mrb[94].mxu0  ;;  %5737 = vmatprep.mubr.msk.bf16.mxu1 %vm1461_vm14, %v5115_v31  ;;  %v4298_v13 = vor.u32 %v4296_v46, %v4295_v42 }
 0x54f   : > { %v4137_v39 = vadd.f32 %v5877_v11, %v4136_v45  ;;  %v8434_v32 = vpop.permute.xlu1 %4698  ;;  %v4138_v47 = vpop.f32.mrb[95].mxu0  ;;  %v4170_v49 = vadd.f32 %v5880_v58, %v4134_v34  ;;  %v4959_v11 = vsel %vm1242_vm8, %v4927_v19, %v8384_v3  ;;  %v4899_v45 = vsel %vm8788_vm0, %v8110_v41, %v8421_v40 }
 0x550   : > { %v4809_v23 = vpop.permute.xlu0 %4808  ;;  %v4991_v9 = vsel %vm1275_vm9, %v4959_v11, %v4741_v61  ;;  %v8453_v24 = vsel %vm6070_vm2, 0, %v4298_v13  ;;  %v4929_v46 = vsel %vm8789_vm1, %v4899_v45, %v8411_v21 }
 0x551   : > { %v4171_v25 = vadd.f32 %v5881_v38, %v4137_v39  ;;  %4882 = vrot.lane.b32.xlu1 %v4651_v43, %s8777_s16  ;;  %4792 = vrot.lane.b32.xlu0 %v4651_v43, %s8781_s22  ;;  %v5023_v53 = vsel %vm1308_vm10, %v4991_v9, %v8395_v36  ;;  %v4541_v0 = vshll.u32 %v8453_v24, 16  ;;  %v4368_v36 = vsel %vm6070_vm2, %v4295_v42, 0 }
 0x552   : > { %v5055_v60 = vsel %vm1341_vm11, %v5023_v53, %v4809_v23  ;;  %v4652_v27 = vrot.slane %v8453_v24, 1  ;;  %v4653_v63 = vrot.slane %v4368_v36, 1  ;;  %v4539_v20 = vshrl.u32 %v8453_v24, 16 }
 0x553   : > { %v4193_v44 = vpack.c.bf16 %v4171_v25, %v4170_v49  ;;  %v4869_v57 = vpop.permute.xlu1 %4868  ;;  %v4543_v56 = vrot.slane %v4541_v0, 1  ;;  %v4546_v48 = vshll.u32 %v4368_v36, 16  ;;  %v4961_v47 = vsel %vm1242_vm8, %v4929_v46, %v8434_v32 }
 0x554   : > { %v8446_v7 = vpop.permute.xlu0 %4667  ;;  %v4654_v42 = vsel %vm886_vm3, %v4652_v27, %v4653_v63 }
 0x555   : > { %4681 = vrot.lane.b32.xlu1 %v4651_v43, %s8780_s24  ;;  %4756 = vrot.lane.b32.xlu0 %v4537_v26, %s8774_s12  ;;  %v4300_v16 = vshrl.u32 %v4193_v44, 16  ;;  %v4303_v54 = vshll.u32 %v4193_v44, 16  ;;  %v4544_v22 = vor.u32 %v4543_v56, %v4539_v20  ;;  %v4548_v55 = vrot.slane %v4546_v48, 1 }
 0x557   : > { %v4779_v3 = vpop.permute.xlu1 %4778  ;;  %v4302_v1 = vrot.slane %v4300_v16, 7  ;;  %v4549_v62 = vsel %vm629_vm4, %v4544_v22, %v4548_v55 }
 0x558   : > { %v4839_v14 = vpop.permute.xlu0 %4838 }
 0x559   : > { %v5086_v12 = vsel %vm1374_vm12, %v5055_v60, %v4839_v14  ;;  %4852 = vrot.lane.b32.xlu1 %v4537_v26, %s8771_s25  ;;  %4576 = vrot.lane.b32.xlu0 %v4537_v26, %s8782_s29  ;;  %v4305_v31 = vor.u32 %v4303_v54, %v4302_v1  ;;  %v4369_v58 = vsel %vm6070_vm2, %v4302_v1, 0 }
 0x55a   : > { %v5117_v61 = vsel %vm1407_vm13, %v5086_v12, %v4869_v57  ;;  %v4764_v4 = vrot.slane %v4369_v58, 1  ;;  %v4726_v44 = vshll.u32 %v4369_v58, 16 }
 0x55b   : > { %5738 = vmatmul.mubr.msk.bf16.gmra.mrb[68].mxu1 %vm1461_vm14, %v5117_v61  ;;  %v4743_v28 = vpop.permute.xlu1 %4742  ;;  %v4353_v39 = vsel %vm6070_vm2, 0, %v4305_v31  ;;  %vm8795_vm2 = vmmov %vm8789_vm1 }
 0x55c   : > { %v4563_v30 = vpop.permute.xlu0 %4562  ;;  %v4993_v41 = vsel %vm1275_vm9, %v4961_v47, %v4743_v28  ;;  %v4721_v43 = vshll.u32 %v4353_v39, 16  ;;  %v4763_v38 = vrot.slane %v4353_v39, 1  ;;  %v4719_v11 = vshrl.u32 %v4353_v39, 16 }
 0x55d   : > { %4714 = vrot.lane.b32.xlu1 %v8453_v24, %s8779_s30  ;;  %4824 = vrot.lane.b32.xlu0 %v8453_v24, %s8783_s15  ;;  %v5025_v21 = vsel %vm1308_vm10, %v4993_v41, %v4779_v3  ;;  %v4901_v2 = vsel %vm8794_vm5, %v8138_v59, %v4563_v30  ;;  %v4728_v60 = vrot.slane %v4726_v44, 1 }
 0x55e   : > { %v4723_v25 = vrot.slane %v4721_v43, 1  ;;  %v4765_v26 = vsel %vm886_vm3, %v4763_v38, %v4764_v4  ;;  %v4931_v3 = vsel %vm8795_vm2, %v4901_v2, %v8446_v7  ;;  %vm8796_vm3 = vmmov %vm8788_vm0 }
 0x55f   : > { %v4811_v35 = vpop.permute.xlu1 %4810  ;;  %vm8801_vm0 = vmmov %vm8789_vm1 }
 0x560   : > { %v4701_v34 = vpop.permute.xlu0 %4700  ;;  %v5057_v8 = vsel %vm1341_vm11, %v5025_v21, %v4811_v35  ;;  %v4724_v53 = vor.u32 %v4723_v25, %v4719_v11  ;;  %vm8803_vm5 = vmmov %vm8801_vm0 }
 0x561   : > { %4884 = vrot.lane.b32.xlu1 %v4654_v42, %s8777_s16  ;;  %4683 = vrot.lane.b32.xlu0 %v4654_v42, %s8780_s24  ;;  %v4963_v14 = vsel %vm1242_vm8, %v4931_v3, %v4701_v34 }
 0x562   : > { %v4729_v59 = vsel %vm629_vm4, %v4724_v53, %v4728_v60  ;;  %vm8797_vm4 = vmmov %vm8789_vm1 }
 0x563   : > { %v4871_v29 = vpop.permute.xlu1 %4870  ;;  %vm8802_vm1 = vmmov %vm8796_vm3 }
 0x564   : > { %v4781_v37 = vpop.permute.xlu0 %4780  ;;  %vm8804_vm2 = vmmov %vm8802_vm1 }
 0x565   : > { %4794 = vrot.lane.b32.xlu1 %v4654_v42, %s8781_s22  ;;  %4854 = vrot.lane.b32.xlu0 %v4549_v62, %s8771_s25 }
 0x567   : > { %v4670_v40 = vpop.permute.xlu1 %4669 }
 0x568   : > { %v4745_v23 = vpop.permute.xlu0 %4744 }
 0x569   : > { %4758 = vrot.lane.b32.xlu1 %v4549_v62, %s8774_s12  ;;  %4578 = vrot.lane.b32.xlu0 %v4549_v62, %s8782_s29  ;;  %v4995_v16 = vsel %vm1275_vm9, %v4963_v14, %v4745_v23 }
 0x56a   : > { %v5027_v61 = vsel %vm1308_vm10, %v4995_v16, %v4781_v37 }
 0x56b   : > { %v4841_v13 = vpop.permute.xlu1 %4840 }
 0x56c   : > { %v5088_v49 = vsel %vm1374_vm12, %v5057_v8, %v4841_v13  ;;  %v4565_v32 = vpop.permute.xlu0 %4564 }
 0x56d   : > { %4826 = vrot.lane.b32.xlu1 %v4353_v39, %s8783_s15  ;;  %4716 = vrot.lane.b32.xlu0 %v4353_v39, %s8779_s30  ;;  %v5119_v19 = vsel %vm1407_vm13, %v5088_v49, %v4871_v29  ;;  %v4903_v48 = vsel %vm8796_vm3, %v8160_v18, %v4565_v32  ;;  %vm8805_vm3 = vmmov %vm8801_vm0  ;;  %s5886_s30 = sshll.u32 %s5960_s21, 4  ;;  %s5887_s30 = int_to_ptr.vmem [resolvable:$false] %s5886_s30 }
 0x56e   : > { %5741 = vmatprep.mubr.msk.bf16.mxu1 %vm1461_vm14, %v5119_v19  ;;  %v4933_v34 = vsel %vm8797_vm4, %v4903_v48, %v4670_v40  ;;  %vm8806_vm4 = vmmov %vm8802_vm1  ;;  %s5888_s24 = scalar_lea.vmem %s5887_s30, 32 }
 0x56f   : > { %v4703_v57 = vpop.permute.xlu1 %4702 }
 0x570   : > { %v4813_v9 = vpop.permute.xlu0 %4812  ;;  %v4965_v42 = vsel %vm1242_vm8, %v4933_v34, %v4703_v57 }
 0x571   : > { %4886 = vrot.lane.b32.xlu1 %v4765_v26, %s8777_s16  ;;  %4796 = vrot.lane.b32.xlu0 %v4765_v26, %s8781_s22  ;;  %v5059_v36 = vsel %vm1341_vm11, %v5027_v61, %v4813_v9  ;;  %s377_s22 = sand.u32 1, %s5936_s18  }
 0x572   : > { %s378_s13 = scalar_lea.vmem [#allocation2], %s377_s22 }
 0x573   : > { %v4873_v0 = vpop.permute.xlu1 %4872  ;;  %s5490_s1 = sshll.u32 %s378_s13, 4  ;;  %s8684_s1 = int_to_ptr.vmem [resolvable:$true] %s5490_s1 }
 0x574   : > { %v4672_v12 = vpop.permute.xlu0 %4671  ;;  %s5882_s16 = scalar_lea.vmem %s8684_s1, 16  ;;  %p5889_p0 = scmp.lt.s32.totalorder %s8684_s1, %s5887_s30 }
 0x575   : > { %4760 = vrot.lane.b32.xlu0 %v4729_v59, %s8774_s12  ;;  %s5478_s12 = scalar_lea.sflag [#allocation3], %s377_s22  ;;  %p5883_p11 = scmp.ne.s32.totalorder %s8684_s1, %s5882_s16 }
 0x576   : > { %p5890_p1 = scmp.lt.s32.totalorder %s5888_s24, %s5882_s16 }
 0x577   : > { %v4783_v28 = vpop.permute.xlu1 %4782  ;;  %p5884_p12 = pnand %p5883_p11, %p6059_p5 }
 0x578   : > { %v4843_v30 = vpop.permute.xlu0 %4842  ;;  %p5891_p2 = por %p5890_p1, %p5889_p0 }
 0x579   : > { %v5090_v27 = vsel %vm1374_vm12, %v5059_v36, %v4843_v30  ;;  %4856 = vrot.lane.b32.xlu0 %v4729_v59, %s8771_s25  ;;  %s8682_s25 = scalar_lea.hbm %s8735_s11, %s5643_s0  ;;  %p5885_p13 = pneg %p5884_p12 }
 0x57a   : > { %v5121_v7 = vsel %vm1407_vm13, %v5090_v27, %v4873_v0 }
 0x57b   : > { %5742 = vmatmul.mubr.msk.bf16.gmra.mrb[72].mxu1 %vm1461_vm14, %v5121_v7  ;;  %v4747_v56 = vpop.permute.xlu1 %4746  ;;  %p5892_p3 = pnand %p5891_p2, %p5885_p13 }
 0x57c   : > { %v4567_v1 = vpop.permute.xlu0 %4566  ;;  %v4997_v22 = vsel %vm1275_vm9, %v4965_v42, %v4747_v56 }
 0x57d   : > { %v5029_v55 = vsel %vm1308_vm10, %v4997_v22, %v4783_v28  ;;  %v4905_v39 = vsel %vm8798_vm6, %v8196_v50, %v4567_v1  ;;  %vm8807_vm6 = vmmov %vm8801_vm0 }
 0x57e   : > { %v4935_v40 = vsel %vm8799_vm7, %v4905_v39, %v4672_v12  ;;  %vm8808_vm7 = vmmov %vm8802_vm1 }
 0x57f   : > { %v4815_v63 = vpop.permute.xlu1 %4814 }
 0x580   : > { %v4705_v20 = vpop.permute.xlu0 %4704  ;;  %v5061_v29 = vsel %vm1341_vm11, %v5029_v55, %v4815_v63 }
 0x581   : > { %v4967_v23 = vsel %vm1242_vm8, %v4935_v40, %v4705_v20 }
 0x583   : > { %v4875_v54 = vpop.permute.xlu1 %4874 }
 0x584   : > { %v4785_v35 = vpop.permute.xlu0 %4784 }
 0x587   : > { %v4674_v31 = vpop.permute.xlu1 %4673 }
 0x588   : > { %v4749_v45 = vpop.permute.xlu0 %4748 }
 0x589   : > { %v4999_v21 = vsel %vm1275_vm9, %v4967_v23, %v4749_v45 }
 0x58a   : > { %v5031_v13 = vsel %vm1308_vm10, %v4999_v21, %v4785_v35 }
 0x58b   : > { %v4845_v37 = vpop.permute.xlu1 %4844 }
 0x58c   : > { %v5092_v62 = vsel %vm1374_vm12, %v5061_v29, %v4845_v37  ;;  %v4569_v46 = vpop.permute.xlu0 %4568 }
 0x58d   : > { %v5123_v18 = vsel %vm1407_vm13, %v5092_v62, %v4875_v54  ;;  %v4907_v44 = vsel %vm8800_vm15, %v8226_v10, %v4569_v46  ;;  %vm8809_vm15 = vmmov %vm8802_vm1 }
 0x58e   : > { %5745 = vmatprep.mubr.msk.bf16.mxu1 %vm1461_vm14, %v5123_v18  ;;  %v4937_v9 = vsel %vm8801_vm0, %v4907_v44, %v4674_v31 }
 0x58f   : > { %v4707_v47 = vpop.permute.xlu1 %4706 }
 0x590   : > { %v4817_v41 = vpop.permute.xlu0 %4816  ;;  %v4969_v26 = vsel %vm1242_vm8, %v4937_v9, %v4707_v47 }
 0x591   : > { %v5063_v49 = vsel %vm1341_vm11, %v5031_v13, %v4817_v41 }
 0x593   : > { %v4877_v43 = vpop.permute.xlu1 %4876 }
 0x594   : > { %v4676_v8 = vpop.permute.xlu0 %4675 }
 0x597   : > { %v4787_v58 = vpop.permute.xlu1 %4786 }
 0x598   : > { %v4847_v32 = vpop.permute.xlu0 %4846 }
 0x599   : > { %v5094_v38 = vsel %vm1374_vm12, %v5063_v49, %v4847_v32 }
 0x59a   : > { %v5125_v50 = vsel %vm1407_vm13, %v5094_v38, %v4877_v43 }
 0x59b   : > { %5746 = vmatmul.mubr.msk.bf16.gmra.mrb[76].mxu1 %vm1461_vm14, %v5125_v50  ;;  %v4751_v25 = vpop.permute.xlu1 %4750 }
 0x59c   : > { %v4571_v19 = vpop.permute.xlu0 %4570  ;;  %v5001_v53 = vsel %vm1275_vm9, %v4969_v26, %v4751_v25 }
 0x59d   : > { %v5033_v14 = vsel %vm1308_vm10, %v5001_v53, %v4787_v58  ;;  %v4909_v61 = vsel %vm8802_vm1, %v8272_v52, %v4571_v19  ;;  %vm8810_vm1 = vmmov %vm8801_vm0 }
 0x59e   : > { %v4939_v30 = vsel %vm8803_vm5, %v4909_v61, %v4676_v8 }
 0x59f   : > { %v4819_v4 = vpop.permute.xlu1 %4818 }
 0x5a0   : > { %v4709_v11 = vpop.permute.xlu0 %4708  ;;  %v5065_v0 = vsel %vm1341_vm11, %v5033_v14, %v4819_v4 }
 0x5a1   : > { %v4971_v27 = vsel %vm1242_vm8, %v4939_v30, %v4709_v11 }
 0x5a3   : > { %v4879_v2 = vpop.permute.xlu1 %4878 }
 0x5a4   : > { %v4789_v57 = vpop.permute.xlu0 %4788 }
 0x5a7   : > { %v4678_v3 = vpop.permute.xlu1 %4677 }
 0x5a8   : > { %v4753_v60 = vpop.permute.xlu0 %4752 }
 0x5a9   : > { %v5003_v56 = vsel %vm1275_vm9, %v4971_v27, %v4753_v60 }
 0x5aa   : > { %v5035_v63 = vsel %vm1308_vm10, %v5003_v56, %v4789_v57 }
 0x5ab   : > { %v4849_v16 = vpop.permute.xlu1 %4848 }
 0x5ac   : > { %v5096_v12 = vsel %vm1374_vm12, %v5065_v0, %v4849_v16  ;;  %v4573_v59 = vpop.permute.xlu0 %4572 }
 0x5ad   : > { %v5127_v10 = vsel %vm1407_vm13, %v5096_v12, %v4879_v2  ;;  %v4911_v45 = vsel %vm8804_vm2, %v8310_v17, %v4573_v59 }
 0x5ae   : > { %5749 = vmatprep.mubr.msk.bf16.mxu1 %vm1461_vm14, %v5127_v10  ;;  %v4941_v37 = vsel %vm8805_vm3, %v4911_v45, %v4678_v3 }
 0x5af   : > { %v4711_v28 = vpop.permute.xlu1 %4710 }
 0x5b0   : > { %v4821_v36 = vpop.permute.xlu0 %4820  ;;  %v4973_v62 = vsel %vm1242_vm8, %v4941_v37, %v4711_v28 }
 0x5b1   : > { %v5067_v48 = vsel %vm1341_vm11, %v5035_v63, %v4821_v36 }
 0x5b3   : > { %v4881_v7 = vpop.permute.xlu1 %4880 }
 0x5b4   : > { %v4680_v1 = vpop.permute.xlu0 %4679 }
 0x5b7   : > { %v4791_v20 = vpop.permute.xlu1 %4790 }
 0x5b8   : > { %v4851_v54 = vpop.permute.xlu0 %4850 }
 0x5b9   : > { %v5098_v35 = vsel %vm1374_vm12, %v5067_v48, %v4851_v54 }
 0x5ba   : > { %v5129_v52 = vsel %vm1407_vm13, %v5098_v35, %v4881_v7 }
 0x5bb   : > { %5750 = vmatmul.mubr.msk.bf16.gmra.mrb[80].mxu1 %vm1461_vm14, %v5129_v52  ;;  %v4755_v34 = vpop.permute.xlu1 %4754 }
 0x5bc   : > { %v4575_v42 = vpop.permute.xlu0 %4574  ;;  %v5005_v46 = vsel %vm1275_vm9, %v4973_v62, %v4755_v34 }
 0x5bd   : > { %v5037_v47 = vsel %vm1308_vm10, %v5005_v46, %v4791_v20  ;;  %v4913_v21 = vsel %vm8806_vm4, %v8361_v15, %v4575_v42 }
 0x5be   : > { %v4943_v58 = vsel %vm8807_vm6, %v4913_v21, %v4680_v1  ;;  %v8597_v1 = vld [vmem:[%s8732_s8] ss:$0 sm:$0xff] }
 0x5bf   : > { %v4823_v22 = vpop.permute.xlu1 %4822 }
 0x5c0   : > { %v4713_v31 = vpop.permute.xlu0 %4712  ;;  %v5069_v41 = vsel %vm1341_vm11, %v5037_v47, %v4823_v22 }
 0x5c1   : > { %v4975_v49 = vsel %vm1242_vm8, %v4943_v58, %v4713_v31 }
 0x5c3   : > { %v4883_v55 = vpop.permute.xlu1 %4882 }
 0x5c4   : > { %v4793_v29 = vpop.permute.xlu0 %4792 }
 0x5c7   : > { %v4682_v18 = vpop.permute.xlu1 %4681 }
 0x5c8   : > { %v4757_v39 = vpop.permute.xlu0 %4756 }
 0x5c9   : > { %v5007_v32 = vsel %vm1275_vm9, %v4975_v49, %v4757_v39 }
 0x5ca   : > { %v5039_v25 = vsel %vm1308_vm10, %v5007_v32, %v4793_v29 }
 0x5cb   : > { %v4853_v40 = vpop.permute.xlu1 %4852 }
 0x5cc   : > { %v5100_v23 = vsel %vm1374_vm12, %v5069_v41, %v4853_v40  ;;  %v4577_v43 = vpop.permute.xlu0 %4576 }
 0x5cd   : > { %v5131_v17 = vsel %vm1407_vm13, %v5100_v23, %v4883_v55  ;;  %v4915_v26 = vsel %vm8808_vm7, %v8404_v33, %v4577_v43 }
 0x5ce   : > { %5753 = vmatprep.mubr.msk.bf16.mxu1 %vm1461_vm14, %v5131_v17  ;;  %v4945_v60 = vsel %vm8801_vm0, %v4915_v26, %v4682_v18 }
 0x5cf   : > { %v4715_v8 = vpop.permute.xlu1 %4714 }
 0x5d0   : > { %v4825_v13 = vpop.permute.xlu0 %4824  ;;  %v4977_v14 = vsel %vm1242_vm8, %v4945_v60, %v4715_v8 }
 0x5d1   : > { %v5071_v19 = vsel %vm1341_vm11, %v5039_v25, %v4825_v13 }
 0x5d3   : > { %v4885_v50 = vpop.permute.xlu1 %4884 }
 0x5d4   : > { %v4684_v38 = vpop.permute.xlu0 %4683 }
 0x5d7   : > { %v4795_v15 = vpop.permute.xlu1 %4794 }
 0x5d8   : > { %v4855_v4 = vpop.permute.xlu0 %4854 }
 0x5d9   : > { %v5102_v11 = vsel %vm1374_vm12, %v5071_v19, %v4855_v4 }
 0x5da   : > { %v5133_v44 = vsel %vm1407_vm13, %v5102_v11, %v4885_v50 }
 0x5db   : > { %5754 = vmatmul.mubr.msk.bf16.gmra.mrb[84].mxu1 %vm1461_vm14, %v5133_v44  ;;  %v4759_v9 = vpop.permute.xlu1 %4758 }
 0x5dc   : > { %v4579_v2 = vpop.permute.xlu0 %4578  ;;  %v5009_v12 = vsel %vm1275_vm9, %v4977_v14, %v4759_v9 }
 0x5dd   : > { %v4917_v53 = vsel %vm8809_vm15, %v8453_v24, %v4579_v2  ;;  %v5041_v28 = vsel %vm1308_vm10, %v5009_v12, %v4795_v15 }
 0x5de   : > { %v4947_v16 = vsel %vm8810_vm1, %v4917_v53, %v4684_v38 }
 0x5df   : > { %v4827_v0 = vpop.permute.xlu1 %4826 }
 0x5e0   : > { %v4717_v57 = vpop.permute.xlu0 %4716  ;;  %v5073_v36 = vsel %vm1341_vm11, %v5041_v28, %v4827_v0 }
 0x5e1   : > { %v4979_v59 = vsel %vm1242_vm8, %v4947_v16, %v4717_v57 }
 0x5e3   : > { %v4887_v7 = vpop.permute.xlu1 %4886 }
 0x5e4   : > { %v4797_v3 = vpop.permute.xlu0 %4796 }
 0x5e8   : > { %v4761_v10 = vpop.permute.xlu0 %4760 }
 0x5e9   : > { %v5011_v61 = vsel %vm1275_vm9, %v4979_v59, %v4761_v10 }
 0x5ea   : > { %v5043_v33 = vsel %vm1308_vm10, %v5011_v61, %v4797_v3 }
 0x5eb   : > { %v5074_v24 = vsel %vm1341_vm11, %v5043_v33, %v6681_v51 }
 0x5ec   : > { %v4857_v30 = vpop.permute.xlu0 %4856  ;;  %v5105_v27 = vsel %vm1374_vm12, %v5074_v24, %v6692_v6 }
 0x5ed   : > { %v5104_v56 = vsel %vm1374_vm12, %v5073_v36, %v4857_v30  ;;  %v5136_v51 = vsel %vm1407_vm13, %v5105_v27, %v6707_v5 }
 0x5ee   : > { %v5731_v63 = vpop.f32.mrb[96].mxu0  ;;  %v5135_v20 = vsel %vm1407_vm13, %v5104_v56, %v4887_v7 }
 0x5ef   : > { %v5227_v48 = vpop.f32.mrb[97].mxu0  ;;  %5757 = vmatprep.mubr.msk.bf16.mxu1 %vm1461_vm14, %v5135_v20  ;;  %v5236_v54 = vadd.f32 %v5731_v63, %v8597_v1 }
 0x5f0   : > { %v5228_v6 = vadd.f32 %v8597_v1, %v5227_v48  ;;  %v5732_v35 = vpop.f32.mrb[98].mxu0  ;;  %5758 = vmatmul.mubr.msk.bf16.gmra.mrb[88].mxu1 %vm1461_vm14, %v5136_v51 }
 0x5f1   : > { %v5230_v52 = vpop.f32.mrb[99].mxu0  ;;  %v5239_v42 = vadd.f32 %v5732_v35, %v8597_v1  ;;  %v5356_v31 = vmax.f32 %v5236_v54, 0.0 }
 0x5f2   : > { %v5354_v34 = vmax.f32 %v5228_v6, 0.0  ;;  %v5231_v22 = vadd.f32 %v8597_v1, %v5230_v52 }
 0x5f3   : > { %v5357_v29 = vmax.f32 %v5239_v42, 0.0  ;;  %v5389_v62 = vsel %vm1275_vm9, %v5356_v31, 0.0 }
 0x5f4   : > { %v5355_v45 = vmax.f32 %v5231_v22, 0.0  ;;  %v5386_v55 = vsel %vm1275_vm9, %v5354_v34, 0.0 }
 0x5f5   : > { %v5391_v18 = vsel %vm1275_vm9, %v5357_v29, 0.0 }
 0x5f6   : > { %v5387_v5 = vsel %vm1275_vm9, %v5355_v45, 0.0 }
 0x5f7   : > { %v5388_v37 = vadd.f32 %v5387_v5, %v5386_v55 }
 0x5f9   : > { %v5390_v46 = vadd.f32 %v5389_v62, %v5388_v37 }
 0x5fb   : > { %v5392_v39 = vadd.f32 %v5391_v18, %v5390_v46 }
 0x60e   : > { %v5735_v47 = vpop.f32.mrb[64].mxu1 }
 0x60f   : > { %v5243_v41 = vpop.f32.mrb[65].mxu1  ;;  %v5252_v40 = vadd.f32 %v5735_v47, %v8597_v1 }
 0x610   : > { %v5244_v23 = vadd.f32 %v8597_v1, %v5243_v41  ;;  %v5736_v43 = vpop.f32.mrb[66].mxu1 }
 0x611   : > { %v5246_v17 = vpop.f32.mrb[67].mxu1  ;;  %v5255_v8 = vadd.f32 %v5736_v43, %v8597_v1  ;;  %v5360_v58 = vmax.f32 %v5252_v40, 0.0 }
 0x612   : > { %v5358_v21 = vmax.f32 %v5244_v23, 0.0  ;;  %v5247_v13 = vadd.f32 %v8597_v1, %v5246_v17 }
 0x613   : > { %v5361_v50 = vmax.f32 %v5255_v8, 0.0  ;;  %v5397_v4 = vsel %vm1275_vm9, %v5360_v58, 0.0 }
 0x614   : > { %v5393_v49 = vsel %vm1275_vm9, %v5358_v21, 0.0  ;;  %v5359_v32 = vmax.f32 %v5247_v13, 0.0 }
 0x615   : > { %v5394_v38 = vadd.f32 %v5393_v49, %v5392_v39  ;;  %v5399_v44 = vsel %vm1275_vm9, %v5361_v50, 0.0 }
 0x616   : > { %v5395_v25 = vsel %vm1275_vm9, %v5359_v32, 0.0 }
 0x617   : > { %v5396_v19 = vadd.f32 %v5395_v25, %v5394_v38 }
 0x619   : > { %v5398_v11 = vadd.f32 %v5397_v4, %v5396_v19 }
 0x61b   : > { %v5400_v15 = vadd.f32 %v5399_v44, %v5398_v11 }
 0x62e   : > { %v5739_v2 = vpop.f32.mrb[68].mxu1 }
 0x62f   : > { %v5259_v57 = vpop.f32.mrb[69].mxu1  ;;  %v5268_v9 = vadd.f32 %v5739_v2, %v8597_v1 }
 0x630   : > { %v5260_v26 = vadd.f32 %v8597_v1, %v5259_v57  ;;  %v5740_v53 = vpop.f32.mrb[70].mxu1 }
 0x631   : > { %v5262_v3 = vpop.f32.mrb[71].mxu1  ;;  %v5271_v14 = vadd.f32 %v5740_v53, %v8597_v1  ;;  %v5364_v16 = vmax.f32 %v5268_v9, 0.0 }
 0x632   : > { %v5362_v60 = vmax.f32 %v5260_v26, 0.0  ;;  %v5263_v0 = vadd.f32 %v8597_v1, %v5262_v3 }
 0x633   : > { %v5365_v61 = vmax.f32 %v5271_v14, 0.0  ;;  %v5405_v24 = vsel %vm1275_vm9, %v5364_v16, 0.0 }
 0x634   : > { %v5401_v12 = vsel %vm1275_vm9, %v5362_v60, 0.0  ;;  %v5363_v59 = vmax.f32 %v5263_v0, 0.0 }
 0x635   : > { %v5402_v10 = vadd.f32 %v5401_v12, %v5400_v15  ;;  %v5407_v30 = vsel %vm1275_vm9, %v5365_v61, 0.0 }
 0x636   : > { %v5403_v33 = vsel %vm1275_vm9, %v5363_v59, 0.0 }
 0x637   : > { %v5404_v28 = vadd.f32 %v5403_v33, %v5402_v10 }
 0x639   : > { %v5406_v36 = vadd.f32 %v5405_v24, %v5404_v28 }
 0x63b   : > { %v5408_v27 = vadd.f32 %v5407_v30, %v5406_v36 }
 0x64e   : > { %v5743_v7 = vpop.f32.mrb[72].mxu1 }
 0x64f   : > { %v5275_v56 = vpop.f32.mrb[73].mxu1  ;;  %v5284_v63 = vadd.f32 %v5743_v7, %v8597_v1 }
 0x650   : > { %v5276_v20 = vadd.f32 %v8597_v1, %v5275_v56  ;;  %v5744_v48 = vpop.f32.mrb[74].mxu1 }
 0x651   : > { %v5278_v51 = vpop.f32.mrb[75].mxu1  ;;  %v5287_v6 = vadd.f32 %v5744_v48, %v8597_v1  ;;  %v5368_v52 = vmax.f32 %v5284_v63, 0.0 }
 0x652   : > { %v5366_v54 = vmax.f32 %v5276_v20, 0.0  ;;  %v5279_v35 = vadd.f32 %v8597_v1, %v5278_v51 }
 0x653   : > { %v5369_v31 = vmax.f32 %v5287_v6, 0.0  ;;  %v5413_v29 = vsel %vm1275_vm9, %v5368_v52, 0.0 }
 0x654   : > { %v5409_v34 = vsel %vm1275_vm9, %v5366_v54, 0.0  ;;  %v5367_v42 = vmax.f32 %v5279_v35, 0.0 }
 0x655   : > { %v5410_v22 = vadd.f32 %v5409_v34, %v5408_v27  ;;  %v5415_v37 = vsel %vm1275_vm9, %v5369_v31, 0.0 }
 0x656   : > { %v5411_v45 = vsel %vm1275_vm9, %v5367_v42, 0.0 }
 0x657   : > { %v5412_v55 = vadd.f32 %v5411_v45, %v5410_v22 }
 0x659   : > { %v5414_v5 = vadd.f32 %v5413_v29, %v5412_v55 }
 0x65b   : > { %v5416_v62 = vadd.f32 %v5415_v37, %v5414_v5 }
 0x66e   : > { %v5747_v46 = vpop.f32.mrb[76].mxu1 }
 0x66f   : > { %v5291_v18 = vpop.f32.mrb[77].mxu1  ;;  %v5300_v39 = vadd.f32 %v5747_v46, %v8597_v1 }
 0x670   : > { %v5292_v47 = vadd.f32 %v8597_v1, %v5291_v18  ;;  %v5748_v41 = vpop.f32.mrb[78].mxu1 }
 0x671   : > { %v5294_v40 = vpop.f32.mrb[79].mxu1  ;;  %v5303_v43 = vadd.f32 %v5748_v41, %v8597_v1  ;;  %v5372_v21 = vmax.f32 %v5300_v39, 0.0 }
 0x672   : > { %v5370_v23 = vmax.f32 %v5292_v47, 0.0  ;;  %v5295_v17 = vadd.f32 %v8597_v1, %v5294_v40 }
 0x673   : > { %v5373_v49 = vmax.f32 %v5303_v43, 0.0  ;;  %v5421_v50 = vsel %vm1275_vm9, %v5372_v21, 0.0 }
 0x674   : > { %v5417_v8 = vsel %vm1275_vm9, %v5370_v23, 0.0  ;;  %v5371_v13 = vmax.f32 %v5295_v17, 0.0 }
 0x675   : > { %v5418_v58 = vadd.f32 %v5417_v8, %v5416_v62  ;;  %v5423_v19 = vsel %vm1275_vm9, %v5373_v49, 0.0 }
 0x676   : > { %v5419_v32 = vsel %vm1275_vm9, %v5371_v13, 0.0 }
 0x677   : > { %v5420_v38 = vadd.f32 %v5419_v32, %v5418_v58 }
 0x679   : > { %v5422_v25 = vadd.f32 %v5421_v50, %v5420_v38 }
 0x67b   : > { %v5424_v4 = vadd.f32 %v5423_v19, %v5422_v25 }
 0x68e   : > { %v5751_v11 = vpop.f32.mrb[80].mxu1 }
 0x68f   : > { %v5307_v44 = vpop.f32.mrb[81].mxu1  ;;  %v5316_v15 = vadd.f32 %v5751_v11, %v8597_v1 }
 0x690   : > { %v5308_v2 = vadd.f32 %v8597_v1, %v5307_v44  ;;  %v5752_v57 = vpop.f32.mrb[82].mxu1 }
 0x691   : > { %v5310_v9 = vpop.f32.mrb[83].mxu1  ;;  %v5319_v53 = vadd.f32 %v5752_v57, %v8597_v1  ;;  %v5376_v60 = vmax.f32 %v5316_v15, 0.0  ;;  %v5463_v57 = vld [vmem:[%s8733_s9] sm:$0xff] }
 0x692   : > { %v5374_v26 = vmax.f32 %v5308_v2, 0.0  ;;  %v5311_v3 = vadd.f32 %v8597_v1, %v5310_v9  ;;  %v5464_v2 = vld [vmem:[%s8733_s9 + $0x8] sm:$0xff] }
 0x693   : > { %v5377_v12 = vmax.f32 %v5319_v53, 0.0  ;;  %v5429_v61 = vsel %vm1275_vm9, %v5376_v60, 0.0 }
 0x694   : > { %v5425_v14 = vsel %vm1275_vm9, %v5374_v26, 0.0  ;;  %v5375_v0 = vmax.f32 %v5311_v3, 0.0 }
 0x695   : > { %v5426_v16 = vadd.f32 %v5425_v14, %v5424_v4  ;;  %v5431_v28 = vsel %vm1275_vm9, %v5377_v12, 0.0 }
 0x696   : > { %v5427_v59 = vsel %vm1275_vm9, %v5375_v0, 0.0 }
 0x697   : > { %v5428_v10 = vadd.f32 %v5427_v59, %v5426_v16 }
 0x699   : > { %v5430_v33 = vadd.f32 %v5429_v61, %v5428_v10  ;;  %v5474_v10 = vld [vmem:[%s8734_s10] sm:$0x1] }
 0x69b   : > { %v5432_v24 = vadd.f32 %v5431_v28, %v5430_v33 }
 0x6ae   : > { %v5755_v36 = vpop.f32.mrb[84].mxu1 }
 0x6af   : > { %v5323_v30 = vpop.f32.mrb[85].mxu1  ;;  %v5332_v27 = vadd.f32 %v5755_v36, %v8597_v1 }
 0x6b0   : > { %v5324_v7 = vadd.f32 %v8597_v1, %v5323_v30  ;;  %v5756_v56 = vpop.f32.mrb[86].mxu1 }
 0x6b1   : > { %v5326_v63 = vpop.f32.mrb[87].mxu1  ;;  %v5335_v48 = vadd.f32 %v5756_v56, %v8597_v1  ;;  %v5380_v54 = vmax.f32 %v5332_v27, 0.0 }
 0x6b2   : > { %v5378_v20 = vmax.f32 %v5324_v7, 0.0  ;;  %v5327_v51 = vadd.f32 %v8597_v1, %v5326_v63 }
 0x6b3   : > { %v5381_v34 = vmax.f32 %v5335_v48, 0.0  ;;  %v5437_v31 = vsel %vm1275_vm9, %v5380_v54, 0.0 }
 0x6b4   : > { %v5433_v6 = vsel %vm1275_vm9, %v5378_v20, 0.0  ;;  %v5379_v35 = vmax.f32 %v5327_v51, 0.0 }
 0x6b5   : > { %v5434_v52 = vadd.f32 %v5433_v6, %v5432_v24  ;;  %v5439_v55 = vsel %vm1275_vm9, %v5381_v34, 0.0 }
 0x6b6   : > { %v5435_v42 = vsel %vm1275_vm9, %v5379_v35, 0.0 }
 0x6b7   : > { %v5436_v22 = vadd.f32 %v5435_v42, %v5434_v52 }
 0x6b9   : > { %v5438_v45 = vadd.f32 %v5437_v31, %v5436_v22 }
 0x6bb   : > { %v5440_v29 = vadd.f32 %v5439_v55, %v5438_v45 }
 0x6c3   : > { %v5759_v5 = vpop.f32.mrb[88].mxu1 }
 0x6c4   : > { %v5339_v37 = vpop.f32.mrb[89].mxu1  ;;  %v5348_v62 = vadd.f32 %v5759_v5, %v8597_v1 }
 0x6c5   : > { %v5340_v46 = vadd.f32 %v8597_v1, %v5339_v37  ;;  %v5760_v18 = vpop.f32.mrb[90].mxu1 }
 0x6c6   : > { %v5342_v39 = vpop.f32.mrb[91].mxu1  ;;  %v5351_v41 = vadd.f32 %v5760_v18, %v8597_v1  ;;  %v5384_v23 = vmax.f32 %v5348_v62, 0.0 }
 0x6c7   : > { %v5382_v47 = vmax.f32 %v5340_v46, 0.0  ;;  %v5343_v40 = vadd.f32 %v8597_v1, %v5342_v39 }
 0x6c8   : > { %v5385_v8 = vmax.f32 %v5351_v41, 0.0  ;;  %v5445_v49 = vsel %vm1275_vm9, %v5384_v23, 0.0 }
 0x6c9   : > { %v5441_v43 = vsel %vm1275_vm9, %v5382_v47, 0.0  ;;  %v5383_v17 = vmax.f32 %v5343_v40, 0.0 }
 0x6ca   : > { %v5442_v21 = vadd.f32 %v5441_v43, %v5440_v29  ;;  %v5447_v38 = vsel %vm1275_vm9, %v5385_v8, 0.0 }
 0x6cb   : > { %v5443_v13 = vsel %vm1275_vm9, %v5383_v17, 0.0 }
 0x6cc   : > { %v5444_v58 = vadd.f32 %v5443_v13, %v5442_v21 }
 0x6ce   : > { %v5446_v32 = vadd.f32 %v5445_v49, %v5444_v58 }
 0x6d0   : > { %v5448_v50 = vadd.f32 %v5447_v38, %v5446_v32 }
 0x6d2   : > { %v5449_v25 = vrot.slane %v5448_v50, 4 }
 0x6d4   : > { %v5450_v19 = vadd.f32 %v5449_v25, %v5448_v50 }
 0x6d6   : > { %v5451_v4 = vrot.slane %v5450_v19, 2 }
 0x6d8   : > { %v5452_v1 = vadd.f32 %v5451_v4, %v5450_v19 }
 0x6da   : > { %v5453_v11 = vrot.slane %v5452_v1, 1 }
 0x6dc   : > { %v5454_v44 = vadd.f32 %v5453_v11, %v5452_v1 }
 0x6de   : > { %v5455_v15 = vmul.f32 0.00390625, %v5454_v44 }
 0x6e0   : > { %5461 = vbcast.lane.b32.xlu1 %v5455_v15, 264  ;;  %5457 = vbcast.lane.b32.xlu0 %v5455_v15, 256 }
 0x752   : > { %v5462_v9 = vpop.permute.xlu1 %5461  ;;  %v5458_v26 = vpop.permute.xlu0 %5457 }
 0x753   : > { %v5466_v53 = vmul.f32 %v5464_v2, %v5462_v9  ;;  %v5465_v3 = vmul.f32 %v5463_v57, %v5458_v26 }
 0x755   : > { %v5467_v60 = vadd.f32 %v5466_v53, %v5465_v3 }
 0x757   : > { %v5468_v14 = vrot.slane %v5467_v60, 4 }
 0x759   : > { %v5469_v0 = vadd.f32 %v5468_v14, %v5467_v60 }
 0x75b   : > { %v5470_v16 = vrot.slane %v5469_v0, 2 }
 0x75d   : > { %v5471_v12 = vadd.f32 %v5470_v16, %v5469_v0 }
 0x75f   : > { %v5472_v59 = vrot.slane %v5471_v12, 1 }
 0x761   : > { %v5473_v61 = vadd.f32 %v5472_v59, %v5471_v12 }
 0x763   : > { %v5475_v33 = vadd.f32 %v5474_v10, %v5473_v61 }
 0x765   : > { %5476 = vst [vmem:[%s378_s13] sm:$0x1] %v5475_v33 }
 0x766   : > { %5895 = shalt.err (!%p5892_p3)
}
 0x767   : > { %s5896_s22 = scalar_lea.hbm %s8682_s25, 16  ;;  %s5900_s0 = scalar_lea.hbm %s8735_s11, 32 }
 0x768   : > { %p5897_p4 = scmp.ne.s32.totalorder %s8682_s25, %s5896_s22  ;;  %p5901_p9 = scmp.lt.u32.totalorder %s8682_s25, %s8735_s11 }
 0x769   : > { %p5902_p10 = scmp.lt.u32.totalorder %s5900_s0, %s5896_s22  ;;  %p5904_p12 = scmp.lt.u32.totalorder %s5896_s22, %s8682_s25 }
 0x76a   : > { %p5898_p7 = pnand %p5897_p4, %p6059_p5 }
 0x76b   : > { %p5903_p11 = por %p5902_p10, %p5901_p9 }
 0x76c   : > { %p5899_p8 = pneg %p5898_p7 }
 0x76d   : > { %p5905_p13 = por %p5904_p12, %p5903_p11 }
 0x76f   : > { %p5906_p0 = pnand %p5905_p13, %p5899_p8 }
 0x771   : > { %5909 = shalt.err (!%p5906_p0)
}
 0x772   : > { %5770 = dma.vmem_to_hbm [thread:$0]  (%p6059_p5), %s8684_s1, 16, %s8682_s25, %s5478_s12  }
 0x773 PF: > { %p5776_p1 = scmp.ge.s32.totalorder %s5944_s20, 2  ;;  %s5502_s14 = sand.u32 1, %s5932_s17  }
 0x774   : > { %s5503_s16 = scalar_lea.sflag [#allocation3], %s5502_s14 }
 0x775   : > { %p5773_p2 = pnand %p5776_p1, %p6063_p6 }
 0x777   : > { %5927 = dma.done.wait (!%p5773_p2), %s5503_s16, 16  }
 0x778   : > { %5929 = vsyncadd (!%p5773_p2), %s5503_s16, 4294967280  ;;  %p21_p3 = scmp.ge.s32.totalorder %s6046_s23, 4   ;;  %s8811_s17 = smov %s5936_s18 }
 0x779   : > { %s8812_s18 = smov %s5940_s19  ;;  %s8813_s19 = smov %s6057_s26 }
 0x77a   : > { %s8814_s20 = smov %s6046_s23  ;;  %23 = sbr.rel (!%p21_p3) target bundleno = 7 (0x7), region = 99 }
 0x781   :  { %5507 = vsyncpa [#allocation3], 1 }
 0x782   :  { %5509 = vsyncpa [#allocation3 + $0x1], 1 }

</bundles_post_ra>
